<compile_context>
chip_gen: v6e
topology: v6e:2x2x1
jax: 0.10.0
libtpu: 0.0.40
codegen_flags: <defaults>
</compile_context>

<pallas_src>
import jax
import jax.numpy as jnp
from jax import lax
from jax.experimental import pallas as pl
from jax.experimental.pallas import tpu as pltpu

# Keep all f32 matmuls (XLA reference, wrapper precompute and the traced kernel
# dots) at full f32 precision so the correctness check is not dominated by the
# default bf16-pass MXU truncation.
jax.config.update("jax_default_matmul_precision", "highest")


def _gelu(x):
  # torch.nn.GELU default (exact, erf-based)
  return 0.5 * x * (1.0 + lax.erf(x * 0.7071067811865476))


def improved_graph_attention_kernel(
    xp_ref, a_src_ref, a_dst_ref, e_ref, medge_ref, mask_ref, bias_ref,
    w1_ref, b1_ref, w2t_ref, b2_ref, gamma_ref, beta_ref,
    out_ref, attn_ref):
  H = a_src_ref.shape[0]
  HC = xp_ref.shape[1]
  C = HC // H
  edge_dim = e_ref.shape[0]

  mask = mask_ref[...]                                   # [T, N] rows=dst, cols=src
  unmasked = mask > 0.0
  neg_big = jnp.float32(-1e9)

  head_outs = []
  for h in range(H):                                     # H static & small
    # Edge-attention bias for this head (live range bounded to this iteration).
    eb = e_ref[0] * medge_ref[0:1, h:h + 1]
    for d in range(1, edge_dim):
      eb = eb + e_ref[d] * medge_ref[d:d + 1, h:h + 1]

    s = a_dst_ref[:, h:h + 1] + a_src_ref[h:h + 1, :] + eb        # [T, N]
    s = jnp.where(s > 0, s, 0.2 * s)                              # LeakyReLU(0.2)
    s = jnp.where(unmasked, s, neg_big)
    s = s - jnp.max(s, axis=1, keepdims=True)
    p = jnp.exp(s)
    p = jnp.where(unmasked, p, 0.0)                               # exact zeros off-graph
    p = p / jnp.sum(p, axis=1, keepdims=True)                     # exact normalization

    xh = xp_ref[:, h * C:(h + 1) * C]                             # [N, C]
    head_outs.append(jnp.dot(p, xh, preferred_element_type=jnp.float32))

  # One full-width [T, HC] value; single store path, no scratch round-trip.
  x_gat = jnp.concatenate(head_outs, axis=1) + bias_ref[...]
  # TODO(synk): GATConv attention dropout and the module's nn.Dropout are identity in eval mode.

  # node-attention MLP -> sigmoid gate
  h1 = jnp.dot(x_gat, w1_ref[...], preferred_element_type=jnp.float32) + b1_ref[...]
  h1 = _gelu(h1)
  # 1-column matmul replaced by VPU multiply + lane reduction.
  logits = jnp.sum(h1 * w2t_ref[...], axis=1, keepdims=True) + b2_ref[...]    # [T, 1]
  attn = 1.0 / (1.0 + jnp.exp(-logits))                                       # exact sigmoid
  attn_ref[...] = jnp.broadcast_to(attn, attn_ref.shape)                      # lane-dense store

  # weighted features + LayerNorm(out_dim)
  xw = x_gat * attn
  mu = jnp.mean(xw, axis=1, keepdims=True)
  var = jnp.mean((xw - mu) ** 2, axis=1, keepdims=True)
  xn = (xw - mu) * lax.rsqrt(var + 1e-5)
  out_ref[...] = xn * gamma_ref[...] + beta_ref[...]


def improved_graph_attention(x, prm, e_dense, mask, *, dst_tile=128):
  N, _ = x.shape
  H, C = prm["att_src"].shape
  HC = H * C
  edge_dim = e_dense.shape[0]
  T = min(dst_tile, N)
  assert N % T == 0 and T % 8 == 0
  grid = (N // T,)
  ATTN_LANES = 128

  # ---- Hoisted full-graph precompute (plain XLA; runs once, not per grid step) ----
  xp = (x @ prm["w"]).astype(jnp.float32)                        # [N, HC]
  xp_h = xp.reshape(N, H, C)
  a_src = jnp.einsum("nhc,hc->hn", xp_h, prm["att_src"])         # [H, N] per-src logits
  a_dst = jnp.einsum("nhc,hc->nh", xp_h, prm["att_dst"])         # [N, H] per-dst logits
  w2t = prm["w2"].T                                              # [1, HC//2]

  args = (xp, a_src, a_dst, e_dense, prm["m_edge"], mask, prm["bias"],
          prm["w1"], prm["b1"], w2t, prm["b2"], prm["gamma"], prm["beta"])

  def full_spec(shape):
    nd = len(shape)
    return pl.BlockSpec(shape, lambda i, nd=nd: (0,) * nd)

  in_specs = [
      full_spec(xp.shape),                                   # xp: all src nodes (resident)
      full_spec(a_src.shape),                                # a_src [H, N]     (resident)
      pl.BlockSpec((T, H), lambda i: (i, 0)),                # a_dst dst-row tile
      pl.BlockSpec((edge_dim, T, N), lambda i: (0, i, 0)),   # e_dense dst-row tile
      full_spec(prm["m_edge"].shape),
      pl.BlockSpec((T, N), lambda i: (i, 0)),                # mask dst-row tile
      full_spec(prm["bias"].shape),
      full_spec(prm["w1"].shape),
      full_spec(prm["b1"].shape),
      full_spec(w2t.shape),
      full_spec(prm["b2"].shape),
      full_spec(prm["gamma"].shape),
      full_spec(prm["beta"].shape),
  ]
  out_specs = [pl.BlockSpec((T, HC), lambda i: (i, 0)),
               pl.BlockSpec((T, ATTN_LANES), lambda i: (i, 0))]

  x_out, attn_full = pl.pallas_call(
      improved_graph_attention_kernel,
      out_shape=(jax.ShapeDtypeStruct((N, HC), jnp.float32),
                 jax.ShapeDtypeStruct((N, ATTN_LANES), jnp.float32)),
      grid_spec=pltpu.PrefetchScalarGridSpec(
          num_scalar_prefetch=0,
          grid=grid,
          in_specs=in_specs,
          out_specs=out_specs),
      compiler_params=pltpu.CompilerParams(
          dimension_semantics=("parallel",),
          vmem_limit_bytes=48 * 1024 * 1024),
  )(*args)
  return x_out, attn_full[:, :1]


def reference(x, prm, e_dense, mask, H, C):
  """Pure-JAX reference of the same dense formulation (for correctness check)."""
  xp = x @ prm["w"]
  outs = []
  for h in range(H):
    xh = xp[:, h * C:(h + 1) * C]
    a_src = (xh * prm["att_src"][h]).sum(-1)
    a_dst = (xh * prm["att_dst"][h]).sum(-1)
    a_edge = jnp.einsum("dij,d->ij", e_dense, prm["m_edge"][:, h])
    s = a_dst[:, None] + a_src[None, :] + a_edge
    s = jnp.where(s > 0, s, 0.2 * s)
    s = jnp.where(mask > 0, s, -1e9)
    p_att = jax.nn.softmax(s, axis=1) * mask
    p_att = p_att / p_att.sum(axis=1, keepdims=True)
    outs.append(p_att @ xh)
  x_gat = jnp.concatenate(outs, axis=1) + prm["bias"]
  h1 = _gelu(x_gat @ prm["w1"] + prm["b1"])
  attn = jax.nn.sigmoid(h1 @ prm["w2"] + prm["b2"])
  xw = x_gat * attn
  mu = xw.mean(-1, keepdims=True)
  var = ((xw - mu) ** 2).mean(-1, keepdims=True)
  out = (xw - mu) * lax.rsqrt(var + 1e-5) * prm["gamma"] + prm["beta"]
  return out, attn


if __name__ == "__main__":
  N, in_dim, out_dim, heads, edge_dim = 64, 8, 32, 4, 1
  C = out_dim // heads
  key = jax.random.PRNGKey(0)
  ks = jax.random.split(key, 12)

  x = jax.random.normal(ks[0], (N, in_dim), jnp.float32)

  # graph: bidirectional ring + a few chords (no self loops, no duplicate edges)
  src_list, dst_list = [], []
  for i in range(N):
    src_list += [i, (i + 1) % N]
    dst_list += [(i + 1) % N, i]
  for a, b in [(0, 5), (3, 9), (7, 12), (2, 14), (21, 40), (33, 50), (10, 27), (48, 61)]:
    src_list.append(a)
    dst_list.append(b)
  src = jnp.array(src_list, jnp.int32)
  dst = jnp.array(dst_list, jnp.int32)
  E = int(src.shape[0])
  edge_attr = jax.random.uniform(ks[1], (E, edge_dim), jnp.float32)

  # Dense mask / dense edge features.  GATConv default adds self loops with
  # edge_attr filled by the mean of incoming edge attributes (fill_value='mean').
  mask = jnp.zeros((N, N), jnp.float32).at[dst, src].set(1.0)
  e_dense = jnp.zeros((edge_dim, N, N), jnp.float32).at[:, dst, src].set(edge_attr.T)
  sums = jnp.zeros((N, edge_dim), jnp.float32).at[dst].add(edge_attr)
  cnts = jnp.zeros((N,), jnp.float32).at[dst].add(1.0)
  loop_attr = sums / jnp.maximum(cnts, 1.0)[:, None]
  diag = jnp.arange(N)
  mask = mask.at[diag, diag].set(1.0)
  e_dense = e_dense.at[:, diag, diag].set(loop_attr.T)

  # Deterministic parameter init (synthetic weights; shapes match the module).
  def init(k, shape, scale=0.3):
    return jax.random.normal(k, shape, jnp.float32) * scale

  prm = dict(
      w=init(ks[2], (in_dim, out_dim)),            # GATConv shared lin (no bias)
      att_src=init(ks[3], (heads, C)),
      att_dst=init(ks[4], (heads, C)),
      w_edge=init(ks[5], (edge_dim, out_dim)),     # GATConv lin_edge (no bias)
      att_edge=init(ks[6], (heads, C)),
      bias=init(ks[7], (1, out_dim), 0.1),         # GATConv output bias (concat heads)
      w1=init(ks[8], (out_dim, out_dim // 2)),     # node_attention Linear 1
      b1=init(ks[9], (1, out_dim // 2), 0.1),
      w2=init(ks[10], (out_dim // 2, 1)),          # node_attention Linear 2
      b2=init(ks[11], (1, 1), 0.1),
      gamma=jnp.ones((1, out_dim), jnp.float32),   # LayerNorm weight
      beta=jnp.zeros((1, out_dim), jnp.float32),   # LayerNorm bias
  )
  # Fold lin_edge followed by the att_edge dot product into one (edge_dim, heads)
  # matrix (exact algebraic simplification; both are linear in edge_attr).
  prm["m_edge"] = jnp.sum(
      prm["w_edge"].reshape(edge_dim, heads, C) * prm["att_edge"][None], axis=-1)

  # dst_tile=32 -> grid of 2 so the tiling / index maps are actually exercised;
  # at real graph sizes the default (128) fills the MXU rows.
  x_out, attn_w = improved_graph_attention(x, prm, e_dense, mask, dst_tile=32)
  jax.block_until_ready((x_out, attn_w))

  ref_out, ref_attn = reference(x, prm, e_dense, mask, heads, C)
  assert x_out.shape == (N, out_dim) and attn_w.shape == (N, 1)
  assert jnp.allclose(x_out, ref_out, rtol=2e-3, atol=2e-3), \
      float(jnp.max(jnp.abs(x_out - ref_out)))
  assert jnp.allclose(attn_w, ref_attn, rtol=2e-3, atol=2e-3), \
      float(jnp.max(jnp.abs(attn_w - ref_attn)))
  print("KERNEL_OK")
</pallas_src>

<mosaic_0001>
module attributes {stable_mosaic.version = 11 : i64} {
  func.func @improved_graph_attention_kernel(%arg0: i32, %arg1: memref<64x32xf32, #tpu.memory_space<vmem>>, %arg2: memref<4x64xf32, #tpu.memory_space<vmem>>, %arg3: memref<32x4xf32, #tpu.memory_space<vmem>>, %arg4: memref<1x32x64xf32, #tpu.memory_space<vmem>>, %arg5: memref<1x4xf32, #tpu.memory_space<vmem>>, %arg6: memref<32x64xf32, #tpu.memory_space<vmem>>, %arg7: memref<1x32xf32, #tpu.memory_space<vmem>>, %arg8: memref<32x16xf32, #tpu.memory_space<vmem>>, %arg9: memref<1x16xf32, #tpu.memory_space<vmem>>, %arg10: memref<1x16xf32, #tpu.memory_space<vmem>>, %arg11: memref<1x1xf32, #tpu.memory_space<vmem>>, %arg12: memref<1x32xf32, #tpu.memory_space<vmem>>, %arg13: memref<1x32xf32, #tpu.memory_space<vmem>>, %arg14: memref<32x32xf32, #tpu.memory_space<vmem>>, %arg15: memref<32x128xf32, #tpu.memory_space<vmem>>) attributes {dimension_semantics = [#tpu.dimension_semantics<parallel>], iteration_bounds = array<i64: 2>, scalar_prefetch = 0 : i64, scratch_operands = 0 : i64, tpu.core_type = #tpu.core_type<tc>, window_params = [{pipeline_mode = #tpu.pipeline_mode<synchronous>, transform_indices = @transform_0, window_bounds = array<i64: 64, 32>}, {pipeline_mode = #tpu.pipeline_mode<synchronous>, transform_indices = @transform_1, window_bounds = array<i64: 4, 64>}, {transform_indices = @transform_2, window_bounds = array<i64: 32, 4>}, {transform_indices = @transform_3, window_bounds = array<i64: 1, 32, 64>}, {pipeline_mode = #tpu.pipeline_mode<synchronous>, transform_indices = @transform_4, window_bounds = array<i64: 1, 4>}, {transform_indices = @transform_5, window_bounds = array<i64: 32, 64>}, {pipeline_mode = #tpu.pipeline_mode<synchronous>, transform_indices = @transform_6, window_bounds = array<i64: 1, 32>}, {pipeline_mode = #tpu.pipeline_mode<synchronous>, transform_indices = @transform_7, window_bounds = array<i64: 32, 16>}, {pipeline_mode = #tpu.pipeline_mode<synchronous>, transform_indices = @transform_8, window_bounds = array<i64: 1, 16>}, {pipeline_mode = #tpu.pipeline_mode<synchronous>, transform_indices = @transform_9, window_bounds = array<i64: 1, 16>}, {pipeline_mode = #tpu.pipeline_mode<synchronous>, transform_indices = @transform_10, window_bounds = array<i64: 1, 1>}, {pipeline_mode = #tpu.pipeline_mode<synchronous>, transform_indices = @transform_11, window_bounds = array<i64: 1, 32>}, {pipeline_mode = #tpu.pipeline_mode<synchronous>, transform_indices = @transform_12, window_bounds = array<i64: 1, 32>}, {transform_indices = @transform_13, window_bounds = array<i64: 32, 32>}, {transform_indices = @transform_14, window_bounds = array<i64: 32, 128>}]} {
    %c0 = arith.constant 0 : index
    %c0_0 = arith.constant 0 : index
    %0 = vector.load %arg6[%c0, %c0_0] : memref<32x64xf32, #tpu.memory_space<vmem>>, vector<32x64xf32>
    %cst = arith.constant 0.000000e+00 : f32
    %1 = vector.broadcast %cst : f32 to vector<32x64xf32>
    %2 = arith.cmpf ogt, %0, %1 : vector<32x64xf32>
    %c0_1 = arith.constant 0 : index
    %c0_2 = arith.constant 0 : index
    %c0_3 = arith.constant 0 : index
    %3 = vector.load %arg4[%c0_1, %c0_2, %c0_3] : memref<1x32x64xf32, #tpu.memory_space<vmem>>, vector<1x32x64xf32>
    %4 = vector.shape_cast %3 : vector<1x32x64xf32> to vector<32x64xf32>
    %c0_4 = arith.constant 0 : index
    %c0_5 = arith.constant 0 : index
    %5 = vector.load %arg5[%c0_4, %c0_5] : memref<1x4xf32, #tpu.memory_space<vmem>>, vector<1x1xf32>
    %6 = vector.broadcast %5 : vector<1x1xf32> to vector<32x64xf32>
    %7 = arith.mulf %4, %6 : vector<32x64xf32>
    %c0_6 = arith.constant 0 : index
    %c0_7 = arith.constant 0 : index
    %8 = vector.load %arg3[%c0_6, %c0_7] : memref<32x4xf32, #tpu.memory_space<vmem>>, vector<32x1xf32>
    %c0_8 = arith.constant 0 : index
    %c0_9 = arith.constant 0 : index
    %9 = vector.load %arg2[%c0_8, %c0_9] : memref<4x64xf32, #tpu.memory_space<vmem>>, vector<1x64xf32>
    %10 = vector.broadcast %8 : vector<32x1xf32> to vector<32x64xf32>
    %11 = vector.broadcast %9 : vector<1x64xf32> to vector<32x64xf32>
    %12 = arith.addf %10, %11 : vector<32x64xf32>
    %13 = arith.addf %12, %7 : vector<32x64xf32>
    %cst_10 = arith.constant 0.000000e+00 : f32
    %14 = vector.broadcast %cst_10 : f32 to vector<32x64xf32>
    %15 = arith.cmpf ogt, %13, %14 : vector<32x64xf32>
    %cst_11 = arith.constant 2.000000e-01 : f32
    %16 = vector.broadcast %cst_11 : f32 to vector<32x64xf32>
    %17 = arith.mulf %16, %13 : vector<32x64xf32>
    %18 = arith.select %15, %13, %17 : vector<32x64xi1>, vector<32x64xf32>
    %cst_12 = arith.constant -1.000000e+09 : f32
    %19 = vector.broadcast %cst_12 : f32 to vector<32x64xf32>
    %20 = arith.select %2, %18, %19 : vector<32x64xi1>, vector<32x64xf32>
    %cst_13 = arith.constant dense<0xFF800000> : vector<32xf32>
    %21 = vector.multi_reduction <maximumf>, %20, %cst_13 [1] : vector<32x64xf32> to vector<32xf32>
    %22 = vector.shape_cast %21 : vector<32xf32> to vector<32x1xf32>
    %23 = vector.broadcast %22 : vector<32x1xf32> to vector<32x64xf32>
    %24 = arith.subf %20, %23 : vector<32x64xf32>
    %25 = math.exp %24 : vector<32x64xf32>
    %cst_14 = arith.constant 0.000000e+00 : f32
    %26 = vector.broadcast %cst_14 : f32 to vector<32x64xf32>
    %27 = arith.select %2, %25, %26 : vector<32x64xi1>, vector<32x64xf32>
    %cst_15 = arith.constant dense<0.000000e+00> : vector<32xf32>
    %28 = vector.multi_reduction <add>, %27, %cst_15 [1] : vector<32x64xf32> to vector<32xf32>
    %29 = vector.shape_cast %28 : vector<32xf32> to vector<32x1xf32>
    %30 = vector.broadcast %29 : vector<32x1xf32> to vector<32x64xf32>
    %31 = arith.divf %27, %30 : vector<32x64xf32>
    %c0_16 = arith.constant 0 : index
    %c0_17 = arith.constant 0 : index
    %32 = vector.load %arg1[%c0_16, %c0_17] : memref<64x32xf32, #tpu.memory_space<vmem>>, vector<64x8xf32>
    %cst_18 = arith.constant dense<0.000000e+00> : vector<32x8xf32>
    %33 = tpu.matmul %31, %32, %cst_18 {dimension_numbers = #tpu.dot_dimension_numbers<[1], [0], [0], [1], [0, 0, 1, 1], [], []>, precision = #tpu.contract_precision<fp32>} : vector<32x64xf32>, vector<64x8xf32>, vector<32x8xf32> -> vector<32x8xf32>
    %c0_19 = arith.constant 0 : index
    %c0_20 = arith.constant 0 : index
    %c0_21 = arith.constant 0 : index
    %34 = vector.load %arg4[%c0_19, %c0_20, %c0_21] : memref<1x32x64xf32, #tpu.memory_space<vmem>>, vector<1x32x64xf32>
    %35 = vector.shape_cast %34 : vector<1x32x64xf32> to vector<32x64xf32>
    %c0_22 = arith.constant 0 : index
    %c1 = arith.constant 1 : index
    %36 = vector.load %arg5[%c0_22, %c1] : memref<1x4xf32, #tpu.memory_space<vmem>>, vector<1x1xf32>
    %37 = vector.broadcast %36 : vector<1x1xf32> to vector<32x64xf32>
    %38 = arith.mulf %35, %37 : vector<32x64xf32>
    %c0_23 = arith.constant 0 : index
    %c1_24 = arith.constant 1 : index
    %39 = vector.load %arg3[%c0_23, %c1_24] : memref<32x4xf32, #tpu.memory_space<vmem>>, vector<32x1xf32>
    %c1_25 = arith.constant 1 : index
    %c0_26 = arith.constant 0 : index
    %40 = vector.load %arg2[%c1_25, %c0_26] : memref<4x64xf32, #tpu.memory_space<vmem>>, vector<1x64xf32>
    %41 = vector.broadcast %39 : vector<32x1xf32> to vector<32x64xf32>
    %42 = vector.broadcast %40 : vector<1x64xf32> to vector<32x64xf32>
    %43 = arith.addf %41, %42 : vector<32x64xf32>
    %44 = arith.addf %43, %38 : vector<32x64xf32>
    %cst_27 = arith.constant 0.000000e+00 : f32
    %45 = vector.broadcast %cst_27 : f32 to vector<32x64xf32>
    %46 = arith.cmpf ogt, %44, %45 : vector<32x64xf32>
    %cst_28 = arith.constant 2.000000e-01 : f32
    %47 = vector.broadcast %cst_28 : f32 to vector<32x64xf32>
    %48 = arith.mulf %47, %44 : vector<32x64xf32>
    %49 = arith.select %46, %44, %48 : vector<32x64xi1>, vector<32x64xf32>
    %cst_29 = arith.constant -1.000000e+09 : f32
    %50 = vector.broadcast %cst_29 : f32 to vector<32x64xf32>
    %51 = arith.select %2, %49, %50 : vector<32x64xi1>, vector<32x64xf32>
    %cst_30 = arith.constant dense<0xFF800000> : vector<32xf32>
    %52 = vector.multi_reduction <maximumf>, %51, %cst_30 [1] : vector<32x64xf32> to vector<32xf32>
    %53 = vector.shape_cast %52 : vector<32xf32> to vector<32x1xf32>
    %54 = vector.broadcast %53 : vector<32x1xf32> to vector<32x64xf32>
    %55 = arith.subf %51, %54 : vector<32x64xf32>
    %56 = math.exp %55 : vector<32x64xf32>
    %cst_31 = arith.constant 0.000000e+00 : f32
    %57 = vector.broadcast %cst_31 : f32 to vector<32x64xf32>
    %58 = arith.select %2, %56, %57 : vector<32x64xi1>, vector<32x64xf32>
    %cst_32 = arith.constant dense<0.000000e+00> : vector<32xf32>
    %59 = vector.multi_reduction <add>, %58, %cst_32 [1] : vector<32x64xf32> to vector<32xf32>
    %60 = vector.shape_cast %59 : vector<32xf32> to vector<32x1xf32>
    %61 = vector.broadcast %60 : vector<32x1xf32> to vector<32x64xf32>
    %62 = arith.divf %58, %61 : vector<32x64xf32>
    %c0_33 = arith.constant 0 : index
    %c8 = arith.constant 8 : index
    %63 = vector.load %arg1[%c0_33, %c8] : memref<64x32xf32, #tpu.memory_space<vmem>>, vector<64x8xf32>
    %cst_34 = arith.constant dense<0.000000e+00> : vector<32x8xf32>
    %64 = tpu.matmul %62, %63, %cst_34 {dimension_numbers = #tpu.dot_dimension_numbers<[1], [0], [0], [1], [0, 0, 1, 1], [], []>, precision = #tpu.contract_precision<fp32>} : vector<32x64xf32>, vector<64x8xf32>, vector<32x8xf32> -> vector<32x8xf32>
    %c0_35 = arith.constant 0 : index
    %c0_36 = arith.constant 0 : index
    %c0_37 = arith.constant 0 : index
    %65 = vector.load %arg4[%c0_35, %c0_36, %c0_37] : memref<1x32x64xf32, #tpu.memory_space<vmem>>, vector<1x32x64xf32>
    %66 = vector.shape_cast %65 : vector<1x32x64xf32> to vector<32x64xf32>
    %c0_38 = arith.constant 0 : index
    %c2 = arith.constant 2 : index
    %67 = vector.load %arg5[%c0_38, %c2] : memref<1x4xf32, #tpu.memory_space<vmem>>, vector<1x1xf32>
    %68 = vector.broadcast %67 : vector<1x1xf32> to vector<32x64xf32>
    %69 = arith.mulf %66, %68 : vector<32x64xf32>
    %c0_39 = arith.constant 0 : index
    %c2_40 = arith.constant 2 : index
    %70 = vector.load %arg3[%c0_39, %c2_40] : memref<32x4xf32, #tpu.memory_space<vmem>>, vector<32x1xf32>
    %c2_41 = arith.constant 2 : index
    %c0_42 = arith.constant 0 : index
    %71 = vector.load %arg2[%c2_41, %c0_42] : memref<4x64xf32, #tpu.memory_space<vmem>>, vector<1x64xf32>
    %72 = vector.broadcast %70 : vector<32x1xf32> to vector<32x64xf32>
    %73 = vector.broadcast %71 : vector<1x64xf32> to vector<32x64xf32>
    %74 = arith.addf %72, %73 : vector<32x64xf32>
    %75 = arith.addf %74, %69 : vector<32x64xf32>
    %cst_43 = arith.constant 0.000000e+00 : f32
    %76 = vector.broadcast %cst_43 : f32 to vector<32x64xf32>
    %77 = arith.cmpf ogt, %75, %76 : vector<32x64xf32>
    %cst_44 = arith.constant 2.000000e-01 : f32
    %78 = vector.broadcast %cst_44 : f32 to vector<32x64xf32>
    %79 = arith.mulf %78, %75 : vector<32x64xf32>
    %80 = arith.select %77, %75, %79 : vector<32x64xi1>, vector<32x64xf32>
    %cst_45 = arith.constant -1.000000e+09 : f32
    %81 = vector.broadcast %cst_45 : f32 to vector<32x64xf32>
    %82 = arith.select %2, %80, %81 : vector<32x64xi1>, vector<32x64xf32>
    %cst_46 = arith.constant dense<0xFF800000> : vector<32xf32>
    %83 = vector.multi_reduction <maximumf>, %82, %cst_46 [1] : vector<32x64xf32> to vector<32xf32>
    %84 = vector.shape_cast %83 : vector<32xf32> to vector<32x1xf32>
    %85 = vector.broadcast %84 : vector<32x1xf32> to vector<32x64xf32>
    %86 = arith.subf %82, %85 : vector<32x64xf32>
    %87 = math.exp %86 : vector<32x64xf32>
    %cst_47 = arith.constant 0.000000e+00 : f32
    %88 = vector.broadcast %cst_47 : f32 to vector<32x64xf32>
    %89 = arith.select %2, %87, %88 : vector<32x64xi1>, vector<32x64xf32>
    %cst_48 = arith.constant dense<0.000000e+00> : vector<32xf32>
    %90 = vector.multi_reduction <add>, %89, %cst_48 [1] : vector<32x64xf32> to vector<32xf32>
    %91 = vector.shape_cast %90 : vector<32xf32> to vector<32x1xf32>
    %92 = vector.broadcast %91 : vector<32x1xf32> to vector<32x64xf32>
    %93 = arith.divf %89, %92 : vector<32x64xf32>
    %c0_49 = arith.constant 0 : index
    %c16 = arith.constant 16 : index
    %94 = vector.load %arg1[%c0_49, %c16] : memref<64x32xf32, #tpu.memory_space<vmem>>, vector<64x8xf32>
    %cst_50 = arith.constant dense<0.000000e+00> : vector<32x8xf32>
    %95 = tpu.matmul %93, %94, %cst_50 {dimension_numbers = #tpu.dot_dimension_numbers<[1], [0], [0], [1], [0, 0, 1, 1], [], []>, precision = #tpu.contract_precision<fp32>} : vector<32x64xf32>, vector<64x8xf32>, vector<32x8xf32> -> vector<32x8xf32>
    %c0_51 = arith.constant 0 : index
    %c0_52 = arith.constant 0 : index
    %c0_53 = arith.constant 0 : index
    %96 = vector.load %arg4[%c0_51, %c0_52, %c0_53] : memref<1x32x64xf32, #tpu.memory_space<vmem>>, vector<1x32x64xf32>
    %97 = vector.shape_cast %96 : vector<1x32x64xf32> to vector<32x64xf32>
    %c0_54 = arith.constant 0 : index
    %c3 = arith.constant 3 : index
    %98 = vector.load %arg5[%c0_54, %c3] : memref<1x4xf32, #tpu.memory_space<vmem>>, vector<1x1xf32>
    %99 = vector.broadcast %98 : vector<1x1xf32> to vector<32x64xf32>
    %100 = arith.mulf %97, %99 : vector<32x64xf32>
    %c0_55 = arith.constant 0 : index
    %c3_56 = arith.constant 3 : index
    %101 = vector.load %arg3[%c0_55, %c3_56] : memref<32x4xf32, #tpu.memory_space<vmem>>, vector<32x1xf32>
    %c3_57 = arith.constant 3 : index
    %c0_58 = arith.constant 0 : index
    %102 = vector.load %arg2[%c3_57, %c0_58] : memref<4x64xf32, #tpu.memory_space<vmem>>, vector<1x64xf32>
    %103 = vector.broadcast %101 : vector<32x1xf32> to vector<32x64xf32>
    %104 = vector.broadcast %102 : vector<1x64xf32> to vector<32x64xf32>
    %105 = arith.addf %103, %104 : vector<32x64xf32>
    %106 = arith.addf %105, %100 : vector<32x64xf32>
    %cst_59 = arith.constant 0.000000e+00 : f32
    %107 = vector.broadcast %cst_59 : f32 to vector<32x64xf32>
    %108 = arith.cmpf ogt, %106, %107 : vector<32x64xf32>
    %cst_60 = arith.constant 2.000000e-01 : f32
    %109 = vector.broadcast %cst_60 : f32 to vector<32x64xf32>
    %110 = arith.mulf %109, %106 : vector<32x64xf32>
    %111 = arith.select %108, %106, %110 : vector<32x64xi1>, vector<32x64xf32>
    %cst_61 = arith.constant -1.000000e+09 : f32
    %112 = vector.broadcast %cst_61 : f32 to vector<32x64xf32>
    %113 = arith.select %2, %111, %112 : vector<32x64xi1>, vector<32x64xf32>
    %cst_62 = arith.constant dense<0xFF800000> : vector<32xf32>
    %114 = vector.multi_reduction <maximumf>, %113, %cst_62 [1] : vector<32x64xf32> to vector<32xf32>
    %115 = vector.shape_cast %114 : vector<32xf32> to vector<32x1xf32>
    %116 = vector.broadcast %115 : vector<32x1xf32> to vector<32x64xf32>
    %117 = arith.subf %113, %116 : vector<32x64xf32>
    %118 = math.exp %117 : vector<32x64xf32>
    %cst_63 = arith.constant 0.000000e+00 : f32
    %119 = vector.broadcast %cst_63 : f32 to vector<32x64xf32>
    %120 = arith.select %2, %118, %119 : vector<32x64xi1>, vector<32x64xf32>
    %cst_64 = arith.constant dense<0.000000e+00> : vector<32xf32>
    %121 = vector.multi_reduction <add>, %120, %cst_64 [1] : vector<32x64xf32> to vector<32xf32>
    %122 = vector.shape_cast %121 : vector<32xf32> to vector<32x1xf32>
    %123 = vector.broadcast %122 : vector<32x1xf32> to vector<32x64xf32>
    %124 = arith.divf %120, %123 : vector<32x64xf32>
    %c0_65 = arith.constant 0 : index
    %c24 = arith.constant 24 : index
    %125 = vector.load %arg1[%c0_65, %c24] : memref<64x32xf32, #tpu.memory_space<vmem>>, vector<64x8xf32>
    %cst_66 = arith.constant dense<0.000000e+00> : vector<32x8xf32>
    %126 = tpu.matmul %124, %125, %cst_66 {dimension_numbers = #tpu.dot_dimension_numbers<[1], [0], [0], [1], [0, 0, 1, 1], [], []>, precision = #tpu.contract_precision<fp32>} : vector<32x64xf32>, vector<64x8xf32>, vector<32x8xf32> -> vector<32x8xf32>
    %127 = tpu.concatenate %33, %64, %95, %126 in 1 : vector<32x8xf32>, vector<32x8xf32>, vector<32x8xf32>, vector<32x8xf32> -> vector<32x32xf32>
    %c0_67 = arith.constant 0 : index
    %c0_68 = arith.constant 0 : index
    %128 = vector.load %arg7[%c0_67, %c0_68] : memref<1x32xf32, #tpu.memory_space<vmem>>, vector<1x32xf32>
    %129 = vector.broadcast %128 : vector<1x32xf32> to vector<32x32xf32>
    %130 = arith.addf %127, %129 : vector<32x32xf32>
    %c0_69 = arith.constant 0 : index
    %c0_70 = arith.constant 0 : index
    %131 = vector.load %arg8[%c0_69, %c0_70] : memref<32x16xf32, #tpu.memory_space<vmem>>, vector<32x16xf32>
    %cst_71 = arith.constant dense<0.000000e+00> : vector<32x16xf32>
    %132 = tpu.matmul %130, %131, %cst_71 {dimension_numbers = #tpu.dot_dimension_numbers<[1], [0], [0], [1], [0, 0, 1, 1], [], []>, precision = #tpu.contract_precision<fp32>} : vector<32x32xf32>, vector<32x16xf32>, vector<32x16xf32> -> vector<32x16xf32>
    %c0_72 = arith.constant 0 : index
    %c0_73 = arith.constant 0 : index
    %133 = vector.load %arg9[%c0_72, %c0_73] : memref<1x16xf32, #tpu.memory_space<vmem>>, vector<1x16xf32>
    %134 = vector.broadcast %133 : vector<1x16xf32> to vector<32x16xf32>
    %135 = arith.addf %132, %134 : vector<32x16xf32>
    %cst_74 = arith.constant 5.000000e-01 : f32
    %136 = vector.broadcast %cst_74 : f32 to vector<32x16xf32>
    %137 = arith.mulf %136, %135 : vector<32x16xf32>
    %cst_75 = arith.constant 0.707106769 : f32
    %138 = vector.broadcast %cst_75 : f32 to vector<32x16xf32>
    %139 = arith.mulf %135, %138 : vector<32x16xf32>
    %140 = math.erf %139 : vector<32x16xf32>
    %cst_76 = arith.constant 1.000000e+00 : f32
    %141 = vector.broadcast %cst_76 : f32 to vector<32x16xf32>
    %142 = arith.addf %141, %140 : vector<32x16xf32>
    %143 = arith.mulf %137, %142 : vector<32x16xf32>
    %c0_77 = arith.constant 0 : index
    %c0_78 = arith.constant 0 : index
    %144 = vector.load %arg10[%c0_77, %c0_78] : memref<1x16xf32, #tpu.memory_space<vmem>>, vector<1x16xf32>
    %145 = vector.broadcast %144 : vector<1x16xf32> to vector<32x16xf32>
    %146 = arith.mulf %143, %145 : vector<32x16xf32>
    %cst_79 = arith.constant dense<0.000000e+00> : vector<32xf32>
    %147 = vector.multi_reduction <add>, %146, %cst_79 [1] : vector<32x16xf32> to vector<32xf32>
    %148 = vector.shape_cast %147 : vector<32xf32> to vector<32x1xf32>
    %c0_80 = arith.constant 0 : index
    %c0_81 = arith.constant 0 : index
    %149 = vector.load %arg11[%c0_80, %c0_81] : memref<1x1xf32, #tpu.memory_space<vmem>>, vector<1x1xf32>
    %150 = vector.broadcast %149 : vector<1x1xf32> to vector<32x1xf32>
    %151 = arith.addf %148, %150 : vector<32x1xf32>
    %cst_82 = arith.constant 0.000000e+00 : f32
    %152 = vector.broadcast %cst_82 : f32 to vector<32x1xf32>
    %153 = arith.subf %152, %151 : vector<32x1xf32>
    %154 = math.exp %153 : vector<32x1xf32>
    %cst_83 = arith.constant 1.000000e+00 : f32
    %155 = vector.broadcast %cst_83 : f32 to vector<32x1xf32>
    %156 = arith.addf %155, %154 : vector<32x1xf32>
    %cst_84 = arith.constant 1.000000e+00 : f32
    %157 = vector.broadcast %cst_84 : f32 to vector<32x1xf32>
    %158 = arith.divf %157, %156 : vector<32x1xf32>
    %159 = vector.shape_cast %158 : vector<32x1xf32> to vector<32x1xf32>
    %160 = vector.broadcast %159 : vector<32x1xf32> to vector<32x128xf32>
    %c0_85 = arith.constant 0 : index
    %c0_86 = arith.constant 0 : index
    %161 = vector.load %arg15[%c0_85, %c0_86] : memref<32x128xf32, #tpu.memory_space<vmem>>, vector<32x128xf32>
    tpu.vector_store %arg15[%c0_85, %c0_86], %160 {strides = array<i32>} : memref<32x128xf32, #tpu.memory_space<vmem>>, vector<32x128xf32>,
    %162 = vector.broadcast %158 : vector<32x1xf32> to vector<32x32xf32>
    %163 = arith.mulf %130, %162 : vector<32x32xf32>
    %cst_87 = arith.constant dense<0.000000e+00> : vector<32xf32>
    %164 = vector.multi_reduction <add>, %163, %cst_87 [1] : vector<32x32xf32> to vector<32xf32>
    %165 = vector.shape_cast %164 : vector<32xf32> to vector<32x1xf32>
    %cst_88 = arith.constant 3.200000e+01 : f32
    %166 = vector.broadcast %cst_88 : f32 to vector<32x1xf32>
    %167 = arith.divf %165, %166 : vector<32x1xf32>
    %168 = vector.broadcast %167 : vector<32x1xf32> to vector<32x32xf32>
    %169 = arith.subf %163, %168 : vector<32x32xf32>
    %170 = arith.mulf %169, %169 : vector<32x32xf32>
    %cst_89 = arith.constant dense<0.000000e+00> : vector<32xf32>
    %171 = vector.multi_reduction <add>, %170, %cst_89 [1] : vector<32x32xf32> to vector<32xf32>
    %172 = vector.shape_cast %171 : vector<32xf32> to vector<32x1xf32>
    %cst_90 = arith.constant 3.200000e+01 : f32
    %173 = vector.broadcast %cst_90 : f32 to vector<32x1xf32>
    %174 = arith.divf %172, %173 : vector<32x1xf32>
    %175 = vector.broadcast %167 : vector<32x1xf32> to vector<32x32xf32>
    %176 = arith.subf %163, %175 : vector<32x32xf32>
    %cst_91 = arith.constant 9.99999974E-6 : f32
    %177 = vector.broadcast %cst_91 : f32 to vector<32x1xf32>
    %178 = arith.addf %174, %177 : vector<32x1xf32>
    %179 = math.rsqrt %178 : vector<32x1xf32>
    %180 = vector.broadcast %179 : vector<32x1xf32> to vector<32x32xf32>
    %181 = arith.mulf %176, %180 : vector<32x32xf32>
    %c0_92 = arith.constant 0 : index
    %c0_93 = arith.constant 0 : index
    %182 = vector.load %arg12[%c0_92, %c0_93] : memref<1x32xf32, #tpu.memory_space<vmem>>, vector<1x32xf32>
    %183 = vector.broadcast %182 : vector<1x32xf32> to vector<32x32xf32>
    %184 = arith.mulf %181, %183 : vector<32x32xf32>
    %c0_94 = arith.constant 0 : index
    %c0_95 = arith.constant 0 : index
    %185 = vector.load %arg13[%c0_94, %c0_95] : memref<1x32xf32, #tpu.memory_space<vmem>>, vector<1x32xf32>
    %186 = vector.broadcast %185 : vector<1x32xf32> to vector<32x32xf32>
    %187 = arith.addf %184, %186 : vector<32x32xf32>
    %c0_96 = arith.constant 0 : index
    %c0_97 = arith.constant 0 : index
    %188 = vector.load %arg14[%c0_96, %c0_97] : memref<32x32xf32, #tpu.memory_space<vmem>>, vector<32x32xf32>
    tpu.vector_store %arg14[%c0_96, %c0_97], %187 {strides = array<i32>} : memref<32x32xf32, #tpu.memory_space<vmem>>, vector<32x32xf32>,
    return
  }
  func.func @transform_0(%arg0: i32) -> (i32, i32) {
    %c0_i32 = arith.constant 0 : i32
    %c0_i32_0 = arith.constant 0 : i32
    %c0_i32_1 = arith.constant 0 : i32
    return %c0_i32, %c0_i32_0 : i32, i32
  }
  func.func @transform_1(%arg0: i32) -> (i32, i32) {
    %c0_i32 = arith.constant 0 : i32
    %c0_i32_0 = arith.constant 0 : i32
    %c0_i32_1 = arith.constant 0 : i32
    return %c0_i32, %c0_i32_0 : i32, i32
  }
  func.func @transform_2(%arg0: i32) -> (i32, i32) {
    %c0_i32 = arith.constant 0 : i32
    %c0_i32_0 = arith.constant 0 : i32
    return %arg0, %c0_i32 : i32, i32
  }
  func.func @transform_3(%arg0: i32) -> (i32, i32, i32) {
    %c0_i32 = arith.constant 0 : i32
    %c0_i32_0 = arith.constant 0 : i32
    %c0_i32_1 = arith.constant 0 : i32
    return %c0_i32, %arg0, %c0_i32_0 : i32, i32, i32
  }
  func.func @transform_4(%arg0: i32) -> (i32, i32) {
    %c0_i32 = arith.constant 0 : i32
    %c0_i32_0 = arith.constant 0 : i32
    %c0_i32_1 = arith.constant 0 : i32
    return %c0_i32, %c0_i32_0 : i32, i32
  }
  func.func @transform_5(%arg0: i32) -> (i32, i32) {
    %c0_i32 = arith.constant 0 : i32
    %c0_i32_0 = arith.constant 0 : i32
    return %arg0, %c0_i32 : i32, i32
  }
  func.func @transform_6(%arg0: i32) -> (i32, i32) {
    %c0_i32 = arith.constant 0 : i32
    %c0_i32_0 = arith.constant 0 : i32
    %c0_i32_1 = arith.constant 0 : i32
    return %c0_i32, %c0_i32_0 : i32, i32
  }
  func.func @transform_7(%arg0: i32) -> (i32, i32) {
    %c0_i32 = arith.constant 0 : i32
    %c0_i32_0 = arith.constant 0 : i32
    %c0_i32_1 = arith.constant 0 : i32
    return %c0_i32, %c0_i32_0 : i32, i32
  }
  func.func @transform_8(%arg0: i32) -> (i32, i32) {
    %c0_i32 = arith.constant 0 : i32
    %c0_i32_0 = arith.constant 0 : i32
    %c0_i32_1 = arith.constant 0 : i32
    return %c0_i32, %c0_i32_0 : i32, i32
  }
  func.func @transform_9(%arg0: i32) -> (i32, i32) {
    %c0_i32 = arith.constant 0 : i32
    %c0_i32_0 = arith.constant 0 : i32
    %c0_i32_1 = arith.constant 0 : i32
    return %c0_i32, %c0_i32_0 : i32, i32
  }
  func.func @transform_10(%arg0: i32) -> (i32, i32) {
    %c0_i32 = arith.constant 0 : i32
    %c0_i32_0 = arith.constant 0 : i32
    %c0_i32_1 = arith.constant 0 : i32
    return %c0_i32, %c0_i32_0 : i32, i32
  }
  func.func @transform_11(%arg0: i32) -> (i32, i32) {
    %c0_i32 = arith.constant 0 : i32
    %c0_i32_0 = arith.constant 0 : i32
    %c0_i32_1 = arith.constant 0 : i32
    return %c0_i32, %c0_i32_0 : i32, i32
  }
  func.func @transform_12(%arg0: i32) -> (i32, i32) {
    %c0_i32 = arith.constant 0 : i32
    %c0_i32_0 = arith.constant 0 : i32
    %c0_i32_1 = arith.constant 0 : i32
    return %c0_i32, %c0_i32_0 : i32, i32
  }
  func.func @transform_13(%arg0: i32) -> (i32, i32) {
    %c0_i32 = arith.constant 0 : i32
    %c0_i32_0 = arith.constant 0 : i32
    return %arg0, %c0_i32 : i32, i32
  }
  func.func @transform_14(%arg0: i32) -> (i32, i32) {
    %c0_i32 = arith.constant 0 : i32
    %c0_i32_0 = arith.constant 0 : i32
    return %arg0, %c0_i32 : i32, i32
  }
}

</mosaic_0001>

<bundles_post_ra>
// kernel: tpu_custom_call.1
= control target key start
LH: loop header
LB: loop body
LE: loop exit
PB: predicated region body
PF: predicated region fallthrough
CT: control target
= control target key end

     0   :  { %s7725_s0 = inlined_call_operand.vmem [shape: f32[64,32], index: 0, kind: input, shape index: {}]   ;;  %s7726_s1 = inlined_call_operand.vmem [shape: f32[4,64], index: 1, kind: input, shape index: {}]   ;;  %s7727_s2 = inlined_call_operand.vmem [shape: f32[64,4], index: 2, kind: input, shape index: {}]   ;;  %s7728_s3 = inlined_call_operand.vmem [shape: f32[1,64,64], index: 3, kind: input, shape index: {}]   ;;  %s7729_s4 = inlined_call_operand.vmem [shape: f32[1,4], index: 4, kind: input, shape index: {}]   ;;  %s7730_s5 = inlined_call_operand.vmem [shape: f32[64,64], index: 5, kind: input, shape index: {}]   ;;  %s7731_s6 = inlined_call_operand.vmem [shape: f32[1,32], index: 6, kind: input, shape index: {}]   ;;  %s7732_s7 = inlined_call_operand.vmem [shape: f32[32,16], index: 7, kind: input, shape index: {}]   ;;  %s7733_s8 = inlined_call_operand.vmem [shape: f32[1,16], index: 8, kind: input, shape index: {}]   ;;  %s7734_s9 = inlined_call_operand.vmem [shape: f32[1,16], index: 9, kind: input, shape index: {}]   ;;  %s7735_s10 = inlined_call_operand.<no memory space> [shape: f32[1,1], index: 10, kind: input, shape index: {}]   ;;  %s7736_s11 = inlined_call_operand.vmem [shape: f32[1,32], index: 11, kind: input, shape index: {}]   ;;  %s7737_s12 = inlined_call_operand.vmem [shape: f32[1,32], index: 12, kind: input, shape index: {}]   ;;  %s7738_s13 = inlined_call_operand.vmem [shape: f32[64,32], index: 13, kind: output, shape index: {0}]   ;;  %s7739_s14 = inlined_call_operand.hbm [shape: f32[64,128], index: 14, kind: output, shape index: {1}]  }
   0x1   :  { %7741 = sst [smem:[#allocation6_spill]] %s7725_s0  ;;  %v20_v0 = vstv %s7735_s10 }
   0x2   :  { %7742 = sst [smem:[#allocation7_spill]] %s7726_s1  ;;  %21 = vst [vmem:[#allocation2] sm:$0x1] %v20_v0 }
   0x3   :  { %7743 = sst [smem:[#allocation8_spill]] %s7727_s2 }
   0x4   :  { %7744 = sst [smem:[#allocation9_spill]] %s7728_s3 }
   0x5   :  { %22 = vsyncpa [#allocation4], 0 }
   0x6   :  { %24 = vsyncpa [#allocation4 + $0x1], 0  ;;  %s6078_s15 = smov 0   ;;  %s6080_s16 = smov 0  }
   0x7   :  { %s6082_s17 = smov 0   ;;  %s6084_s18 = smov 0  }
   0x8 LB: > { %s6099_s10 = sadd.s32 4294967295, %s5986_s18   ;;  %s4791_s19 = sadd.s32 4294967294, %s5986_s18   ;;  %s5986_s18 = sphi %s6084_s18, %s7755_s18   ;;  %s5982_s17 = sphi %s6082_s17, %s7754_s17   ;;  %s5978_s16 = sphi %s6080_s16, %s7753_s16   ;;  %s5974_s15 = sphi %s6078_s15, %s7752_s15  }
   0x9   : > { %s6103_s20 = sadd.s32 1, %s5986_s18   ;;  %s351_s21 = sadd.s32 1, %s5982_s17 }
   0xa   : > { %s348_s22 = ssub.s32 %s5986_s18, %s6103_s20  ;;  %p361_p0 = scmp.ne.s32.totalorder %s5982_s17, %s5978_s16 }
   0xb   : > { %p349_p1 = scmp.eq.s32.totalorder %s348_s22, 0  ;;  %p362_p2 = scmp.eq.s32.totalorder %s6099_s10, 1 }
   0xc   : > { %p367_p3 = scmp.ne.s32.totalorder %s5978_s16, %s5974_s15  ;;  %p368_p4 = scmp.eq.s32.totalorder %s4791_s19, 1 }
   0xd   : > { %s6114_s23 = scalar_select %p349_p1, %s5982_s17, %s351_s21  }
   0xe   : > { %p6116_p5 = por %p362_p2, %p361_p0  ;;  %p6120_p6 = por %p368_p4, %p367_p3 }
   0xf   : > { %p4794_p7 = scmp.ge.s32.totalorder %s5986_s18, 1  ;;  %p443_p8 = scmp.lt.s32.totalorder %s5986_s18, 3 }
  0x11   : > { %p444_p9 = pnand %p4794_p7, %p443_p8 }
  0x12   : > { %s4796_s28 = sshll.u32 (!%p444_p9), %s6099_s10, 2  ;;  %s7747_s2 = sld [smem:[#allocation8_spill]] (!%p444_p9) }
  0x13   : > { %447 = sbr.rel (%p444_p9) target bundleno = 2007 (0x7d7), region = 72  ;;  %p505_p10 = scmp.lt.s32.totalorder (!%p444_p9), %s4796_s28, 7 }
  0x14   : > { %s7748_s3 = sld [smem:[#allocation9_spill]] (!%p444_p9)  ;;  %s7740_s22 = smov (!%p444_p9), 8  }
  0x15   : > { %s7749_s1 = sld [smem:[#allocation7_spill]] (!%p444_p9)  ;;  %s5996_s26 = smov (!%p444_p9), 16  }
  0x16   : > { %s7750_s0 = sld [smem:[#allocation6_spill]] (!%p444_p9) }
  0x18   : > { %v6129_v1 = vld [vmem:[%s7729_s4] ss:$0 sm:$0xff]  ;;  %v5988_v2 = vmov 1   ;;  %v5989_v3 = vmov 0   ;;  %s7757_s28 = smov (!%p505_p10, %s4796_s28), 7  ;;  %v5990_v8 = vmov 2  }
  0x19   : > { %5820 = vset.pattern.permute.xlu1 %v5988_v2  ;;  %5819 = vset.pattern.permute.xlu0 %v5989_v3  ;;  %s6135_s29 = sshll.u32 %s7757_s28, 3  ;;  %v5991_v9 = vmov 3   ;;  %vm608_vm2 = vcmask 523264   ;;  %s5992_s28 = smov 120  }
  0x1a   : > { %1344 = vperm.xlu1 %5820, %v6129_v1   ;;  %548 = vperm.xlu0 %5819, %v6129_v1   ;;  %s508_s21 = scalar_lea.vmem %s7747_s2, %s6135_s29  ;;  %s514_s27 = scalar_lea.vmem %s7748_s3, %s6135_s29 }
  0x1b   : > { %v6142_v4 = vld [vmem:[%s508_s21 + $0x8] sm:$0xff]  ;;  %v6144_v5 = vld [vmem:[%s508_s21] sm:$0xff]  ;;  %v6148_v6 = vld [vmem:[%s508_s21 + $0x10] sm:$0xff]  ;;  %s6173_s19 = scalar_lea.vmem %s7730_s5, %s6135_s29  ;;  %s5994_s2 = smov 104  }
  0x1c   : > { %v6150_v7 = vld [vmem:[%s508_s21 + $0x18] sm:$0xff]  ;;  %v6175_v12 = vld [vmem:[%s514_s27 + $0x8] sm:$0xff]  ;;  %v4805_v13 = vld [vmem:[%s7749_s1] ss:$0 sm:$0xff]  ;;  %s5993_s21 = smov 112  }
  0x1d   : > { %v6180_v14 = vld [vmem:[%s514_s27] sm:$0xff]  ;;  %v6184_v21 = vld [vmem:[%s514_s27 + $0x10] sm:$0xff]  ;;  %v6186_v22 = vld [vmem:[%s514_s27 + $0x18] sm:$0xff] }
  0x1e   : > { %5821 = vset.pattern.permute.xlu1 %v5989_v3  ;;  %562 = vperm.xlu0 %5819, %v6144_v5   ;;  %v6189_v23 = vld [vmem:[%s6173_s19 + $0x8] sm:$0xff]  ;;  %v6192_v26 = vld [vmem:[%s6173_s19] sm:$0xff]  ;;  %v6198_v31 = vld [vmem:[%s6173_s19 + $0x10] sm:$0xff] }
  0x1f   : > { %567 = vperm.xlu1 %5821, %v6142_v4   ;;  %vm534_vm0 = vcmp.gt.f32.partialorder %v6189_v23, 0.0  ;;  %vm533_vm3 = vcmp.gt.f32.partialorder %v6192_v26, 0.0  ;;  %v4806_v38 = vld [vmem:[%s7749_s1 + $0x1] ss:$0 sm:$0xff]  ;;  %vm535_vm5 = vcmp.gt.f32.partialorder %v6198_v31, 0.0  ;;  %v6214_v44 = vld [vmem:[%s6173_s19 + $0x18] sm:$0xff] }
  0x20   : > { %vm536_vm8 = vcmp.gt.f32.partialorder %v6214_v44, 0.0 }
  0x22   : > { %577 = vperm.xlu0 %5819, %v6150_v7  }
  0x23   : > { %572 = vperm.xlu1 %5821, %v6148_v6  }
  0x26   : > { %5822 = vset.pattern.permute.xlu0 %v5988_v2 }
  0x27   : > { %5823 = vset.pattern.permute.xlu1 %v5988_v2  ;;  %1353 = vperm.xlu0 %5822, %v6144_v5  }
  0x28   : > { %1357 = vperm.xlu1 %5823, %v6142_v4  }
  0x2b   : > { %1365 = vperm.xlu0 %5822, %v6150_v7  }
  0x2c   : > { %1361 = vperm.xlu1 %5823, %v6148_v6  }
  0x2f   : > { %5824 = vset.pattern.permute.xlu0 %v5990_v8 }
  0x30   : > { %5825 = vset.pattern.permute.xlu1 %v5990_v8  ;;  %2155 = vperm.xlu0 %5824, %v6129_v1  }
  0x31   : > { %2164 = vperm.xlu1 %5825, %v6144_v5  }
  0x34   : > { %5827 = vset.pattern.permute.xlu0 %v5991_v9 }
  0x35   : > { %2168 = vperm.xlu1 %5825, %v6142_v4  }
  0x39   : > { %2172 = vperm.xlu1 %5825, %v6148_v6  }
  0x3d   : > { %2176 = vperm.xlu1 %5825, %v6150_v7  }
  0x41   : > { %5826 = vset.pattern.permute.xlu1 %v5991_v9 }
  0x95   : > { %v6163_v10 = vpop.permute.xlu1 %1344  ;;  %v549_v11 = vpop.permute.xlu0 %548 }
  0x96   : > { %v552_v17 = vmul.f32 %v549_v11, %v6175_v12  ;;  %v551_v19 = vmul.f32 %v549_v11, %v6180_v14  ;;  %v553_v27 = vmul.f32 %v549_v11, %v6184_v21  ;;  %v554_v29 = vmul.f32 %v549_v11, %v6186_v22 }
  0x97   : > { %v1348_v40 = vmul.f32 %v6163_v10, %v6175_v12  ;;  %v1347_v41 = vmul.f32 %v6163_v10, %v6180_v14  ;;  %v1349_v58 = vmul.f32 %v6163_v10, %v6184_v21  ;;  %v1350_v60 = vmul.f32 %v6163_v10, %v6186_v22 }
  0x99   : > { %v563_v16 = vpop.permute.xlu0 %562 }
  0x9a   : > { %v568_v15 = vpop.permute.xlu1 %567  ;;  %v584_v20 = vadd.f32 %v4805_v13, %v563_v16 }
  0x9b   : > { %v585_v18 = vadd.f32 %v4805_v13, %v568_v15 }
  0x9c   : > { %v588_v25 = vadd.f32 %v584_v20, %v551_v19 }
  0x9d   : > { %v589_v24 = vadd.f32 %v585_v18, %v552_v17  ;;  %v578_v30 = vpop.permute.xlu0 %577 }
  0x9e   : > { %v573_v28 = vpop.permute.xlu1 %572  ;;  %v587_v33 = vadd.f32 %v4805_v13, %v578_v30  ;;  %vm592_vm4 = vcmp.gt.f32.partialorder %v588_v25, 0.0  ;;  %v596_v35 = vmul.f32 0.2, %v588_v25 }
  0x9f   : > { %v586_v32 = vadd.f32 %v4805_v13, %v573_v28  ;;  %vm593_vm1 = vcmp.gt.f32.partialorder %v589_v24, 0.0  ;;  %v597_v34 = vmul.f32 0.2, %v589_v24 }
  0xa0   : > { %v591_v37 = vadd.f32 %v587_v33, %v554_v29  ;;  %v600_v43 = vsel %vm592_vm4, %v588_v25, %v596_v35 }
  0xa1   : > { %v590_v36 = vadd.f32 %v586_v32, %v553_v27  ;;  %v601_v39 = vsel %vm593_vm1, %v589_v24, %v597_v34  ;;  %v6220_v48 = vsel %vm533_vm3, %v600_v43, -1e+09 }
  0xa2   : > { %v6211_v42 = vsel %vm534_vm0, %v601_v39, -1e+09  ;;  %v1354_v46 = vpop.permute.xlu0 %1353  ;;  %v609_v52 = vsel %vm608_vm2, %v6220_v48, -inf  ;;  %vm595_vm7 = vcmp.gt.f32.partialorder %v591_v37, 0.0  ;;  %v599_v54 = vmul.f32 0.2, %v591_v37 }
  0xa3   : > { %v1358_v45 = vpop.permute.xlu1 %1357  ;;  %v612_v47 = vsel %vm608_vm2, %v6211_v42, -inf  ;;  %vm594_vm6 = vcmp.gt.f32.partialorder %v590_v36, 0.0  ;;  %v598_v49 = vmul.f32 0.2, %v590_v36  ;;  %v1372_v51 = vadd.f32 %v4806_v38, %v1354_v46  ;;  %610 = vmax.xlane.f32.xlu1 %v609_v52  ;;  %v6306_v52 = vld [vmem:[%s7750_s0 + $0x28] sm:$0xff] }
  0xa4   : > { %v1373_v50 = vadd.f32 %v4806_v38, %v1358_v45  ;;  %613 = vmax.xlane.f32.xlu0 %v612_v47  ;;  %v603_v63 = vsel %vm595_vm7, %v591_v37, %v599_v54 }
  0xa5   : > { %v602_v53 = vsel %vm594_vm6, %v590_v36, %v598_v49  ;;  %v1376_v56 = vadd.f32 %v1372_v51, %v1347_v41  ;;  %v6237_v8 = vsel %vm536_vm8, %v603_v63, -1e+09 }
  0xa6   : > { %v1377_v55 = vadd.f32 %v1373_v50, %v1348_v40  ;;  %v6227_v57 = vsel %vm535_vm5, %v602_v53, -1e+09  ;;  %v1366_v61 = vpop.permute.xlu0 %1365  ;;  %v618_v9 = vsel %vm608_vm2, %v6237_v8, -inf }
  0xa7   : > { %v1362_v59 = vpop.permute.xlu1 %1361  ;;  %v615_v62 = vsel %vm608_vm2, %v6227_v57, -inf  ;;  %v1375_v2 = vadd.f32 %v4806_v38, %v1366_v61  ;;  %vm1380_vm10 = vcmp.gt.f32.partialorder %v1376_v56, 0.0  ;;  %v1384_v13 = vmul.f32 0.2, %v1376_v56  ;;  %619 = vmax.xlane.f32.xlu1 %v618_v9 }
  0xa8   : > { %v1374_v0 = vadd.f32 %v4806_v38, %v1362_v59  ;;  %616 = vmax.xlane.f32.xlu0 %v615_v62  ;;  %vm1381_vm9 = vcmp.gt.f32.partialorder %v1377_v55, 0.0  ;;  %v1385_v11 = vmul.f32 0.2, %v1377_v55  ;;  %v4807_v38 = vld [vmem:[%s7749_s1 + $0x2] ss:$0 sm:$0xff] }
  0xa9   : > { %v1379_v15 = vadd.f32 %v1375_v2, %v1350_v60  ;;  %v1388_v17 = vsel %vm1380_vm10, %v1376_v56, %v1384_v13 }
  0xaa   : > { %v1378_v10 = vadd.f32 %v1374_v0, %v1349_v58  ;;  %v1389_v16 = vsel %vm1381_vm9, %v1377_v55, %v1385_v11  ;;  %v6247_v19 = vsel %vm533_vm3, %v1388_v17, -1e+09  ;;  %v6310_v55 = vand.u32 4294901760, %v6306_v52 }
  0xab   : > { %v6243_v18 = vsel %vm534_vm0, %v1389_v16, -1e+09  ;;  %vm1383_vm12 = vcmp.gt.f32.partialorder %v1379_v15, 0.0  ;;  %v1396_v24 = vsel %vm608_vm2, %v6247_v19, -inf  ;;  %v1387_v27 = vmul.f32 0.2, %v1379_v15  ;;  %v2156_v40 = vpop.permute.xlu0 %2155 }
  0xac   : > { %vm1382_vm11 = vcmp.gt.f32.partialorder %v1378_v10, 0.0  ;;  %v1399_v20 = vsel %vm608_vm2, %v6243_v18, -inf  ;;  %v1386_v25 = vmul.f32 0.2, %v1378_v10  ;;  %1397 = vmax.xlane.f32.xlu1 %v1396_v24  ;;  %v2165_v35 = vpop.permute.xlu1 %2164  ;;  %v2161_v43 = vmul.f32 %v2156_v40, %v6186_v22 }
  0xad   : > { %1400 = vmax.xlane.f32.xlu0 %v1399_v20  ;;  %v1391_v29 = vsel %vm1383_vm12, %v1379_v15, %v1387_v27  ;;  %v2183_v50 = vadd.f32 %v4807_v38, %v2165_v35  ;;  %v2159_v54 = vmul.f32 %v2156_v40, %v6175_v12  ;;  %v2160_v59 = vmul.f32 %v2156_v40, %v6184_v21  ;;  %v6336_v20 = vld [vmem:[%s7750_s0 + $0x20] sm:$0xff] }
  0xae   : > { %v1390_v28 = vsel %vm1382_vm11, %v1378_v10, %v1386_v25  ;;  %v6261_v33 = vsel %vm536_vm8, %v1391_v29, -1e+09  ;;  %v6339_v24 = vand.u32 4294901760, %v6336_v20  ;;  %v6346_v25 = vld [vmem:[%s7750_s0 + $0x18] sm:$0xff] }
  0xaf   : > { %v6255_v30 = vsel %vm535_vm5, %v1390_v28, -1e+09  ;;  %v1405_v34 = vsel %vm608_vm2, %v6261_v33, -inf  ;;  %v6349_v27 = vand.u32 4294901760, %v6346_v25 }
  0xb0   : > { %v1402_v32 = vsel %vm608_vm2, %v6255_v30, -inf  ;;  %v2169_v36 = vpop.permute.xlu1 %2168 }
  0xb1   : > { %1403 = vmax.xlane.f32.xlu1 %v1402_v32  ;;  %v2184_v53 = vadd.f32 %v4807_v38, %v2169_v36 }
  0xb3   : > { %v2188_v60 = vadd.f32 %v2184_v53, %v2159_v54 }
  0xb4   : > { %v2173_v37 = vpop.permute.xlu1 %2172 }
  0xb5   : > { %1406 = vmax.xlane.f32.xlu1 %v1405_v34  ;;  %v2185_v58 = vadd.f32 %v4807_v38, %v2173_v37  ;;  %v2196_v62 = vmul.f32 0.2, %v2188_v60  ;;  %vm2192_vm15 = vcmp.gt.f32.partialorder %v2188_v60, 0.0 }
  0xb7   : > { %v2189_v63 = vadd.f32 %v2185_v58, %v2160_v59  ;;  %v2200_v9 = vsel %vm2192_vm15, %v2188_v60, %v2196_v62  ;;  %v6383_v60 = vld [vmem:[%s7750_s0 + $0x10] sm:$0xff]  ;;  %v6393_v62 = vld [vmem:[%s7750_s0 + $0x8] sm:$0xff] }
  0xb8   : > { %v2177_v39 = vpop.permute.xlu1 %2176  ;;  %v6323_v13 = vsel %vm534_vm0, %v2200_v9, -1e+09 }
  0xb9   : > { %v2186_v41 = vadd.f32 %v4807_v38, %v2177_v39  ;;  %v2197_v11 = vmul.f32 0.2, %v2189_v63  ;;  %vm2193_vm1 = vcmp.gt.f32.partialorder %v2189_v63, 0.0  ;;  %v2210_v15 = vsel %vm608_vm2, %v6323_v13, -inf  ;;  %v4808_v39 = vld [vmem:[%s7749_s1 + $0x3] ss:$0 sm:$0xff] }
  0xbb   : > { %v2190_v45 = vadd.f32 %v2186_v41, %v2161_v43  ;;  %v2201_v10 = vsel %vm2193_vm1, %v2189_v63, %v2197_v11  ;;  %v6396_v63 = vand.u32 4294901760, %v6393_v62 }
  0xbc   : > { %v6329_v16 = vsel %vm535_vm5, %v2201_v10, -1e+09 }
  0xbd   : > { %vm2194_vm13 = vcmp.gt.f32.partialorder %v2190_v45, 0.0  ;;  %v2213_v17 = vsel %vm608_vm2, %v6329_v16, -inf }
  0xc3   : > { %2967 = vperm.xlu0 %5827, %v6144_v5   ;;  %v2198_v5 = vmul.f32 0.2, %v2190_v45 }
  0xc6   : > { %2958 = vperm.xlu1 %5826, %v6129_v1   ;;  %v6277_v1 = vld [vmem:[%s7750_s0 + $0x38] sm:$0xff] }
  0xc7   : > { %5828 = vset.pattern.permute.xlu0 %v5989_v3 }
  0xca   : > { %2971 = vperm.xlu1 %5826, %v6142_v4   ;;  %v6281_v4 = vand.u32 4294901760, %v6277_v1 }
  0xcc   : > { %5157 = vmatprep.subr.mxu0 %v6281_v4 }
  0xcd   : > { %5158 = vmatpush3.msra.mxu0 %v6281_v4 }
  0xce   : > { %2975 = vperm.xlu1 %5826, %v6148_v6   ;;  %v2202_v6 = vsel %vm2194_vm13, %v2190_v45, %v2198_v5 }
  0xcf   : > { %v6288_v46 = vsel %vm536_vm8, %v2202_v6, -1e+09 }
  0xd0   : > { %v2216_v49 = vsel %vm608_vm2, %v6288_v46, -inf }
  0xd2   : > { %2979 = vperm.xlu1 %5826, %v6150_v7   ;;  %v6293_v7 = vld [vmem:[%s7750_s0 + $0x30] sm:$0xff] }
  0xd3   : > { %v6296_v47 = vand.u32 4294901760, %v6293_v7 }
  0xd5   : > { %5159 = vmatprep.subr.mxu0 %v6296_v47 }
  0xd6   : > { %5829 = vset.pattern.permute.xlu1 %v5989_v3  ;;  %v2158_v3 = vmul.f32 %v2156_v40, %v6180_v14  ;;  %5160 = vmatpush3.msra.mxu0 %v6296_v47 }
  0xd7   : > { %5161 = vmatprep.subr.mxu0 %v6310_v55 }
  0xd8   : > { %v2187_v51 = vadd.f32 %v2183_v50, %v2158_v3  ;;  %5162 = vmatpush3.msra.mxu0 %v6310_v55 }
  0xd9   : > { %5163 = vmatprep.subr.mxu0 %v6339_v24 }
  0xda   : > { %v2195_v56 = vmul.f32 0.2, %v2187_v51  ;;  %vm2191_vm14 = vcmp.gt.f32.partialorder %v2187_v51, 0.0  ;;  %5164 = vmatpush3.msra.mxu0 %v6339_v24 }
  0xdb   : > { %5165 = vmatprep.subr.mxu0 %v6349_v27 }
  0xdc   : > { %v2199_v61 = vsel %vm2191_vm14, %v2187_v51, %v2195_v56  ;;  %5166 = vmatpush3.msra.mxu0 %v6349_v27 }
  0xdd   : > { %v6317_v0 = vsel %vm533_vm3, %v2199_v61, -1e+09  ;;  %v6386_v61 = vand.u32 4294901760, %v6383_v60 }
  0xde   : > { %v2207_v2 = vsel %vm608_vm2, %v6317_v0, -inf }
  0xdf   : > { %5167 = vmatprep.subr.mxu0 %v6386_v61 }
  0xe0   : > { %5168 = vmatpush3.msra.mxu0 %v6386_v61 }
  0xe1   : > { %5169 = vmatprep.subr.mxu0 %v6396_v63 }
  0xe2   : > { %2217 = vmax.xlane.f32.xlu0 %v2216_v49  ;;  %5170 = vmatpush3.msra.mxu0 %v6396_v63 }
  0xf6   : > { %2208 = vmax.xlane.f32.xlu1 %v2207_v2  ;;  %v6404_v2 = vld [vmem:[%s7750_s0] sm:$0xff] }
  0xf7   : > { %v6408_v9 = vand.u32 4294901760, %v6404_v2 }
  0xf9   : > { %5171 = vmatprep.subr.mxu0 %v6408_v9 }
  0xfa   : > { %2211 = vmax.xlane.f32.xlu1 %v2210_v15  ;;  %5172 = vmatpush3.msra.mxu0 %v6408_v9 }
  0xfe   : > { %2214 = vmax.xlane.f32.xlu1 %v2213_v17 }
 0x12c   : > { %v6353_v28 = vpop.xlane.xlu1 %610 }
 0x12d   : > { %v614_v29 = vpop.xlane.xlu0 %613 }
 0x12e   : > { %v622_v17 = vsub.f32 %v6211_v42, %v614_v29 }
 0x130   : > { %v620_v32 = vpop.xlane.xlu1 %619 }
 0x131   : > { %v6355_v34 = vpop.xlane.xlu0 %616 }
 0x135   : > { %v6357_v35 = vpop.xlane.xlu1 %1397 }
 0x136   : > { %v1401_v36 = vpop.xlane.xlu0 %1400 }
 0x13a   : > { %v6359_v37 = vpop.xlane.xlu1 %1403 }
 0x13e   : > { %v6361_v38 = vpop.xlane.xlu1 %1406  ;;  %v2968_v40 = vpop.permute.xlu0 %2967 }
 0x13f   : > { %v2986_v41 = vadd.f32 %v4808_v39, %v2968_v40  ;;  %v1411_v42 = vsub.f32 %v6261_v33, %v6361_v38 }
 0x142   : > { %v2959_v43 = vpop.permute.xlu1 %2958 }
 0x143   : > { %v2961_v45 = vmul.f32 %v2959_v43, %v6180_v14  ;;  %v2962_v49 = vmul.f32 %v2959_v43, %v6175_v12  ;;  %v2963_v15 = vmul.f32 %v2959_v43, %v6184_v21 }
 0x145   : > { %v2990_v5 = vadd.f32 %v2986_v41, %v2961_v45  ;;  %v627_v45 = vmul.f32 1.442695, %v622_v17 }
 0x146   : > { %v2972_v6 = vpop.permute.xlu1 %2971 }
 0x147   : > { %v2987_v50 = vadd.f32 %v4808_v39, %v2972_v6  ;;  %vm2994_vm4 = vcmp.gt.f32.partialorder %v2990_v5, 0.0  ;;  %v2998_v3 = vmul.f32 0.2, %v2990_v5  ;;  %5830 = vpow2.f32 %v627_v45 }
 0x148   : > { %v621_v45 = vsub.f32 %v6220_v48, %v6353_v28 }
 0x149   : > { %v2991_v51 = vadd.f32 %v2987_v50, %v2962_v49  ;;  %v3002_v53 = vsel %vm2994_vm4, %v2990_v5, %v2998_v3  ;;  %v624_v5 = vsub.f32 %v6237_v8, %v620_v32  ;;  %v2964_v50 = vmul.f32 %v2959_v43, %v6186_v22 }
 0x14a   : > { %v6370_v54 = vsel %vm533_vm3, %v3002_v53, -1e+09  ;;  %v2976_v11 = vpop.permute.xlu1 %2975  ;;  %v1418_v32 = vmul.f32 1.442695, %v1411_v42 }
 0x14b   : > { %v3010_v56 = vsel %vm608_vm2, %v6370_v54, -inf  ;;  %vm2995_vm6 = vcmp.gt.f32.partialorder %v2991_v51, 0.0  ;;  %v2999_v58 = vmul.f32 0.2, %v2991_v51  ;;  %v2988_v10 = vadd.f32 %v4808_v39, %v2976_v11 }
 0x14c   : > { %3011 = vmax.xlane.f32.xlu1 %v3010_v56  ;;  %v631_v3 = vmul.f32 1.442695, %v624_v5  ;;  %v625_v5 = vmul.f32 1.442695, %v621_v45 }
 0x14d   : > { %v3003_v14 = vsel %vm2995_vm6, %v2991_v51, %v2999_v58  ;;  %v2992_v40 = vadd.f32 %v2988_v10, %v2963_v15  ;;  %v1409_v51 = vsub.f32 %v6243_v18, %v1401_v36 }
 0x14e   : > { %v6376_v59 = vsel %vm534_vm0, %v3003_v14, -1e+09  ;;  %v2980_v41 = vpop.permute.xlu1 %2979  ;;  %5832 = vpow2.f32 %v631_v3 }
 0x14f   : > { %v3013_v12 = vsel %vm608_vm2, %v6376_v59, -inf  ;;  %v2989_v6 = vadd.f32 %v4808_v39, %v2980_v41  ;;  %v3000_v49 = vmul.f32 0.2, %v2992_v40  ;;  %vm2996_vm7 = vcmp.gt.f32.partialorder %v2992_v40, 0.0 }
 0x150   : > { %3014 = vmax.xlane.f32.xlu0 %v3013_v12  ;;  %v1414_v21 = vmul.f32 1.442695, %v1409_v51  ;;  %v1410_v51 = vsub.f32 %v6255_v30, %v6359_v37 }
 0x151   : > { %v2993_v53 = vadd.f32 %v2989_v6, %v2964_v50  ;;  %v3004_v56 = vsel %vm2996_vm7, %v2992_v40, %v3000_v49  ;;  %v623_v6 = vsub.f32 %v6227_v57, %v6355_v34  ;;  %v1408_v50 = vsub.f32 %v6247_v19, %v6357_v35 }
 0x152   : > { %v6425_v29 = vsel %vm535_vm5, %v3004_v56, -1e+09  ;;  %5834 = vpow2.f32 %v1414_v21  ;;  %v1416_v56 = vmul.f32 1.442695, %v1410_v51  ;;  %v6536_v51 = vsub.f32 %v6383_v60, %v6386_v61 }
 0x153   : > { %v3001_v8 = vmul.f32 0.2, %v2993_v53  ;;  %vm2997_vm9 = vcmp.gt.f32.partialorder %v2993_v53, 0.0  ;;  %v3016_v22 = vsel %vm608_vm2, %v6425_v29, -inf  ;;  %5836 = vpow2.f32 %v1418_v32 }
 0x154   : > { %v5831_v39 = vpop.eup %5830  ;;  %5838 = vpow2.f32 %v625_v5  ;;  %v629_v49 = vmul.f32 1.442695, %v623_v6  ;;  %v1412_v3 = vmul.f32 1.442695, %v1408_v50  ;;  %v6527_v6 = vsub.f32 %v6346_v25, %v6349_v27 }
 0x155   : > { %v3005_v18 = vsel %vm2997_vm9, %v2993_v53, %v3001_v8  ;;  %v6437_v38 = vsel %vm534_vm0, %v5831_v39, 0.0 }
 0x156   : > { %v6431_v36 = vsel %vm536_vm8, %v3005_v18, -1e+09  ;;  %v640_v58 = vsel %vm608_vm2, %v6437_v38, 0.0  ;;  %5840 = vpow2.f32 %v629_v49 }
 0x157   : > { %v3019_v33 = vsel %vm608_vm2, %v6431_v36, -inf  ;;  %5842 = vpow2.f32 %v1412_v3 }
 0x158   : > { %5844 = vpow2.f32 %v1416_v56 }
 0x15b   : > { %v5833_v43 = vpop.eup %5832 }
 0x15c   : > { %v6443_v14 = vsel %vm536_vm8, %v5833_v43, 0.0 }
 0x15d   : > { %1466 = vrot.lane.b32.xlu1 %v6277_v1, %s5992_s28  ;;  %v646_v11 = vsel %vm608_vm2, %v6443_v14, 0.0 }
 0x15f   : > { %v5835_v12 = vpop.eup %5834 }
 0x160   : > { %v6449_v10 = vsel %vm534_vm0, %v5835_v12, 0.0  ;;  %v5837_v15 = vpop.eup %5836 }
 0x161   : > { %v1427_v17 = vsel %vm608_vm2, %v6449_v10, 0.0  ;;  %v6457_v40 = vsel %vm536_vm8, %v5837_v15, 0.0  ;;  %v5839_v48 = vpop.eup %5838 }
 0x162   : > { %v1433_v41 = vsel %vm608_vm2, %v6457_v40, 0.0  ;;  %v6476_v19 = vsel %vm533_vm3, %v5839_v48, 0.0 }
 0x163   : > { %v5841_v28 = vpop.eup %5840  ;;  %v637_v30 = vsel %vm608_vm2, %v6476_v19, 0.0 }
 0x164   : > { %v6483_v42 = vsel %vm535_vm5, %v5841_v28, 0.0  ;;  %v5843_v8 = vpop.eup %5842  ;;  %v6545_v28 = vsub.f32 %v6393_v62, %v6396_v63 }
 0x165   : > { %v6490_v39 = vsel %vm533_vm3, %v5843_v8, 0.0 }
 0x166   : > { %1464 = vrot.lane.b32.xlu0 %v6293_v7, %s5992_s28  ;;  %v1424_v43 = vsel %vm608_vm2, %v6490_v39, 0.0 }
 0x16a   : > { %1462 = vrot.lane.b32.xlu0 %v6306_v52, %s5992_s28 }
 0x17f   : > { %v2209_v53 = vpop.xlane.xlu1 %2208 }
 0x180   : > { %v2219_v57 = vsub.f32 %v6317_v0, %v2209_v53  ;;  %v643_v0 = vsel %vm608_vm2, %v6483_v42, 0.0 }
 0x181   : > { %3017 = vmax.xlane.f32.xlu1 %v3016_v22  ;;  %v2218_v22 = vpop.xlane.xlu0 %2217 }
 0x182   : > { %v2223_v35 = vmul.f32 1.442695, %v2219_v57  ;;  %v2222_v32 = vsub.f32 %v6288_v46, %v2218_v22 }
 0x183   : > { %v6469_v21 = vpop.xlane.xlu1 %2211 }
 0x184   : > { %5846 = vpow2.f32 %v2223_v35  ;;  %v2229_v46 = vmul.f32 1.442695, %v2222_v32  ;;  %v6550_v35 = vand.u32 4294901760, %v6527_v6 }
 0x186   : > { %v838_v22 = vsub.f32 %v6527_v6, %v6550_v35 }
 0x187   : > { %v2215_v34 = vpop.xlane.xlu1 %2214 }
 0x188   : > { %v2221_v37 = vsub.f32 %v6329_v16, %v2215_v34  ;;  %v5845_v16 = vpop.eup %5844 }
 0x189   : > { %3020 = vmax.xlane.f32.xlu0 %v3019_v33  ;;  %v6494_v33 = vsub.f32 %v6293_v7, %v6296_v47  ;;  %v6504_v12 = vsel %vm535_vm5, %v5845_v16, 0.0  ;;  %v839_v16 = vand.u32 4294901760, %v838_v22 }
 0x18a   : > { %v2227_v18 = vmul.f32 1.442695, %v2221_v37  ;;  %v6554_v37 = vsub.f32 %v6404_v2, %v6408_v9 }
 0x18b   : > { %v6523_v5 = vand.u32 4294901760, %v6494_v33 }
 0x18c   : > { %5848 = vpow2.f32 %v2227_v18 }
 0x18d   : > { %641 = vadd.xlane.f32.xlu0 %v640_v58  ;;  %v6500_v58 = vsub.f32 %v6277_v1, %v6281_v4  ;;  %5850 = vpow2.f32 %v2229_v46  ;;  %v817_v50 = vsub.f32 %v6494_v33, %v6523_v5  ;;  %v6568_v46 = vand.u32 4294901760, %v6545_v28 }
 0x18f   : > { %v6511_v15 = vand.u32 4294901760, %v6500_v58  ;;  %5201 = vmatprep.subr.mxu0 %v6500_v58  ;;  %v818_v53 = vand.u32 4294901760, %v817_v50  ;;  %v6575_v50 = vand.u32 4294901760, %v6554_v37 }
 0x191   : > { %647 = vadd.xlane.f32.xlu0 %v646_v11  ;;  %v6508_v11 = vsub.f32 %v6306_v52, %v6310_v55  ;;  %v810_v45 = vsub.f32 %v6500_v58, %v6511_v15  ;;  %v5847_v57 = vpop.eup %5846 }
 0x192   : > { %1460 = vrot.lane.b32.xlu1 %v6336_v20, %s5992_s28  ;;  %v6563_v32 = vsel %vm533_vm3, %v5847_v57, 0.0 }
 0x193   : > { %v811_v49 = vand.u32 4294901760, %v810_v45  ;;  %v6532_v3 = vand.u32 4294901760, %v6508_v11 }
 0x195   : > { %1428 = vadd.xlane.f32.xlu0 %v1427_v17  ;;  %v6516_v17 = vsub.f32 %v6336_v20, %v6339_v24  ;;  %5179 = vmatprep.subr.mxu1 %v811_v49  ;;  %v824_v56 = vsub.f32 %v6508_v11, %v6532_v3 }
 0x196   : > { %5180 = vmatpush3.msra.mxu1 %v811_v49  ;;  %v852_v49 = vsub.f32 %v6545_v28, %v6568_v46 }
 0x197   : > { %v6541_v48 = vand.u32 4294901760, %v6516_v17  ;;  %5181 = vmatprep.subr.mxu1 %v818_v53  ;;  %v825_v34 = vand.u32 4294901760, %v824_v56 }
 0x198   : > { %5182 = vmatpush3.msra.mxu1 %v818_v53  ;;  %v853_v57 = vand.u32 4294901760, %v852_v49 }
 0x199   : > { %1434 = vadd.xlane.f32.xlu0 %v1433_v41  ;;  %v1430_v41 = vsel %vm608_vm2, %v6504_v12, 0.0  ;;  %5183 = vmatprep.subr.mxu1 %v825_v34  ;;  %v5849_v18 = vpop.eup %5848 }
 0x19a   : > { %5184 = vmatpush3.msra.mxu1 %v825_v34  ;;  %v6579_v53 = vsel %vm535_vm5, %v5849_v18, 0.0  ;;  %v5851_v56 = vpop.eup %5850  ;;  %v859_v34 = vsub.f32 %v6554_v37, %v6575_v50 }
 0x19b   : > { %v6587_v22 = vsel %vm536_vm8, %v5851_v56, 0.0 }
 0x19c   : > { %v2244_v18 = vsel %vm608_vm2, %v6587_v22, 0.0 }
 0x1af   : > { %1458 = vrot.lane.b32.xlu0 %v6346_v25, %s5992_s28 }
 0x1b6   : > { %638 = vadd.xlane.f32.xlu1 %v637_v30  ;;  %v831_v30 = vsub.f32 %v6516_v17, %v6541_v48 }
 0x1b8   : > { %v832_v8 = vand.u32 4294901760, %v831_v30  ;;  %v2241_v30 = vsel %vm608_vm2, %v6579_v53, 0.0 }
 0x1ba   : > { %644 = vadd.xlane.f32.xlu1 %v643_v0  ;;  %v6559_v0 = vand.u32 4294901760, %v6536_v51  ;;  %5185 = vmatprep.subr.mxu1 %v832_v8 }
 0x1bb   : > { %5186 = vmatpush3.msra.mxu1 %v832_v8  ;;  %v860_v8 = vand.u32 4294901760, %v859_v34 }
 0x1bc   : > { %5187 = vmatprep.subr.mxu1 %v839_v16 }
 0x1bd   : > { %5188 = vmatpush3.msra.mxu1 %v839_v16  ;;  %v2220_v16 = vsub.f32 %v6323_v13, %v6469_v21 }
 0x1be   : > { %1425 = vadd.xlane.f32.xlu1 %v1424_v43  ;;  %v845_v43 = vsub.f32 %v6536_v51, %v6559_v0 }
 0x1c0   : > { %v846_v45 = vand.u32 4294901760, %v845_v43  ;;  %v2225_v43 = vmul.f32 1.442695, %v2220_v16 }
 0x1c2   : > { %1431 = vadd.xlane.f32.xlu1 %v1430_v41  ;;  %v2235_v41 = vsel %vm608_vm2, %v6563_v32, 0.0  ;;  %5189 = vmatprep.subr.mxu1 %v846_v45  ;;  %5852 = vpow2.f32 %v2225_v43 }
 0x1c3   : > { %5190 = vmatpush3.msra.mxu1 %v846_v45 }
 0x1c4   : > { %5191 = vmatprep.subr.mxu1 %v853_v57 }
 0x1c5   : > { %5192 = vmatpush3.msra.mxu1 %v853_v57 }
 0x1c6   : > { %5193 = vmatprep.subr.mxu1 %v860_v8 }
 0x1c7   : > { %5194 = vmatpush3.msra.mxu1 %v860_v8 }
 0x1c8   : > { %5223 = vmatprep.subr.mxu1 %v6281_v4 }
 0x1ce   : > { %2236 = vadd.xlane.f32.xlu0 %v2235_v41 }
 0x1cf   : > { %v5853_v49 = vpop.eup %5852 }
 0x1d0   : > { %v6609_v13 = vsel %vm534_vm0, %v5853_v49, 0.0 }
 0x1d1   : > { %v2238_v21 = vsel %vm608_vm2, %v6609_v13, 0.0 }
 0x1d2   : > { %2242 = vadd.xlane.f32.xlu0 %v2241_v30 }
 0x1d3   : > { %1456 = vrot.lane.b32.xlu1 %v6383_v60, %s5992_s28 }
 0x1d5   : > { %v3012_v41 = vpop.xlane.xlu1 %3011 }
 0x1d6   : > { %2245 = vadd.xlane.f32.xlu0 %v2244_v18  ;;  %v3022_v45 = vsub.f32 %v6370_v54, %v3012_v41 }
 0x1d7   : > { %1454 = vrot.lane.b32.xlu1 %v6393_v62, %s5992_s28 }
 0x1d8   : > { %v3026_v56 = vmul.f32 1.442695, %v3022_v45 }
 0x1d9   : > { %v3015_v57 = vpop.xlane.xlu0 %3014  ;;  %v6613_v34 = vpop.permute.xlu1 %1466 }
 0x1da   : > { %5854 = vpow2.f32 %v3026_v56  ;;  %v3023_v31 = vsub.f32 %v6376_v59, %v3015_v57 }
 0x1db   : > { %1452 = vrot.lane.b32.xlu1 %v6404_v2, %s5992_s28  ;;  %s5997_s28 = smov 24  }
 0x1dd   : > { %v6615_v30 = vpop.permute.xlu0 %1464 }
 0x1e1   : > { %v6618_v43 = vpop.permute.xlu0 %1462 }
 0x1e7   : > { %v5855_v54 = vpop.eup %5854 }
 0x1e8   : > { %v6622_v41 = vsel %vm533_vm3, %v5855_v54, 0.0  ;;  %vm3818_vm3 = vcmask 195584  }
 0x1e9   : > { %v3038_v49 = vsel %vm608_vm2, %v6622_v41, 0.0 }
 0x1ec   : > { %2267 = vrot.lane.b32.xlu0 %v6293_v7, %s5993_s21 }
 0x1f0   : > { %2261 = vrot.lane.b32.xlu0 %v6346_v25, %s5993_s21 }
 0x1f4   : > { %2257 = vrot.lane.b32.xlu0 %v6393_v62, %s5993_s21 }
 0x1ff   : > { %2239 = vadd.xlane.f32.xlu1 %v2238_v21 }
 0x20a   : > { %v3018_v8 = vpop.xlane.xlu1 %3017 }
 0x20b   : > { %v3024_v18 = vsub.f32 %v6425_v29, %v3018_v8 }
 0x20d   : > { %v3030_v16 = vmul.f32 1.442695, %v3024_v18 }
 0x20f   : > { %5856 = vpow2.f32 %v3030_v16  ;;  %v3028_v16 = vmul.f32 1.442695, %v3023_v31 }
 0x210   : > { %2269 = vrot.lane.b32.xlu1 %v6277_v1, %s5993_s21 }
 0x212   : > { %v3021_v45 = vpop.xlane.xlu0 %3020 }
 0x213   : > { %v3025_v56 = vsub.f32 %v6431_v36, %v3021_v45  ;;  %3039 = vadd.xlane.f32.xlu0 %v3038_v49 }
 0x214   : > { %2265 = vrot.lane.b32.xlu1 %v6306_v52, %s5993_s21 }
 0x215   : > { %v3032_v29 = vmul.f32 1.442695, %v3025_v56  ;;  %v6650_v56 = vpop.permute.xlu1 %1460 }
 0x216   : > { %v642_v45 = vpop.xlane.xlu0 %641 }
 0x217   : > { %5858 = vpow2.f32 %v3032_v29 }
 0x218   : > { %2263 = vrot.lane.b32.xlu1 %v6336_v20, %s5993_s21  ;;  %5860 = vpow2.f32 %v3028_v16 }
 0x219   : > { %5862 = vrcp.f32 %v642_v45 }
 0x21a   : > { %v648_v49 = vpop.xlane.xlu0 %647 }
 0x21b   : > { %5864 = vrcp.f32 %v648_v49 }
 0x21c   : > { %v5857_v26 = vpop.eup %5856  ;;  %2259 = vrot.lane.b32.xlu1 %v6383_v60, %s5993_s21 }
 0x21d   : > { %v6637_v21 = vsel %vm535_vm5, %v5857_v26, 0.0  ;;  %vm3845_vm5 = vcmask 261120  }
 0x21e   : > { %v3044_v36 = vsel %vm608_vm2, %v6637_v21, 0.0 }
 0x21f   : > { %3045 = vadd.xlane.f32.xlu0 %v3044_v36 }
 0x220   : > { %2255 = vrot.lane.b32.xlu1 %v6404_v2, %s5993_s21 }
 0x224   : > { %v5859_v8 = vpop.eup %5858 }
 0x225   : > { %v6645_v18 = vsel %vm536_vm8, %v5859_v8, 0.0  ;;  %v5861_v29 = vpop.eup %5860 }
 0x226   : > { %v3047_v54 = vsel %vm608_vm2, %v6645_v18, 0.0  ;;  %v5863_v26 = vpop.eup %5862  ;;  %v6656_v36 = vsel %vm534_vm0, %v5861_v29, 0.0  ;;  %vm3808_vm0 = vcmask 64512  }
 0x227   : > { %3048 = vadd.xlane.f32.xlu0 %v3047_v54  ;;  %v3041_v57 = vsel %vm608_vm2, %v6656_v36, 0.0  ;;  %v652_v8 = vmul.f32 %v5863_v26, %v6437_v38 }
 0x228   : > { %v5865_v54 = vpop.eup %5864 }
 0x229   : > { %v656_v23 = vmul.f32 %v5865_v54, %v6443_v14 }
 0x23d   : > { %3070 = vrot.lane.b32.xlu0 %v6293_v7, %s5994_s2  ;;  %v669_v7 = vsel %vm608_vm2, %v652_v8, 0 }
 0x23e   : > { %v6667_v31 = vand.u32 4294901760, %v669_v7 }
 0x23f   : > { %v639_v44 = vpop.xlane.xlu1 %638 }
 0x240   : > { %5866 = vrcp.f32 %v639_v44  ;;  %v6672_v49 = vsub.f32 %v669_v7, %v6667_v31 }
 0x241   : > { %3064 = vrot.lane.b32.xlu0 %v6346_v25, %s5994_s2  ;;  %v675_v25 = vsel %vm608_vm2, %v656_v23, 0 }
 0x242   : > { %v6674_v38 = vand.u32 4294901760, %v675_v25  ;;  %v762_v14 = vand.u32 4294901760, %v6672_v49 }
 0x243   : > { %v645_v59 = vpop.xlane.xlu1 %644 }
 0x244   : > { %5868 = vrcp.f32 %v645_v59  ;;  %3042 = vadd.xlane.f32.xlu1 %v3041_v57 }
 0x245   : > { %3060 = vrot.lane.b32.xlu0 %v6393_v62, %s5994_s2 }
 0x24d   : > { %v5867_v16 = vpop.eup %5866 }
 0x24e   : > { %v650_v45 = vmul.f32 %v5867_v16, %v6476_v19  ;;  %v6684_v19 = vsub.f32 %v675_v25, %v6674_v38 }
 0x250   : > { %v666_v29 = vsel %vm608_vm2, %v650_v45, 0  ;;  %v782_v25 = vand.u32 4294901760, %v6684_v19 }
 0x251   : > { %v5869_v44 = vpop.eup %5868  ;;  %v6677_v62 = vand.u32 4294901760, %v666_v29 }
 0x252   : > { %v654_v26 = vmul.f32 %v5869_v44, %v6483_v42  ;;  %v763_v42 = vsub.f32 %v6672_v49, %v762_v14  ;;  %v783_v44 = vsub.f32 %v6684_v19, %v782_v25 }
 0x253   : > { %5195 = vmatprep.mubr.f32.mxu1 %v6677_v62  ;;  %v751_v59 = vsub.f32 %v666_v29, %v6677_v62 }
 0x254   : > { %5196 = vmatmul.mubr.f32.vlgmr.msra.gmra.mxu1 %v6667_v31  ;;  %v672_v57 = vsel %vm608_vm2, %v654_v26, 0  ;;  %v764_v45 = vand.u32 4294901760, %v763_v42 }
 0x255   : > { %5224 = vmatpush3.msra.mxu1 %v6281_v4  ;;  %v6689_v8 = vand.u32 4294901760, %v672_v57  ;;  %v752_v54 = vand.u32 4294901760, %v751_v59  ;;  %3072 = vrot.lane.b32.xlu1 %v6277_v1, %s5994_s2 }
 0x256   : > { %5225 = vmatprep.subr.mxu1 %v6296_v47 }
 0x257   : > { %5226 = vmatpush3.msra.mxu1 %v6296_v47  ;;  %5198 = vmatprep.mubr.f32.mxu1 %v6689_v8  ;;  %v753_v7 = vsub.f32 %v751_v59, %v752_v54  ;;  %v6698_v23 = vsub.f32 %v672_v57, %v6689_v8  ;;  %v1426_v57 = vpop.xlane.xlu1 %1425 }
 0x258   : > { %5227 = vmatprep.subr.mxu1 %v6310_v55  ;;  %5199 = vmatmul.mubr.f32.gmra.mxu1 %v6674_v38  ;;  %5870 = vrcp.f32 %v1426_v57 }
 0x259   : > { %5228 = vmatpush3.msra.mxu1 %v6310_v55  ;;  %5239 = vmatprep.mubr.f32.mxu1 %v752_v54  ;;  %v754_v1 = vand.u32 4294901760, %v753_v7  ;;  %v772_v16 = vand.u32 4294901760, %v6698_v23 }
 0x25a   : > { %5229 = vmatprep.subr.mxu1 %v6339_v24  ;;  %3068 = vrot.lane.b32.xlu1 %v6306_v52, %s5994_s2  ;;  %v784_v52 = vand.u32 4294901760, %v783_v44 }
 0x25b   : > { %5230 = vmatpush3.msra.mxu1 %v6339_v24  ;;  %5173 = vmatprep.mubr.f32.mxu0 %v754_v1  ;;  %v773_v29 = vsub.f32 %v6698_v23, %v772_v16 }
 0x25c   : > { %5231 = vmatprep.subr.mxu1 %v6349_v27  ;;  %5174 = vmatmul.mubr.f32.vlgmr.msra.gmra.mxu0 %v764_v45 }
 0x25d   : > { %5202 = vmatpush3.msra.mxu0 %v6500_v58  ;;  %5232 = vmatpush3.msra.mxu1 %v6349_v27  ;;  %v774_v26 = vand.u32 4294901760, %v773_v29  ;;  %v1429_v58 = vpop.xlane.xlu0 %1428 }
 0x25e   : > { %5203 = vmatprep.subr.mxu0 %v6494_v33  ;;  %5233 = vmatprep.subr.mxu1 %v6386_v61  ;;  %5872 = vrcp.f32 %v1429_v58 }
 0x25f   : > { %5204 = vmatpush3.msra.mxu0 %v6494_v33  ;;  %5234 = vmatpush3.msra.mxu1 %v6386_v61  ;;  %v1432_v33 = vpop.xlane.xlu1 %1431 }
 0x260   : > { %5176 = vmatprep.mubr.f32.mxu0 %v774_v26  ;;  %5205 = vmatprep.subr.mxu0 %v6508_v11  ;;  %5874 = vrcp.f32 %v1432_v33 }
 0x261   : > { %5235 = vmatprep.subr.mxu1 %v6396_v63  ;;  %5177 = vmatmul.mubr.f32.gmra.mxu0 %v784_v52 }
 0x262   : > { %5206 = vmatpush3.msra.mxu0 %v6508_v11  ;;  %5236 = vmatpush3.msra.mxu1 %v6396_v63  ;;  %v6734_v11 = vand.u32 4294901760, %v6613_v34 }
 0x263   : > { %5207 = vmatprep.subr.mxu0 %v6516_v17  ;;  %5217 = vmatprep.mubr.f32.mxu0 %v751_v59 }
 0x264   : > { %5237 = vmatprep.subr.mxu1 %v6408_v9  ;;  %5208 = vmatpush3.msra.mxu0 %v6516_v17  ;;  %v6741_v17 = vand.u32 4294901760, %v6615_v30 }
 0x265   : > { %5238 = vmatpush3.msra.mxu1 %v6408_v9  ;;  %5209 = vmatprep.subr.mxu0 %v6527_v6 }
 0x266   : > { %5240 = vmatmul.mubr.f32.vlgmr.msra.gmra.mxu1 %v762_v14  ;;  %5267 = vmatprep.subr.mxu1 %v6281_v4 }
 0x267   : > { %5210 = vmatpush3.msra.mxu0 %v6527_v6  ;;  %5242 = vmatprep.mubr.f32.mxu1 %v772_v16  ;;  %v1435_v6 = vpop.xlane.xlu0 %1434 }
 0x268   : > { %5268 = vmatpush3.msra.mxu1 %v6281_v4  ;;  %5211 = vmatprep.subr.mxu0 %v6536_v51  ;;  %v1457_v4 = vpop.permute.xlu1 %1456  ;;  %5876 = vrcp.f32 %v1435_v6 }
 0x269   : > { %5269 = vmatprep.subr.mxu1 %v6296_v47  ;;  %5212 = vmatpush3.msra.mxu0 %v6536_v51  ;;  %v5871_v51 = vpop.eup %5870 }
 0x26a   : > { %5270 = vmatpush3.msra.mxu1 %v6296_v47  ;;  %3066 = vrot.lane.b32.xlu1 %v6336_v20, %s5994_s2  ;;  %v6749_v47 = vsub.f32 %v6613_v34, %v6734_v11  ;;  %v6754_v20 = vand.u32 4294901760, %v6618_v43 }
 0x26b   : > { %5213 = vmatprep.subr.mxu0 %v6545_v28  ;;  %5243 = vmatmul.mubr.f32.gmra.mxu1 %v782_v25  ;;  %v1459_v34 = vpop.permute.xlu0 %1458 }
 0x26c   : > { %5271 = vmatprep.subr.mxu1 %v6310_v55  ;;  %5214 = vmatpush3.msra.mxu0 %v6545_v28  ;;  %v6766_v28 = vand.u32 4294901760, %v6650_v56 }
 0x26d   : > { %5272 = vmatpush3.msra.mxu1 %v6310_v55  ;;  %5283 = vmatprep.mubr.f32.mxu1 %v6677_v62  ;;  %v6760_v55 = vsub.f32 %v6615_v30, %v6741_v17  ;;  %v1437_v30 = vmul.f32 %v5871_v51, %v6490_v39 }
 0x26e   : > { %5215 = vmatprep.subr.mxu0 %v6554_v37  ;;  %5273 = vmatprep.subr.mxu1 %v6339_v24  ;;  %v6791_v14 = vsub.f32 %v6650_v56, %v6766_v28 }
 0x26f   : > { %5216 = vmatpush3.msra.mxu0 %v6554_v37  ;;  %5274 = vmatpush3.msra.mxu1 %v6339_v24  ;;  %v1455_v24 = vpop.permute.xlu1 %1454  ;;  %v6773_v37 = vand.u32 4294901760, %v6749_v47 }
 0x270   : > { %3062 = vrot.lane.b32.xlu1 %v6383_v60, %s5994_s2  ;;  %5218 = vmatmul.mubr.f32.vlgmr.msra.gmra.mxu0 %v6672_v49  ;;  %v6777_v60 = vsub.f32 %v6618_v43, %v6754_v20  ;;  %v6782_v49 = vand.u32 4294901760, %v1459_v34  ;;  %v6815_v59 = vand.u32 4294901760, %v1455_v24 }
 0x271   : > { %5245 = vmatprep.subr.mxu0 %v6511_v15  ;;  %5275 = vmatprep.subr.mxu1 %v6349_v27  ;;  %v1621_v39 = vsub.f32 %v6749_v47, %v6773_v37 }
 0x272   : > { %5220 = vmatprep.mubr.f32.mxu0 %v6698_v23  ;;  %5246 = vmatpush3.msra.mxu0 %v6511_v15  ;;  %v6787_v15 = vand.u32 4294901760, %v6760_v55  ;;  %v6840_v23 = vsub.f32 %v1455_v24, %v6815_v59 }
 0x273   : > { %5276 = vmatpush3.msra.mxu1 %v6349_v27  ;;  %5247 = vmatprep.subr.mxu0 %v6523_v5  ;;  %v6796_v27 = vand.u32 4294901760, %v1457_v4  ;;  %v1453_v43 = vpop.permute.xlu1 %1452 }
 0x274   : > { %5277 = vmatprep.subr.mxu1 %v6386_v61  ;;  %5248 = vmatpush3.msra.mxu0 %v6523_v5  ;;  %v6805_v5 = vand.u32 4294901760, %v6777_v60  ;;  %v1628_v56 = vsub.f32 %v6760_v55, %v6787_v15  ;;  %v6829_v54 = vand.u32 4294901760, %v1453_v43  ;;  %v6863_v57 = vand.u32 4294901760, %v6840_v23 }
 0x275   : > { %5278 = vmatpush3.msra.mxu1 %v6386_v61  ;;  %3058 = vrot.lane.b32.xlu1 %v6404_v2, %s5994_s2  ;;  %v1477_v61 = vsel %vm608_vm2, %v1437_v30, 0  ;;  %v6809_v2 = vsub.f32 %v1459_v34, %v6782_v49  ;;  %s4820_s2 = sshll.u32 %s6099_s10, 9 }
 0x276   : > { %5221 = vmatmul.mubr.f32.gmra.mxu0 %v6684_v19  ;;  %5249 = vmatprep.subr.mxu0 %v6532_v3  ;;  %v6823_v19 = vsub.f32 %v1457_v4, %v6796_v27  ;;  %v1635_v42 = vsub.f32 %v6777_v60, %v6805_v5  ;;  %v1629_v7 = vand.u32 4294901760, %v1628_v56  ;;  %v6853_v45 = vsub.f32 %v1453_v43, %v6829_v54 }
 0x277   : > { %5279 = vmatprep.subr.mxu1 %v6396_v63  ;;  %5250 = vmatpush3.msra.mxu0 %v6532_v3  ;;  %v6820_v3 = vand.u32 4294901760, %v6791_v14  ;;  %v1663_v6 = vsub.f32 %v6840_v23, %v6863_v57 }
 0x278   : > { %5261 = vmatprep.mubr.f32.mxu0 %v6677_v62  ;;  %5280 = vmatpush3.msra.mxu1 %v6396_v63  ;;  %v1622_v63 = vand.u32 4294901760, %v1621_v39  ;;  %v6827_v62 = vand.u32 4294901760, %v1477_v61  ;;  %v1636_v29 = vand.u32 4294901760, %v1635_v42 }
 0x279   : > { %5251 = vmatprep.subr.mxu0 %v6541_v48  ;;  %5281 = vmatprep.subr.mxu1 %v6408_v9  ;;  %v1642_v25 = vsub.f32 %v6791_v14, %v6820_v3 }
 0x27a   : > { %5252 = vmatpush3.msra.mxu0 %v6541_v48  ;;  %5282 = vmatpush3.msra.mxu1 %v6408_v9  ;;  %v6837_v48 = vand.u32 4294901760, %v6809_v2  ;;  %v5873_v9 = vpop.eup %5872  ;;  %v6850_v16 = vsub.f32 %v1477_v61, %v6827_v62 }
 0x27b   : > { %5253 = vmatprep.subr.mxu0 %v6550_v35  ;;  %5284 = vmatmul.mubr.f32.vlgmr.msra.gmra.mxu1 %v6667_v31  ;;  %v5875_v1 = vpop.eup %5874  ;;  %v1439_v44 = vmul.f32 %v5873_v9, %v6449_v10  ;;  %v1643_v52 = vand.u32 4294901760, %v1642_v25 }
 0x27c   : > { %5311 = vmatprep.subr.mxu1 %v1622_v63  ;;  %5254 = vmatpush3.msra.mxu0 %v6550_v35  ;;  %v6847_v35 = vand.u32 4294901760, %v6823_v19  ;;  %v1649_v26 = vsub.f32 %v6809_v2, %v6837_v48  ;;  %v5877_v33 = vpop.eup %5876  ;;  %v1563_v58 = vand.u32 4294901760, %v6850_v16 }
 0x27d   : > { %5286 = vmatprep.mubr.f32.mxu1 %v6689_v8  ;;  %5312 = vmatpush3.msra.mxu1 %v1622_v63  ;;  %v1443_v34 = vmul.f32 %v5877_v33, %v6457_v40 }
 0x27e   : > { %5255 = vmatprep.subr.mxu0 %v6559_v0  ;;  %5313 = vmatprep.subr.mxu1 %v1629_v7  ;;  %v1656_v10 = vsub.f32 %v6823_v19, %v6847_v35  ;;  %v1650_v4 = vand.u32 4294901760, %v1649_v26 }
 0x27f   : > { %5256 = vmatpush3.msra.mxu0 %v6559_v0  ;;  %5314 = vmatpush3.msra.mxu1 %v1629_v7  ;;  %v1441_v0 = vmul.f32 %v5875_v1, %v6504_v12  ;;  %v1480_v12 = vsel %vm608_vm2, %v1439_v44, 0  ;;  %v1486_v39 = vsel %vm608_vm2, %v1443_v34, 0  ;;  %v2237_v44 = vpop.xlane.xlu0 %2236 }
 0x280   : > { %5257 = vmatprep.subr.mxu0 %v6568_v46  ;;  %5287 = vmatmul.mubr.f32.gmra.mxu1 %v6674_v38  ;;  %v1657_v24 = vand.u32 4294901760, %v1656_v10  ;;  %v6889_v30 = vand.u32 4294901760, %v1480_v12  ;;  %v6902_v63 = vand.u32 4294901760, %v1486_v39  ;;  %5878 = vrcp.f32 %v2237_v44 }
 0x281   : > { %5315 = vmatprep.subr.mxu1 %v1636_v29  ;;  %5258 = vmatpush3.msra.mxu0 %v6568_v46  ;;  %v6872_v46 = vand.u32 4294901760, %v6853_v45  ;;  %v1483_v51 = vsel %vm608_vm2, %v1441_v0, 0 }
 0x282   : > { %5316 = vmatpush3.msra.mxu1 %v1636_v29  ;;  %5327 = vmatprep.mubr.f32.mxu1 %v6827_v62  ;;  %v6892_v40 = vand.u32 4294901760, %v1483_v51  ;;  %v6900_v56 = vsub.f32 %v1480_v12, %v6889_v30  ;;  %v6916_v9 = vsub.f32 %v1486_v39, %v6902_v63 }
 0x283   : > { %5259 = vmatprep.subr.mxu0 %v6575_v50  ;;  %5317 = vmatprep.subr.mxu1 %v1643_v52  ;;  %v2243_v10 = vpop.xlane.xlu0 %2242 }
 0x284   : > { %5260 = vmatpush3.msra.mxu0 %v6575_v50  ;;  %5318 = vmatpush3.msra.mxu1 %v1643_v52  ;;  %v1564_v50 = vsub.f32 %v6850_v16, %v1563_v58  ;;  %v6905_v42 = vsub.f32 %v1483_v51, %v6892_v40  ;;  %v1593_v29 = vand.u32 4294901760, %v6916_v9 }
 0x285   : > { %5262 = vmatmul.mubr.f32.vlgmr.msra.gmra.mxu0 %v6667_v31  ;;  %5289 = vmatprep.subr.mxu0 %v6734_v11  ;;  %v1670_v31 = vsub.f32 %v6853_v45, %v6872_v46 }
 0x286   : > { %5319 = vmatprep.subr.mxu1 %v1650_v4  ;;  %5264 = vmatprep.mubr.f32.mxu0 %v6689_v8  ;;  %v1664_v8 = vand.u32 4294901760, %v1663_v6  ;;  %v1565_v61 = vand.u32 4294901760, %v1564_v50  ;;  %v1583_v7 = vand.u32 4294901760, %v6905_v42  ;;  %v1594_v33 = vsub.f32 %v6916_v9, %v1593_v29 }
 0x287   : > { %5290 = vmatpush3.msra.mxu0 %v6734_v11  ;;  %5320 = vmatpush3.msra.mxu1 %v1650_v4  ;;  %v1671_v43 = vand.u32 4294901760, %v1670_v31 }
 0x288   : > { %5291 = vmatprep.subr.mxu0 %v6741_v17  ;;  %5321 = vmatprep.subr.mxu1 %v1657_v24  ;;  %v1584_v1 = vsub.f32 %v6905_v42, %v1583_v7  ;;  %v2240_v26 = vpop.xlane.xlu1 %2239  ;;  %v1595_v4 = vand.u32 4294901760, %v1594_v33 }
 0x289   : > { %5292 = vmatpush3.msra.mxu0 %v6741_v17  ;;  %5322 = vmatpush3.msra.mxu1 %v1657_v24  ;;  %5880 = vrcp.f32 %v2240_v26 }
 0x28a   : > { %5265 = vmatmul.mubr.f32.gmra.mxu0 %v6674_v38  ;;  %5293 = vmatprep.subr.mxu0 %v6754_v20  ;;  %v1573_v38 = vand.u32 4294901760, %v6900_v56  ;;  %v1585_v0 = vand.u32 4294901760, %v1584_v1  ;;  %5882 = vrcp.f32 %v2243_v10 }
 0x28b   : > { %5323 = vmatprep.subr.mxu1 %v1664_v8  ;;  %5294 = vmatpush3.msra.mxu0 %v6754_v20 }
 0x28c   : > { %5305 = vmatprep.mubr.f32.mxu0 %v1565_v61  ;;  %5324 = vmatpush3.msra.mxu1 %v1664_v8  ;;  %v1574_v25 = vsub.f32 %v6900_v56, %v1573_v38 }
 0x28d   : > { %5295 = vmatprep.subr.mxu0 %v6766_v28  ;;  %5325 = vmatprep.subr.mxu1 %v1671_v43 }
 0x28e   : > { %5296 = vmatpush3.msra.mxu0 %v6766_v28  ;;  %5326 = vmatpush3.msra.mxu1 %v1671_v43  ;;  %v1575_v52 = vand.u32 4294901760, %v1574_v25 }
 0x28f   : > { %5297 = vmatprep.subr.mxu0 %v6782_v49  ;;  %5328 = vmatmul.mubr.f32.vlgmr.msra.gmra.mxu1 %v6889_v30 }
 0x290   : > { %5355 = vmatprep.subr.mxu1 %v6734_v11  ;;  %5298 = vmatpush3.msra.mxu0 %v6782_v49 }
 0x291   : > { %5330 = vmatprep.mubr.f32.mxu1 %v6892_v40  ;;  %5356 = vmatpush3.msra.mxu1 %v6734_v11 }
 0x292   : > { %5299 = vmatprep.subr.mxu0 %v6796_v27  ;;  %5357 = vmatprep.subr.mxu1 %v6741_v17 }
 0x293   : > { %5300 = vmatpush3.msra.mxu0 %v6796_v27  ;;  %5358 = vmatpush3.msra.mxu1 %v6741_v17 }
 0x294   : > { %5301 = vmatprep.subr.mxu0 %v6815_v59  ;;  %5331 = vmatmul.mubr.f32.gmra.mxu1 %v6902_v63 }
 0x295   : > { %5359 = vmatprep.subr.mxu1 %v6754_v20  ;;  %5302 = vmatpush3.msra.mxu0 %v6815_v59 }
 0x296   : > { %5360 = vmatpush3.msra.mxu1 %v6754_v20  ;;  %5371 = vmatprep.mubr.f32.mxu1 %v1563_v58  ;;  %v2270_v58 = vpop.permute.xlu1 %2269 }
 0x297   : > { %5303 = vmatprep.subr.mxu0 %v6829_v54  ;;  %5361 = vmatprep.subr.mxu1 %v6766_v28 }
 0x298   : > { %5304 = vmatpush3.msra.mxu0 %v6829_v54  ;;  %5362 = vmatpush3.msra.mxu1 %v6766_v28 }
 0x299   : > { %5306 = vmatmul.mubr.f32.vlgmr.msra.gmra.mxu0 %v1575_v52  ;;  %5333 = vmatprep.subr.mxu0 %v6749_v47 }
 0x29a   : > { %5363 = vmatprep.subr.mxu1 %v6782_v49  ;;  %5308 = vmatprep.mubr.f32.mxu0 %v1585_v0 }
 0x29b   : > { %5334 = vmatpush3.msra.mxu0 %v6749_v47  ;;  %5364 = vmatpush3.msra.mxu1 %v6782_v49  ;;  %v2246_v47 = vpop.xlane.xlu0 %2245 }
 0x29c   : > { %5335 = vmatprep.subr.mxu0 %v6760_v55  ;;  %5365 = vmatprep.subr.mxu1 %v6796_v27  ;;  %5884 = vrcp.f32 %v2246_v47 }
 0x29d   : > { %5336 = vmatpush3.msra.mxu0 %v6760_v55  ;;  %5366 = vmatpush3.msra.mxu1 %v6796_v27  ;;  %v2266_v55 = vpop.permute.xlu1 %2265 }
 0x29e   : > { %5309 = vmatmul.mubr.f32.gmra.mxu0 %v1595_v4  ;;  %5337 = vmatprep.subr.mxu0 %v6777_v60 }
 0x29f   : > { %5367 = vmatprep.subr.mxu1 %v6815_v59  ;;  %5338 = vmatpush3.msra.mxu0 %v6777_v60  ;;  %v2268_v60 = vpop.permute.xlu0 %2267 }
 0x2a0   : > { %5349 = vmatprep.mubr.f32.mxu0 %v6850_v16  ;;  %5368 = vmatpush3.msra.mxu1 %v6815_v59  ;;  %v6960_v16 = vand.u32 4294901760, %v2270_v58 }
 0x2a1   : > { %5339 = vmatprep.subr.mxu0 %v6791_v14  ;;  %5369 = vmatprep.subr.mxu1 %v6829_v54  ;;  %v2264_v12 = vpop.permute.xlu1 %2263 }
 0x2a2   : > { %5340 = vmatpush3.msra.mxu0 %v6791_v14  ;;  %5370 = vmatpush3.msra.mxu1 %v6829_v54  ;;  %v6966_v14 = vand.u32 4294901760, %v2268_v60 }
 0x2a3   : > { %5341 = vmatprep.subr.mxu0 %v6809_v2  ;;  %5372 = vmatmul.mubr.f32.vlgmr.msra.gmra.mxu1 %v1573_v38  ;;  %v2262_v6 = vpop.permute.xlu0 %2261 }
 0x2a4   : > { %5399 = vmatprep.subr.mxu1 %v6734_v11  ;;  %5342 = vmatpush3.msra.mxu0 %v6809_v2  ;;  %v6976_v2 = vand.u32 4294901760, %v2266_v55 }
 0x2a5   : > { %5374 = vmatprep.mubr.f32.mxu1 %v1583_v7  ;;  %5400 = vmatpush3.msra.mxu1 %v6734_v11  ;;  %v6972_v11 = vsub.f32 %v2270_v58, %v6960_v16 }
 0x2a6   : > { %5343 = vmatprep.subr.mxu0 %v6823_v19  ;;  %5401 = vmatprep.subr.mxu1 %v6741_v17  ;;  %v6995_v34 = vsub.f32 %v2266_v55, %v6976_v2 }
 0x2a7   : > { %5344 = vmatpush3.msra.mxu0 %v6823_v19  ;;  %5402 = vmatpush3.msra.mxu1 %v6741_v17  ;;  %v5879_v17 = vpop.eup %5878  ;;  %v6981_v19 = vsub.f32 %v2268_v60, %v6966_v14  ;;  %v6992_v51 = vand.u32 4294901760, %v6972_v11 }
 0x2a8   : > { %5345 = vmatprep.subr.mxu0 %v6840_v23  ;;  %5375 = vmatmul.mubr.f32.gmra.mxu1 %v1593_v29  ;;  %v7021_v31 = vand.u32 4294901760, %v6995_v34 }
 0x2a9   : > { %5403 = vmatprep.subr.mxu1 %v6754_v20  ;;  %5346 = vmatpush3.msra.mxu0 %v6840_v23  ;;  %v2260_v23 = vpop.permute.xlu1 %2259  ;;  %v7005_v24 = vand.u32 4294901760, %v6981_v19 }
 0x2aa   : > { %5404 = vmatpush3.msra.mxu1 %v6754_v20  ;;  %5415 = vmatprep.mubr.f32.mxu1 %v6827_v62  ;;  %v6985_v20 = vand.u32 4294901760, %v2264_v12 }
 0x2ab   : > { %5347 = vmatprep.subr.mxu0 %v6853_v45  ;;  %5405 = vmatprep.subr.mxu1 %v6766_v28  ;;  %v2431_v39 = vsub.f32 %v6981_v19, %v7005_v24 }
 0x2ac   : > { %5348 = vmatpush3.msra.mxu0 %v6853_v45  ;;  %5406 = vmatpush3.msra.mxu1 %v6766_v28  ;;  %v2248_v28 = vmul.f32 %v5879_v17, %v6563_v32  ;;  %v7000_v45 = vand.u32 4294901760, %v2262_v6  ;;  %v7008_v50 = vsub.f32 %v2264_v12, %v6985_v20  ;;  %v2424_v32 = vsub.f32 %v6972_v11, %v6992_v51 }
 0x2ad   : > { %5350 = vmatmul.mubr.f32.vlgmr.msra.gmra.mxu0 %v6900_v56  ;;  %5377 = vmatprep.subr.mxu0 %v6773_v37  ;;  %v2256_v8 = vpop.permute.xlu1 %2255  ;;  %v2432_v38 = vand.u32 4294901760, %v2431_v39 }
 0x2ae   : > { %5407 = vmatprep.subr.mxu1 %v6782_v49  ;;  %5352 = vmatprep.mubr.f32.mxu0 %v6905_v42  ;;  %v7045_v56 = vand.u32 4294901760, %v2256_v8  ;;  %v2438_v42 = vsub.f32 %v6995_v34, %v7021_v31 }
 0x2af   : > { %5378 = vmatpush3.msra.mxu0 %v6773_v37  ;;  %5408 = vmatpush3.msra.mxu1 %v6782_v49  ;;  %v2258_v37 = vpop.permute.xlu0 %2257  ;;  %v7012_v49 = vand.u32 4294901760, %v2260_v23 }
 0x2b0   : > { %5379 = vmatprep.subr.mxu0 %v6787_v15  ;;  %5409 = vmatprep.subr.mxu1 %v6796_v27  ;;  %v7031_v61 = vand.u32 4294901760, %v2258_v37  ;;  %v7069_v29 = vsub.f32 %v2256_v8, %v7045_v56  ;;  %v2439_v44 = vand.u32 4294901760, %v2438_v42 }
 0x2b1   : > { %5380 = vmatpush3.msra.mxu0 %v6787_v15  ;;  %5410 = vmatpush3.msra.mxu1 %v6796_v27  ;;  %v2280_v15 = vsel %vm608_vm2, %v2248_v28, 0  ;;  %v7025_v27 = vsub.f32 %v2262_v6, %v7000_v45  ;;  %v7039_v43 = vsub.f32 %v2260_v23, %v7012_v49 }
 0x2b2   : > { %5353 = vmatmul.mubr.f32.gmra.mxu0 %v6916_v9  ;;  %5381 = vmatprep.subr.mxu0 %v6805_v5  ;;  %v7056_v7 = vsub.f32 %v2258_v37, %v7031_v61 }
 0x2b3   : > { %5411 = vmatprep.subr.mxu1 %v6815_v59  ;;  %5382 = vmatpush3.msra.mxu0 %v6805_v5  ;;  %v7036_v5 = vand.u32 4294901760, %v7008_v50 }
 0x2b4   : > { %5393 = vmatprep.mubr.f32.mxu0 %v6827_v62  ;;  %5412 = vmatpush3.msra.mxu1 %v6815_v59  ;;  %v2425_v59 = vand.u32 4294901760, %v2424_v32  ;;  %v7043_v62 = vand.u32 4294901760, %v2280_v15  ;;  %v7079_v33 = vand.u32 4294901760, %v7056_v7 }
 0x2b5   : > { %5383 = vmatprep.subr.mxu0 %v6820_v3  ;;  %5413 = vmatprep.subr.mxu1 %v6829_v54  ;;  %v2445_v9 = vsub.f32 %v7008_v50, %v7036_v5 }
 0x2b6   : > { %5384 = vmatpush3.msra.mxu0 %v6820_v3  ;;  %5414 = vmatpush3.msra.mxu1 %v6829_v54  ;;  %v7053_v3 = vand.u32 4294901760, %v7025_v27  ;;  %v5881_v54 = vpop.eup %5880  ;;  %v7066_v1 = vsub.f32 %v2280_v15, %v7043_v62  ;;  %v2466_v47 = vsub.f32 %v7056_v7, %v7079_v33 }
 0x2b7   : > { %5385 = vmatprep.subr.mxu0 %v6837_v48  ;;  %5416 = vmatmul.mubr.f32.vlgmr.msra.gmra.mxu1 %v6889_v30  ;;  %v5883_v25 = vpop.eup %5882  ;;  %v2250_v26 = vmul.f32 %v5881_v54, %v6609_v13  ;;  %v2446_v0 = vand.u32 4294901760, %v2445_v9  ;;  %v3040_v9 = vpop.xlane.xlu0 %3039 }
 0x2b8   : > { %5443 = vmatprep.subr.mxu1 %v2425_v59  ;;  %5386 = vmatpush3.msra.mxu0 %v6837_v48  ;;  %v7063_v48 = vand.u32 4294901760, %v7039_v43  ;;  %v2452_v52 = vsub.f32 %v7025_v27, %v7053_v3  ;;  %v5885_v10 = vpop.eup %5884  ;;  %v2366_v58 = vand.u32 4294901760, %v7066_v1  ;;  %5886 = vrcp.f32 %v3040_v9 }
 0x2b9   : > { %5418 = vmatprep.mubr.f32.mxu1 %v6892_v40  ;;  %5444 = vmatpush3.msra.mxu1 %v2425_v59  ;;  %v2254_v60 = vmul.f32 %v5885_v10, %v6587_v22 }
 0x2ba   : > { %5387 = vmatprep.subr.mxu0 %v6847_v35  ;;  %5445 = vmatprep.subr.mxu1 %v2432_v38  ;;  %v2459_v13 = vsub.f32 %v7039_v43, %v7063_v48  ;;  %v2453_v4 = vand.u32 4294901760, %v2452_v52 }
 0x2bb   : > { %5388 = vmatpush3.msra.mxu0 %v6847_v35  ;;  %5446 = vmatpush3.msra.mxu1 %v2432_v38  ;;  %v2252_v35 = vmul.f32 %v5883_v25, %v6579_v53  ;;  %v2283_v53 = vsel %vm608_vm2, %v2250_v26, 0  ;;  %v2289_v6 = vsel %vm608_vm2, %v2254_v60, 0 }
 0x2bc   : > { %5389 = vmatprep.subr.mxu0 %v6863_v57  ;;  %5419 = vmatmul.mubr.f32.gmra.mxu1 %v6902_v63  ;;  %v2460_v12 = vand.u32 4294901760, %v2459_v13  ;;  %v7105_v17 = vand.u32 4294901760, %v2283_v53  ;;  %v7118_v32 = vand.u32 4294901760, %v2289_v6 }
 0x2bd   : > { %5447 = vmatprep.subr.mxu1 %v2439_v44  ;;  %5390 = vmatpush3.msra.mxu0 %v6863_v57  ;;  %v7088_v57 = vand.u32 4294901760, %v7069_v29  ;;  %v2286_v55 = vsel %vm608_vm2, %v2252_v35, 0 }
 0x2be   : > { %5448 = vmatpush3.msra.mxu1 %v2439_v44  ;;  %5459 = vmatprep.mubr.f32.mxu1 %v7043_v62  ;;  %v7108_v22 = vand.u32 4294901760, %v2286_v55  ;;  %v7116_v37 = vsub.f32 %v2283_v53, %v7105_v17  ;;  %v7132_v39 = vsub.f32 %v2289_v6, %v7118_v32 }
 0x2bf   : > { %5391 = vmatprep.subr.mxu0 %v6872_v46  ;;  %5449 = vmatprep.subr.mxu1 %v2446_v0 }
 0x2c0   : > { %5392 = vmatpush3.msra.mxu0 %v6872_v46  ;;  %5450 = vmatpush3.msra.mxu1 %v2446_v0  ;;  %v2367_v46 = vsub.f32 %v7066_v1, %v2366_v58  ;;  %v7121_v15 = vsub.f32 %v2286_v55, %v7108_v22  ;;  %v2396_v38 = vand.u32 4294901760, %v7132_v39 }
 0x2c1   : > { %5394 = vmatmul.mubr.f32.vlgmr.msra.gmra.mxu0 %v6889_v30  ;;  %5421 = vmatprep.subr.mxu0 %v6960_v16  ;;  %v2473_v30 = vsub.f32 %v7069_v29, %v7088_v57 }
 0x2c2   : > { %5451 = vmatprep.subr.mxu1 %v2453_v4  ;;  %5396 = vmatprep.mubr.f32.mxu0 %v6892_v40  ;;  %v2467_v40 = vand.u32 4294901760, %v2466_v47  ;;  %v2368_v23 = vand.u32 4294901760, %v2367_v46  ;;  %v2386_v8 = vand.u32 4294901760, %v7121_v15  ;;  %v2397_v44 = vsub.f32 %v7132_v39, %v2396_v38 }
 0x2c3   : > { %5422 = vmatpush3.msra.mxu0 %v6960_v16  ;;  %5452 = vmatpush3.msra.mxu1 %v2453_v4  ;;  %v2474_v28 = vand.u32 4294901760, %v2473_v30 }
 0x2c4   : > { %5423 = vmatprep.subr.mxu0 %v6966_v14  ;;  %5453 = vmatprep.subr.mxu1 %v2460_v12  ;;  %v2387_v42 = vsub.f32 %v7121_v15, %v2386_v8  ;;  %v2398_v52 = vand.u32 4294901760, %v2397_v44 }
 0x2c5   : > { %5424 = vmatpush3.msra.mxu0 %v6966_v14  ;;  %5454 = vmatpush3.msra.mxu1 %v2460_v12 }
 0x2c6   : > { %5397 = vmatmul.mubr.f32.gmra.mxu0 %v6902_v63  ;;  %5425 = vmatprep.subr.mxu0 %v6976_v2  ;;  %v2376_v63 = vand.u32 4294901760, %v7116_v37  ;;  %v2388_v25 = vand.u32 4294901760, %v2387_v42 }
 0x2c7   : > { %5455 = vmatprep.subr.mxu1 %v2467_v40  ;;  %5426 = vmatpush3.msra.mxu0 %v6976_v2 }
 0x2c8   : > { %5437 = vmatprep.mubr.f32.mxu0 %v2368_v23  ;;  %5456 = vmatpush3.msra.mxu1 %v2467_v40  ;;  %v2377_v59 = vsub.f32 %v7116_v37, %v2376_v63 }
 0x2c9   : > { %5427 = vmatprep.subr.mxu0 %v6985_v20  ;;  %5457 = vmatprep.subr.mxu1 %v2474_v28 }
 0x2ca   : > { %5428 = vmatpush3.msra.mxu0 %v6985_v20  ;;  %5458 = vmatpush3.msra.mxu1 %v2474_v28  ;;  %v2378_v54 = vand.u32 4294901760, %v2377_v59 }
 0x2cb   : > { %5429 = vmatprep.subr.mxu0 %v7000_v45  ;;  %5460 = vmatmul.mubr.f32.vlgmr.msra.gmra.mxu1 %v7105_v17 }
 0x2cc   : > { %5487 = vmatprep.subr.mxu1 %v6960_v16  ;;  %5430 = vmatpush3.msra.mxu0 %v7000_v45 }
 0x2cd   : > { %5462 = vmatprep.mubr.f32.mxu1 %v7108_v22  ;;  %5488 = vmatpush3.msra.mxu1 %v6960_v16  ;;  %v3043_v26 = vpop.xlane.xlu1 %3042 }
 0x2ce   : > { %5431 = vmatprep.subr.mxu0 %v7012_v49  ;;  %5489 = vmatprep.subr.mxu1 %v6966_v14  ;;  %5888 = vrcp.f32 %v3043_v26 }
 0x2cf   : > { %5432 = vmatpush3.msra.mxu0 %v7012_v49  ;;  %5490 = vmatpush3.msra.mxu1 %v6966_v14 }
 0x2d0   : > { %5433 = vmatprep.subr.mxu0 %v7031_v61  ;;  %5463 = vmatmul.mubr.f32.gmra.mxu1 %v7118_v32 }
 0x2d1   : > { %5491 = vmatprep.subr.mxu1 %v6976_v2  ;;  %5434 = vmatpush3.msra.mxu0 %v7031_v61  ;;  %v3073_v0 = vpop.permute.xlu1 %3072 }
 0x2d2   : > { %5492 = vmatpush3.msra.mxu1 %v6976_v2  ;;  %5503 = vmatprep.mubr.f32.mxu1 %v2366_v58 }
 0x2d3   : > { %5435 = vmatprep.subr.mxu0 %v7045_v56  ;;  %5493 = vmatprep.subr.mxu1 %v6985_v20 }
 0x2d4   : > { %5436 = vmatpush3.msra.mxu0 %v7045_v56  ;;  %5494 = vmatpush3.msra.mxu1 %v6985_v20 }
 0x2d5   : > { %5438 = vmatmul.mubr.f32.vlgmr.msra.gmra.mxu0 %v2378_v54  ;;  %5465 = vmatprep.subr.mxu0 %v6972_v11 }
 0x2d6   : > { %5495 = vmatprep.subr.mxu1 %v7000_v45  ;;  %5440 = vmatprep.mubr.f32.mxu0 %v2388_v25 }
 0x2d7   : > { %5466 = vmatpush3.msra.mxu0 %v6972_v11  ;;  %5496 = vmatpush3.msra.mxu1 %v7000_v45  ;;  %v3046_v11 = vpop.xlane.xlu0 %3045 }
 0x2d8   : > { %5467 = vmatprep.subr.mxu0 %v6981_v19  ;;  %5497 = vmatprep.subr.mxu1 %v7012_v49  ;;  %5890 = vrcp.f32 %v3046_v11 }
 0x2d9   : > { %5468 = vmatpush3.msra.mxu0 %v6981_v19  ;;  %5498 = vmatpush3.msra.mxu1 %v7012_v49 }
 0x2da   : > { %5441 = vmatmul.mubr.f32.gmra.mxu0 %v2398_v52  ;;  %5469 = vmatprep.subr.mxu0 %v6995_v34 }
 0x2db   : > { %5499 = vmatprep.subr.mxu1 %v7031_v61  ;;  %5470 = vmatpush3.msra.mxu0 %v6995_v34  ;;  %v3049_v19 = vpop.xlane.xlu0 %3048  ;;  %v3069_v34 = vpop.permute.xlu1 %3068 }
 0x2dc   : > { %5481 = vmatprep.mubr.f32.mxu0 %v7066_v1  ;;  %5500 = vmatpush3.msra.mxu1 %v7031_v61  ;;  %v7176_v1 = vand.u32 4294901760, %v3073_v0  ;;  %5892 = vrcp.f32 %v3049_v19 }
 0x2dd   : > { %5471 = vmatprep.subr.mxu0 %v7008_v50  ;;  %5501 = vmatprep.subr.mxu1 %v7045_v56 }
 0x2de   : > { %5472 = vmatpush3.msra.mxu0 %v7008_v50  ;;  %5502 = vmatpush3.msra.mxu1 %v7045_v56  ;;  %v5887_v50 = vpop.eup %5886 }
 0x2df   : > { %5473 = vmatprep.subr.mxu0 %v7025_v27  ;;  %5504 = vmatmul.mubr.f32.vlgmr.msra.gmra.mxu1 %v2376_v63  ;;  %v3051_v35 = vmul.f32 %v5887_v50, %v6622_v41  ;;  %v5889_v4 = vpop.eup %5888 }
 0x2e0   : > { %5531 = vmatprep.subr.mxu1 %v6960_v16  ;;  %5474 = vmatpush3.msra.mxu0 %v7025_v27  ;;  %v3071_v27 = vpop.permute.xlu0 %3070 }
 0x2e1   : > { %5506 = vmatprep.mubr.f32.mxu1 %v2386_v8  ;;  %5532 = vmatpush3.msra.mxu1 %v6960_v16  ;;  %v7186_v16 = vsub.f32 %v3073_v0, %v7176_v1 }
 0x2e2   : > { %5475 = vmatprep.subr.mxu0 %v7039_v43  ;;  %5533 = vmatprep.subr.mxu1 %v6966_v14 }
 0x2e3   : > { %5476 = vmatpush3.msra.mxu0 %v7039_v43  ;;  %5534 = vmatpush3.msra.mxu1 %v6966_v14  ;;  %v3067_v43 = vpop.permute.xlu1 %3066  ;;  %v7192_v14 = vand.u32 4294901760, %v3071_v27 }
 0x2e4   : > { %5477 = vmatprep.subr.mxu0 %v7056_v7  ;;  %5507 = vmatmul.mubr.f32.gmra.mxu1 %v2396_v38 }
 0x2e5   : > { %5535 = vmatprep.subr.mxu1 %v6976_v2  ;;  %5478 = vmatpush3.msra.mxu0 %v7056_v7  ;;  %v7197_v7 = vand.u32 4294901760, %v3069_v34  ;;  %v7209_v41 = vsub.f32 %v3071_v27, %v7192_v14 }
 0x2e6   : > { %5536 = vmatpush3.msra.mxu1 %v6976_v2  ;;  %5547 = vmatprep.mubr.f32.mxu1 %v7043_v62  ;;  %v7202_v2 = vand.u32 4294901760, %v7186_v16 }
 0x2e7   : > { %5479 = vmatprep.subr.mxu0 %v7069_v29  ;;  %5537 = vmatprep.subr.mxu1 %v6985_v20  ;;  %v7215_v10 = vsub.f32 %v3069_v34, %v7197_v7  ;;  %v3063_v13 = vpop.permute.xlu1 %3062 }
 0x2e8   : > { %5480 = vmatpush3.msra.mxu0 %v7069_v29  ;;  %5538 = vmatpush3.msra.mxu1 %v6985_v20  ;;  %v3065_v20 = vpop.permute.xlu0 %3064  ;;  %v3083_v29 = vsel %vm608_vm2, %v3051_v35, 0  ;;  %v7244_v46 = vand.u32 4294901760, %v3063_v13 }
 0x2e9   : > { %5482 = vmatmul.mubr.f32.vlgmr.msra.gmra.mxu0 %v7116_v37  ;;  %5509 = vmatprep.subr.mxu0 %v6992_v51  ;;  %v7225_v58 = vand.u32 4294901760, %v3083_v29  ;;  %v7234_v53 = vand.u32 4294901760, %v3065_v20  ;;  %v7237_v47 = vand.u32 4294901760, %v7215_v10 }
 0x2ea   : > { %5539 = vmatprep.subr.mxu1 %v7000_v45  ;;  %5484 = vmatprep.mubr.f32.mxu0 %v7121_v15  ;;  %v7269_v28 = vsub.f32 %v3063_v13, %v7244_v46 }
 0x2eb   : > { %5510 = vmatpush3.msra.mxu0 %v6992_v51  ;;  %5540 = vmatpush3.msra.mxu1 %v7000_v45  ;;  %v7219_v51 = vand.u32 4294901760, %v3067_v43  ;;  %v3227_v45 = vsub.f32 %v7186_v16, %v7202_v2  ;;  %v3059_v30 = vpop.permute.xlu1 %3058 }
 0x2ec   : > { %5511 = vmatprep.subr.mxu0 %v7005_v24  ;;  %5541 = vmatprep.subr.mxu1 %v7012_v49  ;;  %v3061_v60 = vpop.permute.xlu0 %3060  ;;  %v7300_v54 = vand.u32 4294901760, %v7269_v28 }
 0x2ed   : > { %5512 = vmatpush3.msra.mxu0 %v7005_v24  ;;  %5542 = vmatpush3.msra.mxu1 %v7012_v49  ;;  %v7230_v24 = vand.u32 4294901760, %v7209_v41  ;;  %v5891_v49 = vpop.eup %5890  ;;  %v3228_v12 = vand.u32 4294901760, %v3227_v45 }
 0x2ee   : > { %5485 = vmatmul.mubr.f32.gmra.mxu0 %v7132_v39  ;;  %5513 = vmatprep.subr.mxu0 %v7021_v31  ;;  %v5893_v55 = vpop.eup %5892  ;;  %v3055_v6 = vmul.f32 %v5891_v49, %v6637_v21  ;;  %v7271_v21 = vand.u32 4294901760, %v3059_v30 }
 0x2ef   : > { %5543 = vmatprep.subr.mxu1 %v7031_v61  ;;  %5514 = vmatpush3.msra.mxu0 %v7021_v31  ;;  %v7242_v31 = vsub.f32 %v3067_v43, %v7219_v51  ;;  %v3234_v40 = vsub.f32 %v7209_v41, %v7230_v24  ;;  %v3057_v23 = vmul.f32 %v5893_v55, %v6645_v18 }
 0x2f0   : > { %5525 = vmatprep.mubr.f32.mxu0 %v7043_v62  ;;  %5544 = vmatpush3.msra.mxu1 %v7031_v61  ;;  %v3053_v62 = vmul.f32 %v5889_v4, %v6656_v36  ;;  %v7250_v61 = vsub.f32 %v3083_v29, %v7225_v58  ;;  %v7260_v36 = vsub.f32 %v3065_v20, %v7234_v53  ;;  %v3089_v63 = vsel %vm608_vm2, %v3055_v6, 0 }
 0x2f1   : > { %5515 = vmatprep.subr.mxu0 %v7036_v5  ;;  %5545 = vmatprep.subr.mxu1 %v7045_v56  ;;  %v3235_v18 = vand.u32 4294901760, %v3234_v40  ;;  %v3092_v59 = vsel %vm608_vm2, %v3057_v23, 0  ;;  %v7295_v38 = vsub.f32 %v3059_v30, %v7271_v21  ;;  %v7306_v25 = vand.u32 4294901760, %v3089_v63 }
 0x2f2   : > { %5516 = vmatpush3.msra.mxu0 %v7036_v5  ;;  %5546 = vmatpush3.msra.mxu1 %v7045_v56  ;;  %v7262_v5 = vand.u32 4294901760, %v3061_v60  ;;  %v3241_v56 = vsub.f32 %v7215_v10, %v7237_v47  ;;  %v3086_v37 = vsel %vm608_vm2, %v3053_v62, 0  ;;  %v3169_v15 = vand.u32 4294901760, %v7250_v61 }
 0x2f3   : > { %5517 = vmatprep.subr.mxu0 %v7053_v3  ;;  %5548 = vmatmul.mubr.f32.vlgmr.msra.gmra.mxu1 %v7105_v17  ;;  %v7291_v42 = vand.u32 4294901760, %v3086_v37  ;;  %v7317_v26 = vand.u32 4294901760, %v3092_v59  ;;  %v7330_v19 = vsub.f32 %v3089_v63, %v7306_v25  ;;  %vm3813_vm2 = vcmask 130048  }
 0x2f4   : > { %5518 = vmatpush3.msra.mxu0 %v7053_v3  ;;  %5550 = vmatprep.mubr.f32.mxu1 %v7108_v22  ;;  %v7274_v3 = vand.u32 4294901760, %v7242_v31  ;;  %v7285_v8 = vsub.f32 %v3061_v60, %v7262_v5  ;;  %v3242_v39 = vand.u32 4294901760, %v3241_v56  ;;  %v3170_v9 = vsub.f32 %v7250_v61, %v3169_v15 }
 0x2f5   : > { %5519 = vmatprep.subr.mxu0 %v7063_v48  ;;  %5575 = vmatprep.subr.mxu1 %v3228_v12  ;;  %v7323_v0 = vsub.f32 %v3086_v37, %v7291_v42  ;;  %v3189_v20 = vand.u32 4294901760, %v7330_v19 }
 0x2f6   : > { %5520 = vmatpush3.msra.mxu0 %v7063_v48  ;;  %5576 = vmatpush3.msra.mxu1 %v3228_v12  ;;  %v7288_v48 = vand.u32 4294901760, %v7260_v36  ;;  %v3171_v11 = vand.u32 4294901760, %v3170_v9 }
 0x2f7   : > { %5521 = vmatprep.subr.mxu0 %v7079_v33  ;;  %5551 = vmatmul.mubr.f32.gmra.mxu1 %v7118_v32  ;;  %v3179_v43 = vand.u32 4294901760, %v7323_v0  ;;  %v3190_v49 = vsub.f32 %v7330_v19, %v3189_v20 }
 0x2f8   : > { %5522 = vmatpush3.msra.mxu0 %v7079_v33  ;;  %5591 = vmatprep.mubr.f32.mxu1 %v7225_v58  ;;  %v3248_v33 = vsub.f32 %v7242_v31, %v7274_v3  ;;  %v3255_v44 = vsub.f32 %v7260_v36, %v7288_v48 }
 0x2f9   : > { %5523 = vmatprep.subr.mxu0 %v7088_v57  ;;  %5577 = vmatprep.subr.mxu1 %v3235_v18  ;;  %v3180_v13 = vsub.f32 %v7323_v0, %v3179_v43  ;;  %v3191_v12 = vand.u32 4294901760, %v3190_v49 }
 0x2fa   : > { %5524 = vmatpush3.msra.mxu0 %v7088_v57  ;;  %5578 = vmatpush3.msra.mxu1 %v3235_v18  ;;  %v7315_v57 = vand.u32 4294901760, %v7285_v8  ;;  %v3249_v52 = vand.u32 4294901760, %v3248_v33  ;;  %v3256_v34 = vand.u32 4294901760, %v3255_v44 }
 0x2fb   : > { %5526 = vmatmul.mubr.f32.vlgmr.msra.gmra.mxu0 %v7105_v17  ;;  %5553 = vmatprep.subr.mxu0 %v7176_v1  ;;  %v3262_v17 = vsub.f32 %v7269_v28, %v7300_v54  ;;  %v3181_v55 = vand.u32 4294901760, %v3180_v13 }
 0x2fc   : > { %5528 = vmatprep.mubr.f32.mxu0 %v7108_v22  ;;  %5554 = vmatpush3.msra.mxu0 %v7176_v1  ;;  %v7326_v22 = vand.u32 4294901760, %v7295_v38  ;;  %v3269_v50 = vsub.f32 %v7285_v8, %v7315_v57 }
 0x2fd   : > { %5555 = vmatprep.subr.mxu0 %v7192_v14  ;;  %5579 = vmatprep.subr.mxu1 %v3242_v39  ;;  %v3263_v27 = vand.u32 4294901760, %v3262_v17 }
 0x2fe   : > { %5556 = vmatpush3.msra.mxu0 %v7192_v14  ;;  %5580 = vmatpush3.msra.mxu1 %v3242_v39  ;;  %v3276_v35 = vsub.f32 %v7295_v38, %v7326_v22  ;;  %v3270_v29 = vand.u32 4294901760, %v3269_v50 }
 0x2ff   : > { %5529 = vmatmul.mubr.f32.gmra.mxu0 %v7118_v32  ;;  %5557 = vmatprep.subr.mxu0 %v7197_v7  ;;  %v7342_v32 = vsub.f32 %v3092_v59, %v7317_v26 }
 0x300   : > { %5558 = vmatpush3.msra.mxu0 %v7197_v7  ;;  %5569 = vmatprep.mubr.f32.mxu0 %v3171_v11  ;;  %v3277_v45 = vand.u32 4294901760, %v3276_v35 }
 0x301   : > { %5559 = vmatprep.subr.mxu0 %v7219_v51  ;;  %5581 = vmatprep.subr.mxu1 %v3249_v52  ;;  %v3199_v4 = vand.u32 4294901760, %v7342_v32 }
 0x302   : > { %5560 = vmatpush3.msra.mxu0 %v7219_v51  ;;  %5582 = vmatpush3.msra.mxu1 %v3249_v52 }
 0x303   : > { %5561 = vmatprep.subr.mxu0 %v7234_v53  ;;  %5583 = vmatprep.subr.mxu1 %v3256_v34  ;;  %v3200_v60 = vsub.f32 %v7342_v32, %v3199_v4 }
 0x304   : > { %5562 = vmatpush3.msra.mxu0 %v7234_v53  ;;  %5584 = vmatpush3.msra.mxu1 %v3256_v34 }
 0x305   : > { %5563 = vmatprep.subr.mxu0 %v7244_v46  ;;  %5585 = vmatprep.subr.mxu1 %v3263_v27  ;;  %v3201_v62 = vand.u32 4294901760, %v3200_v60 }
 0x306   : > { %5564 = vmatpush3.msra.mxu0 %v7244_v46  ;;  %5586 = vmatpush3.msra.mxu1 %v3263_v27 }
 0x307   : > { %5565 = vmatprep.subr.mxu0 %v7262_v5  ;;  %5587 = vmatprep.subr.mxu1 %v3270_v29 }
 0x308   : > { %5566 = vmatpush3.msra.mxu0 %v7262_v5  ;;  %5588 = vmatpush3.msra.mxu1 %v3270_v29 }
 0x309   : > { %5567 = vmatprep.subr.mxu0 %v7271_v21  ;;  %5589 = vmatprep.subr.mxu1 %v3277_v45 }
 0x30a   : > { %5568 = vmatpush3.msra.mxu0 %v7271_v21  ;;  %5590 = vmatpush3.msra.mxu1 %v3277_v45 }
 0x30b   : > { %5570 = vmatmul.mubr.f32.vlgmr.msra.gmra.mxu0 %v3181_v55  ;;  %5597 = vmatprep.subr.mxu0 %v7186_v16 }
 0x30c   : > { %5572 = vmatprep.mubr.f32.mxu0 %v3191_v12  ;;  %5598 = vmatpush3.msra.mxu0 %v7186_v16 }
 0x30d   : > { %5599 = vmatprep.subr.mxu0 %v7209_v41  ;;  %5592 = vmatmul.mubr.f32.vlgmr.msra.gmra.mxu1 %v7291_v42 }
 0x30e   : > { %5600 = vmatpush3.msra.mxu0 %v7209_v41  ;;  %5619 = vmatprep.subr.mxu1 %v7176_v1 }
 0x30f   : > { %5573 = vmatmul.mubr.f32.gmra.mxu0 %v3201_v62  ;;  %5594 = vmatprep.mubr.f32.mxu1 %v7306_v25 }
 0x310   : > { %5601 = vmatprep.subr.mxu0 %v7215_v10  ;;  %5620 = vmatpush3.msra.mxu1 %v7176_v1 }
 0x311   : > { %5602 = vmatpush3.msra.mxu0 %v7215_v10  ;;  %5613 = vmatprep.mubr.f32.mxu0 %v7250_v61 }
 0x312   : > { %5621 = vmatprep.subr.mxu1 %v7192_v14  ;;  %5603 = vmatprep.subr.mxu0 %v7242_v31 }
 0x313   : > { %5622 = vmatpush3.msra.mxu1 %v7192_v14  ;;  %5604 = vmatpush3.msra.mxu0 %v7242_v31 }
 0x314   : > { %5595 = vmatmul.mubr.f32.gmra.mxu1 %v7317_v26  ;;  %5623 = vmatprep.subr.mxu1 %v7197_v7  ;;  %v5197_v16 = vpop.f32.mrf.mxu1 }
 0x315   : > { %5605 = vmatprep.subr.mxu0 %v7260_v36  ;;  %5624 = vmatpush3.msra.mxu1 %v7197_v7 }
 0x316   : > { %5635 = vmatprep.mubr.f32.mxu1 %v3169_v15  ;;  %5606 = vmatpush3.msra.mxu0 %v7260_v36  ;;  %v897_v41 = vpop.f32.mrf.mxu1 }
 0x317   : > { %5625 = vmatprep.subr.mxu1 %v7219_v51  ;;  %5607 = vmatprep.subr.mxu0 %v7269_v28 }
 0x318   : > { %5626 = vmatpush3.msra.mxu1 %v7219_v51  ;;  %5608 = vmatpush3.msra.mxu0 %v7269_v28  ;;  %v5200_v30 = vpop.f32.mrf.mxu1 }
 0x319   : > { %5627 = vmatprep.subr.mxu1 %v7234_v53  ;;  %5609 = vmatprep.subr.mxu0 %v7285_v8 }
 0x31a   : > { %5628 = vmatpush3.msra.mxu1 %v7234_v53  ;;  %5610 = vmatpush3.msra.mxu0 %v7285_v8  ;;  %v909_v56 = vpop.f32.mrf.mxu1 }
 0x31b   : > { %5629 = vmatprep.subr.mxu1 %v7244_v46  ;;  %5611 = vmatprep.subr.mxu0 %v7295_v38 }
 0x31c   : > { %5630 = vmatpush3.msra.mxu1 %v7244_v46  ;;  %5612 = vmatpush3.msra.mxu0 %v7295_v38  ;;  %v5175_v10 = vpop.f32.mrf.mxu0 }
 0x31d   : > { %5631 = vmatprep.subr.mxu1 %v7262_v5  ;;  %5614 = vmatmul.mubr.f32.vlgmr.msra.gmra.mxu0 %v7323_v0  ;;  %v904_v31 = vadd.f32 %v5197_v16, %v5175_v10 }
 0x31e   : > { %5632 = vmatpush3.msra.mxu1 %v7262_v5  ;;  %5641 = vmatprep.subr.mxu0 %v7202_v2  ;;  %v756_v61 = vpop.f32.mrf.mxu0 }
 0x31f   : > { %5616 = vmatprep.mubr.f32.mxu0 %v7330_v19  ;;  %5633 = vmatprep.subr.mxu1 %v7271_v21  ;;  %v898_v40 = vadd.f32 %v897_v41, %v756_v61 }
 0x320   : > { %5642 = vmatpush3.msra.mxu0 %v7202_v2  ;;  %5634 = vmatpush3.msra.mxu1 %v7271_v21 }
 0x321   : > { %5643 = vmatprep.subr.mxu0 %v7230_v24  ;;  %5636 = vmatmul.mubr.f32.vlgmr.msra.gmra.mxu1 %v3179_v43  ;;  %v5178_v6 = vpop.f32.mrf.mxu0 }
 0x322   : > { %5644 = vmatpush3.msra.mxu0 %v7230_v24  ;;  %5663 = vmatprep.subr.mxu1 %v7176_v1  ;;  %v916_v36 = vadd.f32 %v5200_v30, %v5178_v6 }
 0x323   : > { %5617 = vmatmul.mubr.f32.gmra.mxu0 %v7342_v32  ;;  %5638 = vmatprep.mubr.f32.mxu1 %v3189_v20  ;;  %v776_v2 = vpop.f32.mrf.mxu0 }
 0x324   : > { %5645 = vmatprep.subr.mxu0 %v7237_v47  ;;  %5664 = vmatpush3.msra.mxu1 %v7176_v1  ;;  %v910_v23 = vadd.f32 %v909_v56, %v776_v2 }
 0x325   : > { %5646 = vmatpush3.msra.mxu0 %v7237_v47  ;;  %5657 = vmatprep.mubr.f32.mxu0 %v7225_v58 }
 0x326   : > { %5665 = vmatprep.subr.mxu1 %v7192_v14  ;;  %5647 = vmatprep.subr.mxu0 %v7274_v3  ;;  %v5241_v1 = vpop.f32.mrf.mxu1 }
 0x327   : > { %5666 = vmatpush3.msra.mxu1 %v7192_v14  ;;  %5648 = vmatpush3.msra.mxu0 %v7274_v3 }
 0x328   : > { %5639 = vmatmul.mubr.f32.gmra.mxu1 %v3199_v4  ;;  %5667 = vmatprep.subr.mxu1 %v7197_v7 }
 0x329   : > { %5649 = vmatprep.subr.mxu0 %v7288_v48  ;;  %5668 = vmatpush3.msra.mxu1 %v7197_v7 }
 0x32a   : > { %5679 = vmatprep.mubr.f32.mxu1 %v7225_v58  ;;  %5650 = vmatpush3.msra.mxu0 %v7288_v48 }
 0x32b   : > { %5669 = vmatprep.subr.mxu1 %v7219_v51  ;;  %5651 = vmatprep.subr.mxu0 %v7300_v54 }
 0x32c   : > { %5670 = vmatpush3.msra.mxu1 %v7219_v51  ;;  %5652 = vmatpush3.msra.mxu0 %v7300_v54  ;;  %v1105_v51 = vpop.f32.mrf.mxu1 }
 0x32d   : > { %5671 = vmatprep.subr.mxu1 %v7234_v53  ;;  %5653 = vmatprep.subr.mxu0 %v7315_v57 }
 0x32e   : > { %5672 = vmatpush3.msra.mxu1 %v7234_v53  ;;  %5654 = vmatpush3.msra.mxu0 %v7315_v57 }
 0x32f   : > { %5673 = vmatprep.subr.mxu1 %v7244_v46  ;;  %5655 = vmatprep.subr.mxu0 %v7326_v22 }
 0x330   : > { %5674 = vmatpush3.msra.mxu1 %v7244_v46  ;;  %5656 = vmatpush3.msra.mxu0 %v7326_v22  ;;  %v5219_v14 = vpop.f32.mrf.mxu0  ;;  %v5244_v46 = vpop.f32.mrf.mxu1 }
 0x331   : > { %5675 = vmatprep.subr.mxu1 %v7262_v5  ;;  %5658 = vmatmul.mubr.f32.vlgmr.msra.gmra.mxu0 %v7291_v42  ;;  %v1011_v7 = vadd.f32 %v5219_v14, %v904_v31 }
 0x332   : > { %5676 = vmatpush3.msra.mxu1 %v7262_v5  ;;  %5660 = vmatprep.mubr.f32.mxu0 %v7306_v25  ;;  %v1003_v58 = vpop.f32.mrf.mxu0  ;;  %v1121_v18 = vpop.f32.mrf.mxu1 }
 0x333   : > { %5677 = vmatprep.subr.mxu1 %v7271_v21  ;;  %v1004_v24 = vadd.f32 %v1003_v58, %v898_v40  ;;  %v1114_v53 = vadd.f32 %v5241_v1, %v1011_v7 }
 0x334   : > { %5678 = vmatpush3.msra.mxu1 %v7271_v21 }
 0x335   : > { %5680 = vmatmul.mubr.f32.vlgmr.msra.gmra.mxu1 %v7291_v42  ;;  %5661 = vmatmul.mubr.f32.gmra.mxu0 %v7317_v26  ;;  %v1106_v47 = vadd.f32 %v1105_v51, %v1004_v24 }
 0x336   : > { %5682 = vmatprep.mubr.f32.mxu1 %v7306_v25  ;;  %v5222_v28 = vpop.f32.mrf.mxu0 }
 0x337   : > { %v1025_v5 = vadd.f32 %v5222_v28, %v916_v36 }
 0x338   : > { %v1017_v3 = vpop.f32.mrf.mxu0 }
 0x339   : > { %5683 = vmatmul.mubr.f32.gmra.mxu1 %v7317_v26  ;;  %v1018_v37 = vadd.f32 %v1017_v3, %v910_v23  ;;  %v1130_v15 = vadd.f32 %v5244_v46, %v1025_v5 }
 0x33b   : > { %v1122_v63 = vadd.f32 %v1121_v18, %v1018_v37  ;;  %v5285_v8 = vpop.f32.mrf.mxu1 }
 0x33d   : > { %v1321_v21 = vpop.f32.mrf.mxu1 }
 0x340   : > { %v5288_v33 = vpop.f32.mrf.mxu1 }
 0x342   : > { %v1333_v52 = vpop.f32.mrf.mxu1 }
 0x345   : > { %v5263_v39 = vpop.f32.mrf.mxu0 }
 0x346   : > { %v1231_v48 = vadd.f32 %v5263_v39, %v1114_v53 }
 0x347   : > { %v1224_v59 = vpop.f32.mrf.mxu0 }
 0x348   : > { %v7451_v42 = vadd.f32 %v5285_v8, %v1231_v48  ;;  %v1225_v38 = vadd.f32 %v1224_v59, %v1106_v47 }
 0x34a   : > { %v7453_v54 = vadd.f32 %v1321_v21, %v1225_v38  ;;  %v5266_v9 = vpop.f32.mrf.mxu0 }
 0x34b   : > { %v1243_v25 = vadd.f32 %v5266_v9, %v1130_v15 }
 0x34c   : > { %v1236_v44 = vpop.f32.mrf.mxu0 }
 0x34d   : > { %v7455_v57 = vadd.f32 %v5288_v33, %v1243_v25  ;;  %v1237_v26 = vadd.f32 %v1236_v44, %v1122_v63 }
 0x34f   : > { %v7457_v17 = vadd.f32 %v1333_v52, %v1237_v26  ;;  %v5329_v0 = vpop.f32.mrf.mxu1 }
 0x351   : > { %v1708_v11 = vpop.f32.mrf.mxu1 }
 0x354   : > { %v5332_v34 = vpop.f32.mrf.mxu1 }
 0x356   : > { %v1720_v27 = vpop.f32.mrf.mxu1 }
 0x359   : > { %v5307_v22 = vpop.f32.mrf.mxu0 }
 0x35a   : > { %v1715_v45 = vadd.f32 %v5329_v0, %v5307_v22 }
 0x35b   : > { %v1567_v19 = vpop.f32.mrf.mxu0 }
 0x35c   : > { %v1709_v49 = vadd.f32 %v1708_v11, %v1567_v19 }
 0x35e   : > { %v5310_v50 = vpop.f32.mrf.mxu0 }
 0x35f   : > { %v1727_v16 = vadd.f32 %v5332_v34, %v5310_v50 }
 0x360   : > { %v1587_v35 = vpop.f32.mrf.mxu0 }
 0x361   : > { %v1721_v31 = vadd.f32 %v1720_v27, %v1587_v35 }
 0x363   : > { %v5373_v43 = vpop.f32.mrf.mxu1 }
 0x365   : > { %v1916_v20 = vpop.f32.mrf.mxu1 }
 0x368   : > { %v5376_v13 = vpop.f32.mrf.mxu1 }
 0x36a   : > { %v1932_v55 = vpop.f32.mrf.mxu1 }
 0x36d   : > { %v5351_v32 = vpop.f32.mrf.mxu0 }
 0x36e   : > { %v1822_v60 = vadd.f32 %v5351_v32, %v1715_v45 }
 0x36f   : > { %v1814_v29 = vpop.f32.mrf.mxu0 }
 0x370   : > { %v1815_v12 = vadd.f32 %v1814_v29, %v1709_v49  ;;  %v1925_v10 = vadd.f32 %v5373_v43, %v1822_v60 }
 0x372   : > { %v5354_v4 = vpop.f32.mrf.mxu0  ;;  %v1917_v36 = vadd.f32 %v1916_v20, %v1815_v12 }
 0x373   : > { %v1836_v61 = vadd.f32 %v5354_v4, %v1727_v16 }
 0x374   : > { %v1828_v41 = vpop.f32.mrf.mxu0 }
 0x375   : > { %v1829_v56 = vadd.f32 %v1828_v41, %v1721_v31  ;;  %v1941_v14 = vadd.f32 %v5376_v13, %v1836_v61 }
 0x377   : > { %v5417_v62 = vpop.f32.mrf.mxu1  ;;  %v1933_v53 = vadd.f32 %v1932_v55, %v1829_v56 }
 0x379   : > { %v2132_v40 = vpop.f32.mrf.mxu1 }
 0x37c   : > { %v5420_v7 = vpop.f32.mrf.mxu1 }
 0x37e   : > { %v2144_v5 = vpop.f32.mrf.mxu1 }
 0x381   : > { %v5395_v30 = vpop.f32.mrf.mxu0 }
 0x382   : > { %v2042_v6 = vadd.f32 %v5395_v30, %v1925_v10 }
 0x383   : > { %v2035_v2 = vpop.f32.mrf.mxu0 }
 0x384   : > { %v2139_v23 = vadd.f32 %v5417_v62, %v2042_v6  ;;  %v2036_v1 = vadd.f32 %v2035_v2, %v1917_v36 }
 0x386   : > { %v2133_v51 = vadd.f32 %v2132_v40, %v2036_v1  ;;  %v5398_v58 = vpop.f32.mrf.mxu0  ;;  %3766 = vrot.lane.b32.xlu1 %v2139_v23, %s7740_s22 }
 0x387   : > { %v2054_v24 = vadd.f32 %v5398_v58, %v1941_v14 }
 0x388   : > { %v2047_v47 = vpop.f32.mrf.mxu0  ;;  %3764 = vrot.lane.b32.xlu0 %v2133_v51, %s7740_s22  ;;  %v3837_v51 = vld [vmem:[%s7732_s7 + $0x18] sm:$0xff] }
 0x389   : > { %v2151_v46 = vadd.f32 %v5420_v7, %v2054_v24  ;;  %v2048_v28 = vadd.f32 %v2047_v47, %v1933_v53  ;;  %v7466_v58 = vand.u32 4294901760, %v3837_v51  ;;  %v3836_v53 = vld [vmem:[%s7732_s7 + $0x10] sm:$0xff] }
 0x38b   : > { %v2145_v3 = vadd.f32 %v2144_v5, %v2048_v28  ;;  %3770 = vrot.lane.b32.xlu1 %v2151_v46, %s7740_s22  ;;  %v5461_v37 = vpop.f32.mrf.mxu1  ;;  %v7472_v47 = vsub.f32 %v3837_v51, %v7466_v58  ;;  %v7474_v46 = vand.u32 4294901760, %v3836_v53  ;;  %5685 = vmatprep.subr.mxu0 %v7466_v58  ;;  %v3835_v5 = vld [vmem:[%s7732_s7 + $0x8] sm:$0xff] }
 0x38c   : > { %5686 = vmatpush3.msra.mxu0 %v7466_v58 }
 0x38d   : > { %3768 = vrot.lane.b32.xlu0 %v2145_v3, %s7740_s22  ;;  %v2511_v15 = vpop.f32.mrf.mxu1  ;;  %v7482_v3 = vand.u32 4294901760, %v7472_v47  ;;  %5687 = vmatprep.subr.mxu0 %v7474_v46 }
 0x38e   : > { %5688 = vmatpush3.msra.mxu0 %v7474_v46 }
 0x390   : > { %v5464_v63 = vpop.f32.mrf.mxu1 }
 0x392   : > { %v2523_v39 = vpop.f32.mrf.mxu1 }
 0x395   : > { %v5439_v18 = vpop.f32.mrf.mxu0 }
 0x396   : > { %v2518_v44 = vadd.f32 %v5461_v37, %v5439_v18  ;;  %v7485_v37 = vsub.f32 %v3836_v53, %v7474_v46 }
 0x397   : > { %v2370_v8 = vpop.f32.mrf.mxu0 }
 0x398   : > { %v2512_v0 = vadd.f32 %v2511_v15, %v2370_v8  ;;  %v7487_v15 = vand.u32 4294901760, %v3835_v5  ;;  %v3834_v8 = vld [vmem:[%s7732_s7] sm:$0xff] }
 0x39a   : > { %v5442_v21 = vpop.f32.mrf.mxu0  ;;  %5689 = vmatprep.subr.mxu0 %v7487_v15 }
 0x39b   : > { %v2530_v19 = vadd.f32 %v5464_v63, %v5442_v21  ;;  %v7497_v21 = vand.u32 4294901760, %v7485_v37  ;;  %5690 = vmatpush3.msra.mxu0 %v7487_v15 }
 0x39c   : > { %v2390_v59 = vpop.f32.mrf.mxu0 }
 0x39d   : > { %v2524_v27 = vadd.f32 %v2523_v39, %v2390_v59  ;;  %v3995_v39 = vsub.f32 %v7472_v47, %v7482_v3  ;;  %v7502_v59 = vand.u32 4294901760, %v3834_v8 }
 0x39f   : > { %v5505_v48 = vpop.f32.mrf.mxu1  ;;  %5691 = vmatprep.subr.mxu0 %v7502_v59 }
 0x3a0   : > { %5692 = vmatpush3.msra.mxu0 %v7502_v59 }
 0x3a1   : > { %v2719_v38 = vpop.f32.mrf.mxu1  ;;  %5713 = vmatprep.subr.mxu0 %v7472_v47 }
 0x3a4   : > { %v5508_v9 = vpop.f32.mrf.mxu1 }
 0x3a6   : > { %v2735_v26 = vpop.f32.mrf.mxu1 }
 0x3a9   : > { %v5483_v33 = vpop.f32.mrf.mxu0 }
 0x3aa   : > { %v2625_v22 = vadd.f32 %v5483_v33, %v2518_v44  ;;  %v3996_v33 = vand.u32 4294901760, %v3995_v39  ;;  %v7512_v44 = vsub.f32 %v3834_v8, %v7502_v59 }
 0x3ab   : > { %v2617_v25 = vpop.f32.mrf.mxu0 }
 0x3ac   : > { %v2618_v34 = vadd.f32 %v2617_v25, %v2512_v0  ;;  %v2728_v35 = vadd.f32 %v5505_v48, %v2625_v22  ;;  %v7500_v48 = vsub.f32 %v3835_v5, %v7487_v15  ;;  %5699 = vmatprep.subr.mxu1 %v3996_v33 }
 0x3ad   : > { %5700 = vmatpush3.msra.mxu1 %v3996_v33  ;;  %v4809_v33 = vld [vmem:[%s7731_s6] ss:$0 sm:$0xff] }
 0x3ae   : > { %v5486_v52 = vpop.f32.mrf.mxu0  ;;  %v2720_v45 = vadd.f32 %v2719_v38, %v2618_v34  ;;  %v7509_v25 = vand.u32 4294901760, %v7500_v48  ;;  %v7519_v34 = vand.u32 4294901760, %v7512_v44 }
 0x3af   : > { %v2639_v43 = vadd.f32 %v5486_v52, %v2530_v19 }
 0x3b0   : > { %v2631_v50 = vpop.f32.mrf.mxu0  ;;  %v4009_v19 = vsub.f32 %v7500_v48, %v7509_v25 }
 0x3b1   : > { %v2632_v29 = vadd.f32 %v2631_v50, %v2524_v27  ;;  %v2744_v60 = vadd.f32 %v5508_v9, %v2639_v43  ;;  %v4002_v9 = vsub.f32 %v7485_v37, %v7497_v21 }
 0x3b2   : > { %v4010_v43 = vand.u32 4294901760, %v4009_v19 }
 0x3b3   : > { %v5549_v11 = vpop.f32.mrf.mxu1  ;;  %v2736_v10 = vadd.f32 %v2735_v26, %v2632_v29 }
 0x3b5   : > { %v2935_v32 = vpop.f32.mrf.mxu1 }
 0x3b7   : > { %v5552_v12 = vpop.f32.mrf.mxu1 }
 0x3b9   : > { %v2947_v40 = vpop.f32.mrf.mxu1 }
 0x3bb   : > { %v5527_v20 = vpop.f32.mrf.mxu0 }
 0x3bc   : > { %v2845_v13 = vadd.f32 %v5527_v20, %v2728_v35  ;;  %v4016_v35 = vsub.f32 %v7512_v44, %v7519_v34 }
 0x3bd   : > { %v2838_v4 = vpop.f32.mrf.mxu0 }
 0x3be   : > { %v2942_v49 = vadd.f32 %v5549_v11, %v2845_v13  ;;  %v2839_v55 = vadd.f32 %v2838_v4, %v2720_v45  ;;  %v4003_v11 = vand.u32 4294901760, %v4002_v9  ;;  %v4017_v4 = vand.u32 4294901760, %v4016_v35 }
 0x3bf   : > { %v5530_v62 = vpop.f32.mrf.mxu0 }
 0x3c0   : > { %v2936_v16 = vadd.f32 %v2935_v32, %v2839_v55  ;;  %v2857_v41 = vadd.f32 %v5530_v62, %v2744_v60  ;;  %3782 = vrot.lane.b32.xlu1 %v2942_v49, %s5996_s26  ;;  %5701 = vmatprep.subr.mxu1 %v4003_v11 }
 0x3c1   : > { %v2850_v31 = vpop.f32.mrf.mxu0  ;;  %5702 = vmatpush3.msra.mxu1 %v4003_v11 }
 0x3c2   : > { %v2954_v61 = vadd.f32 %v5552_v12, %v2857_v41  ;;  %v2851_v30 = vadd.f32 %v2850_v31, %v2736_v10  ;;  %3780 = vrot.lane.b32.xlu0 %v2936_v16, %s5996_s26  ;;  %5703 = vmatprep.subr.mxu1 %v4010_v43 }
 0x3c3   : > { %5704 = vmatpush3.msra.mxu1 %v4010_v43 }
 0x3c4   : > { %v2948_v6 = vadd.f32 %v2947_v40, %v2851_v30  ;;  %3786 = vrot.lane.b32.xlu1 %v2954_v61, %s5996_s26  ;;  %5705 = vmatprep.subr.mxu1 %v4017_v4 }
 0x3c5   : > { %5706 = vmatpush3.msra.mxu1 %v4017_v4 }
 0x3c6   : > { %3784 = vrot.lane.b32.xlu0 %v2948_v6, %s5996_s26  ;;  %5727 = vmatprep.subr.mxu1 %v7466_v58 }
 0x3cb   : > { %v5571_v36 = vpop.f32.mrf.mxu0 }
 0x3cd   : > { %v3173_v56 = vpop.f32.mrf.mxu0  ;;  %v5593_v2 = vpop.f32.mrf.mxu1 }
 0x3ce   : > { %v3321_v38 = vadd.f32 %v5593_v2, %v5571_v36 }
 0x3cf   : > { %v5574_v23 = vpop.f32.mrf.mxu0  ;;  %v3314_v1 = vpop.f32.mrf.mxu1 }
 0x3d0   : > { %v3315_v26 = vadd.f32 %v3314_v1, %v3173_v56 }
 0x3d1   : > { %v3193_v14 = vpop.f32.mrf.mxu0 }
 0x3d4   : > { %v5596_v7 = vpop.f32.mrf.mxu1 }
 0x3d5   : > { %v3333_v50 = vadd.f32 %v5596_v7, %v5574_v23 }
 0x3d6   : > { %v3326_v28 = vpop.f32.mrf.mxu1 }
 0x3d7   : > { %v3327_v29 = vadd.f32 %v3326_v28, %v3193_v14 }
 0x3dd   : > { %v5615_v24 = vpop.f32.mrf.mxu0 }
 0x3de   : > { %v3428_v22 = vadd.f32 %v5615_v24, %v3321_v38 }
 0x3df   : > { %v3420_v18 = vpop.f32.mrf.mxu0 }
 0x3e0   : > { %v3421_v27 = vadd.f32 %v3420_v18, %v3315_v26 }
 0x3e1   : > { %v5637_v63 = vpop.f32.mrf.mxu1 }
 0x3e2   : > { %v3531_v13 = vadd.f32 %v5637_v63, %v3428_v22 }
 0x3e3   : > { %v5618_v52 = vpop.f32.mrf.mxu0  ;;  %v3522_v0 = vpop.f32.mrf.mxu1 }
 0x3e4   : > { %v3442_v45 = vadd.f32 %v5618_v52, %v3333_v50  ;;  %v3523_v55 = vadd.f32 %v3522_v0, %v3421_v27 }
 0x3e5   : > { %v3434_v32 = vpop.f32.mrf.mxu0 }
 0x3e6   : > { %v3435_v60 = vadd.f32 %v3434_v32, %v3327_v29 }
 0x3e8   : > { %v5640_v20 = vpop.f32.mrf.mxu1 }
 0x3e9   : > { %v3547_v41 = vadd.f32 %v5640_v20, %v3442_v45 }
 0x3ea   : > { %v3538_v62 = vpop.f32.mrf.mxu1 }
 0x3eb   : > { %v3539_v30 = vadd.f32 %v3538_v62, %v3435_v60 }
 0x3f1   : > { %v5659_v49 = vpop.f32.mrf.mxu0 }
 0x3f2   : > { %v3648_v12 = vadd.f32 %v5659_v49, %v3531_v13 }
 0x3f3   : > { %v3641_v16 = vpop.f32.mrf.mxu0 }
 0x3f4   : > { %v3642_v10 = vadd.f32 %v3641_v16, %v3523_v55 }
 0x3f5   : > { %v5681_v31 = vpop.f32.mrf.mxu1  ;;  %v5662_v61 = vpop.f32.mrf.mxu0 }
 0x3f6   : > { %v3745_v40 = vadd.f32 %v5681_v31, %v3648_v12  ;;  %v3660_v6 = vadd.f32 %v5662_v61, %v3547_v41 }
 0x3f7   : > { %v3738_v36 = vpop.f32.mrf.mxu1  ;;  %v3653_v56 = vpop.f32.mrf.mxu0 }
 0x3f8   : > { %v3739_v2 = vadd.f32 %v3738_v36, %v3642_v10  ;;  %3798 = vrot.lane.b32.xlu1 %v3745_v40, %s5997_s28  ;;  %v3654_v23 = vadd.f32 %v3653_v56, %v3539_v30  ;;  %v3767_v24 = vpop.permute.xlu1 %3766 }
 0x3f9   : > { %v5684_v1 = vpop.f32.mrf.mxu1  ;;  %v3810_v38 = vsel %vm3808_vm0, %v7451_v42, %v3767_v24 }
 0x3fa   : > { %v3757_v14 = vadd.f32 %v5684_v1, %v3660_v6  ;;  %3796 = vrot.lane.b32.xlu0 %v3739_v2, %s5997_s28  ;;  %v3765_v53 = vpop.permute.xlu0 %3764 }
 0x3fb   : > { %v3750_v7 = vpop.f32.mrf.mxu1  ;;  %v3809_v52 = vsel %vm3808_vm0, %v7453_v54, %v3765_v53 }
 0x3fc   : > { %v3751_v51 = vadd.f32 %v3750_v7, %v3654_v23  ;;  %3802 = vrot.lane.b32.xlu1 %v3757_v14, %s5997_s28 }
 0x3fd   : > { %v3771_v28 = vpop.permute.xlu1 %3770 }
 0x3fe   : > { %3800 = vrot.lane.b32.xlu0 %v3751_v51, %s5997_s28  ;;  %v3812_v42 = vsel %vm3808_vm0, %v7455_v57, %v3771_v28  ;;  %s501_s28 = sand.u32 1, %s5978_s16  }
 0x3ff   : > { %v3769_v5 = vpop.permute.xlu0 %3768  ;;  %s4795_s30 = sshll.u32 %s501_s28, 5  ;;  %s7666_s22 = scalar_lea.sflag [#allocation4], %s501_s28 }
 0x400   : > { %v3811_v32 = vsel %vm3808_vm0, %v7457_v17, %v3769_v5  ;;  %s7621_s19 = scalar_lea.vmem [#allocation3], %s4795_s30  ;;  %s7662_s30 = scalar_lea.hbm %s7739_s14, %s4820_s2 }
 0x401   : > { %s4680_s21 = sshll.u32 %s7621_s19, 4  ;;  %s7656_s21 = int_to_ptr.vmem [resolvable:$true] %s4680_s21 }
 0x402   : > { %s5926_s0 = scalar_lea.vmem %s7656_s21, 512 }
 0x403   : > { %p5927_p11 = scmp.ne.s32.totalorder %s7656_s21, %s5926_s0 }
 0x405   : > { %p5928_p12 = pnand %p5927_p11, %p6116_p5 }
 0x407   : > { %p5929_p13 = pneg %p5928_p12 }
 0x432   : > { %v3783_v18 = vpop.permute.xlu1 %3782 }
 0x433   : > { %v3815_v9 = vsel %vm3813_vm2, %v3810_v38, %v3783_v18 }
 0x434   : > { %v3781_v63 = vpop.permute.xlu0 %3780 }
 0x435   : > { %v3814_v22 = vsel %vm3813_vm2, %v3809_v52, %v3781_v63 }
 0x436   : > { %v3787_v8 = vpop.permute.xlu1 %3786 }
 0x437   : > { %v3817_v27 = vsel %vm3813_vm2, %v3812_v42, %v3787_v8 }
 0x438   : > { %v3785_v39 = vpop.permute.xlu0 %3784 }
 0x439   : > { %v3816_v13 = vsel %vm3813_vm2, %v3811_v32, %v3785_v39 }
 0x46a   : > { %v3799_v26 = vpop.permute.xlu1 %3798 }
 0x46b   : > { %v3820_v0 = vsel %vm3818_vm3, %v3815_v9, %v3799_v26 }
 0x46c   : > { %v7535_v11 = vadd.f32 %v4809_v33, %v3820_v0  ;;  %v3797_v19 = vpop.permute.xlu0 %3796 }
 0x46d   : > { %v3819_v50 = vsel %vm3818_vm3, %v3814_v22, %v3797_v19 }
 0x46e   : > { %v3850_v43 = vsel %vm3845_vm5, %v7535_v11, 0  ;;  %v7543_v35 = vadd.f32 %v4809_v33, %v3819_v50  ;;  %v3803_v54 = vpop.permute.xlu1 %3802 }
 0x46f   : > { %v7547_v20 = vand.u32 4294901760, %v3850_v43  ;;  %v3822_v29 = vsel %vm3818_vm3, %v3817_v27, %v3803_v54 }
 0x470   : > { %v3847_v57 = vsel %vm3845_vm5, %v7543_v35, 0  ;;  %v7553_v45 = vadd.f32 %v4809_v33, %v3822_v29  ;;  %v3801_v4 = vpop.permute.xlu0 %3800 }
 0x471   : > { %v3938_v49 = vsub.f32 %v3850_v43, %v7547_v20  ;;  %v7556_v55 = vand.u32 4294901760, %v3847_v57  ;;  %v3821_v60 = vsel %vm3818_vm3, %v3816_v13, %v3801_v4 }
 0x472   : > { %v3856_v17 = vsel %vm3845_vm5, %v7553_v45, 0  ;;  %v7561_v12 = vadd.f32 %v4809_v33, %v3821_v60 }
 0x473   : > { %v3939_v62 = vand.u32 4294901760, %v3938_v49  ;;  %v3928_v16 = vsub.f32 %v3847_v57, %v7556_v55  ;;  %v7564_v41 = vand.u32 4294901760, %v3856_v17  ;;  %5707 = vmatprep.mubr.f32.mxu1 %v7556_v55 }
 0x474   : > { %v3853_v10 = vsel %vm3845_vm5, %v7561_v12, 0  ;;  %5708 = vmatmul.mubr.f32.vlgmr.msra.gmra.mxu1 %v7547_v20 }
 0x475   : > { %v3958_v31 = vsub.f32 %v3856_v17, %v7564_v41  ;;  %v3947_v61 = vand.u32 4294901760, %v3853_v10  ;;  %5728 = vmatpush3.msra.mxu1 %v7466_v58  ;;  %v3929_v30 = vand.u32 4294901760, %v3928_v16  ;;  %v3940_v40 = vsub.f32 %v3938_v49, %v3939_v62 }
 0x476   : > { %5729 = vmatprep.subr.mxu1 %v7474_v46 }
 0x477   : > { %v3948_v6 = vsub.f32 %v3853_v10, %v3947_v61  ;;  %5710 = vmatprep.mubr.f32.mxu1 %v3947_v61  ;;  %5730 = vmatpush3.msra.mxu1 %v7474_v46  ;;  %v3930_v36 = vsub.f32 %v3928_v16, %v3929_v30  ;;  %v3959_v56 = vand.u32 4294901760, %v3958_v31  ;;  %v3941_v1 = vand.u32 4294901760, %v3940_v40 }
 0x478   : > { %5711 = vmatmul.mubr.f32.gmra.mxu1 %v7564_v41  ;;  %5731 = vmatprep.subr.mxu1 %v7487_v15 }
 0x479   : > { %5732 = vmatpush3.msra.mxu1 %v7487_v15  ;;  %5735 = vmatprep.mubr.f32.mxu1 %v3929_v30  ;;  %v3931_v2 = vand.u32 4294901760, %v3930_v36  ;;  %v3949_v23 = vand.u32 4294901760, %v3948_v6  ;;  %v3960_v7 = vsub.f32 %v3958_v31, %v3959_v56 }
 0x47a   : > { %5733 = vmatprep.subr.mxu1 %v7502_v59 }
 0x47b   : > { %5693 = vmatprep.mubr.f32.mxu0 %v3931_v2  ;;  %5734 = vmatpush3.msra.mxu1 %v7502_v59  ;;  %v3950_v14 = vsub.f32 %v3948_v6, %v3949_v23  ;;  %v3961_v24 = vand.u32 4294901760, %v3960_v7  ;;  %v4811_v7 = vld [vmem:[%s7734_s9] ss:$0 sm:$0xff] }
 0x47c   : > { %5694 = vmatmul.mubr.f32.vlgmr.msra.gmra.mxu0 %v3941_v1  ;;  %5736 = vmatmul.mubr.f32.vlgmr.msra.gmra.mxu1 %v3939_v62 }
 0x47d   : > { %5714 = vmatpush3.msra.mxu0 %v7472_v47  ;;  %5755 = vmatprep.subr.mxu1 %v7466_v58  ;;  %v3951_v51 = vand.u32 4294901760, %v3950_v14 }
 0x47e   : > { %5715 = vmatprep.subr.mxu0 %v7485_v37  ;;  %5738 = vmatprep.mubr.f32.mxu1 %v3949_v23 }
 0x47f   : > { %5756 = vmatpush3.msra.mxu1 %v7466_v58  ;;  %5716 = vmatpush3.msra.mxu0 %v7485_v37 }
 0x480   : > { %5757 = vmatprep.subr.mxu1 %v7474_v46  ;;  %5696 = vmatprep.mubr.f32.mxu0 %v3951_v51 }
 0x481   : > { %5717 = vmatprep.subr.mxu0 %v7500_v48  ;;  %5758 = vmatpush3.msra.mxu1 %v7474_v46 }
 0x482   : > { %5697 = vmatmul.mubr.f32.gmra.mxu0 %v3961_v24  ;;  %5739 = vmatmul.mubr.f32.gmra.mxu1 %v3959_v56 }
 0x483   : > { %5718 = vmatpush3.msra.mxu0 %v7500_v48  ;;  %5759 = vmatprep.subr.mxu1 %v7487_v15 }
 0x484   : > { %5719 = vmatprep.subr.mxu0 %v7512_v44  ;;  %5721 = vmatprep.mubr.f32.mxu0 %v3928_v16 }
 0x485   : > { %5760 = vmatpush3.msra.mxu1 %v7487_v15  ;;  %5763 = vmatprep.mubr.f32.mxu1 %v7556_v55 }
 0x486   : > { %5720 = vmatpush3.msra.mxu0 %v7512_v44  ;;  %5761 = vmatprep.subr.mxu1 %v7502_v59 }
 0x487   : > { %5741 = vmatprep.subr.mxu0 %v7482_v3  ;;  %5762 = vmatpush3.msra.mxu1 %v7502_v59  ;;  %v4810_v59 = vld [vmem:[%s7733_s8] ss:$0 sm:$0xff] }
 0x488   : > { %5722 = vmatmul.mubr.f32.vlgmr.msra.gmra.mxu0 %v3938_v49  ;;  %5764 = vmatmul.mubr.f32.vlgmr.msra.gmra.mxu1 %v7547_v20 }
 0x489   : > { %5742 = vmatpush3.msra.mxu0 %v7482_v3  ;;  %5724 = vmatprep.mubr.f32.mxu0 %v3948_v6 }
 0x48a   : > { %5743 = vmatprep.subr.mxu0 %v7497_v21  ;;  %5766 = vmatprep.mubr.f32.mxu1 %v3947_v61 }
 0x48b   : > { %5744 = vmatpush3.msra.mxu0 %v7497_v21 }
 0x48c   : > { %5745 = vmatprep.subr.mxu0 %v7509_v25  ;;  %5725 = vmatmul.mubr.f32.gmra.mxu0 %v3958_v31 }
 0x48d   : > { %5746 = vmatpush3.msra.mxu0 %v7509_v25  ;;  %5767 = vmatmul.mubr.f32.gmra.mxu1 %v7564_v41 }
 0x48e   : > { %5747 = vmatprep.subr.mxu0 %v7519_v34  ;;  %5749 = vmatprep.mubr.f32.mxu0 %v7556_v55 }
 0x48f   : > { %5748 = vmatpush3.msra.mxu0 %v7519_v34 }
 0x490   : > { %5750 = vmatmul.mubr.f32.vlgmr.msra.gmra.mxu0 %v7547_v20 }
 0x491   : > { %5752 = vmatprep.mubr.f32.mxu0 %v3947_v61 }
 0x494   : > { %5753 = vmatmul.mubr.f32.gmra.mxu0 %v7564_v41 }
 0x534   : > { %v5709_v58 = vpop.f32.mrf.mxu1 }
 0x536   : > { %v4054_v47 = vpop.f32.mrf.mxu1 }
 0x538   : > { %v5712_v46 = vpop.f32.mrf.mxu1 }
 0x53a   : > { %v4066_v3 = vpop.f32.mrf.mxu1 }
 0x53c   : > { %v5695_v37 = vpop.f32.mrf.mxu0  ;;  %v5737_v15 = vpop.f32.mrf.mxu1 }
 0x53d   : > { %v3944_v34 = vadd.f32 %v5695_v37, %v4810_v59 }
 0x53e   : > { %v3933_v21 = vpop.f32.mrf.mxu0  ;;  %v4250_v48 = vpop.f32.mrf.mxu1 }
 0x53f   : > { %v3934_v28 = vadd.f32 %v4810_v59, %v3933_v21  ;;  %v4061_v8 = vadd.f32 %v5709_v58, %v3944_v34 }
 0x541   : > { %v4055_v33 = vadd.f32 %v4054_v47, %v3934_v28 }
 0x542   : > { %v5698_v25 = vpop.f32.mrf.mxu0  ;;  %v5740_v53 = vpop.f32.mrf.mxu1 }
 0x543   : > { %v3964_v18 = vadd.f32 %v5698_v25, %v4810_v59 }
 0x544   : > { %v3953_v44 = vpop.f32.mrf.mxu0  ;;  %v4266_v63 = vpop.f32.mrf.mxu1 }
 0x545   : > { %v3954_v9 = vadd.f32 %v4810_v59, %v3953_v44  ;;  %v4073_v22 = vadd.f32 %v5712_v46, %v3964_v18 }
 0x547   : > { %v4067_v27 = vadd.f32 %v4066_v3, %v3954_v9 }
 0x548   : > { %v5723_v5 = vpop.f32.mrf.mxu0  ;;  %v5765_v52 = vpop.f32.mrf.mxu1 }
 0x549   : > { %v4160_v38 = vadd.f32 %v5723_v5, %v4061_v8 }
 0x54a   : > { %v4152_v39 = vpop.f32.mrf.mxu0  ;;  %v4450_v54 = vpop.f32.mrf.mxu1 }
 0x54b   : > { %v4153_v0 = vadd.f32 %v4152_v39, %v4055_v33  ;;  %v4259_v50 = vadd.f32 %v5737_v15, %v4160_v38  ;;  %v4812_v39 = vld [vmem:[#allocation2] ss:$0 sm:$0xff] }
 0x54c   : > { %v5726_v26 = vpop.f32.mrf.mxu0 }
 0x54d   : > { %v4174_v42 = vadd.f32 %v5726_v26, %v4073_v22  ;;  %v4251_v20 = vadd.f32 %v4250_v48, %v4153_v0  ;;  %v5768_v60 = vpop.f32.mrf.mxu1 }
 0x54e   : > { %v4166_v19 = vpop.f32.mrf.mxu0 }
 0x54f   : > { %v4167_v29 = vadd.f32 %v4166_v19, %v4067_v27  ;;  %v4275_v49 = vadd.f32 %v5740_v53, %v4174_v42  ;;  %v4462_v40 = vpop.f32.mrf.mxu1 }
 0x550   : > { %v5751_v43 = vpop.f32.mrf.mxu0 }
 0x551   : > { %v4364_v32 = vadd.f32 %v5751_v43, %v4259_v50  ;;  %v4267_v41 = vadd.f32 %v4266_v63, %v4167_v29 }
 0x552   : > { %v4357_v13 = vpop.f32.mrf.mxu0 }
 0x553   : > { %v4457_v57 = vadd.f32 %v5765_v52, %v4364_v32  ;;  %v4358_v4 = vadd.f32 %v4357_v13, %v4251_v20 }
 0x554   : > { %v5754_v55 = vpop.f32.mrf.mxu0 }
 0x555   : > { %v4477_v17 = vmul.f32 0.70710677, %v4457_v57  ;;  %v4451_v62 = vadd.f32 %v4450_v54, %v4358_v4  ;;  %v4376_v16 = vadd.f32 %v5754_v55, %v4275_v49  ;;  %v4473_v23 = vmul.f32 0.5, %v4457_v57 }
 0x556   : > { %v4369_v10 = vpop.f32.mrf.mxu0 }
 0x557   : > { %5894 = verf.f32 %v4477_v17  ;;  %v4476_v31 = vmul.f32 0.70710677, %v4451_v62  ;;  %v4469_v61 = vadd.f32 %v5768_v60, %v4376_v16  ;;  %v4370_v30 = vadd.f32 %v4369_v10, %v4267_v41 }
 0x558   : > { %v4472_v51 = vmul.f32 0.5, %v4451_v62 }
 0x559   : > { %5896 = verf.f32 %v4476_v31  ;;  %v4479_v6 = vmul.f32 0.70710677, %v4469_v61  ;;  %v4463_v36 = vadd.f32 %v4462_v40, %v4370_v30  ;;  %v4475_v59 = vmul.f32 0.5, %v4469_v61 }
 0x55b   : > { %5898 = verf.f32 %v4479_v6  ;;  %v4478_v56 = vmul.f32 0.70710677, %v4463_v36  ;;  %v4474_v25 = vmul.f32 0.5, %v4463_v36 }
 0x55d   : > { %5900 = verf.f32 %v4478_v56 }
 0x564   : > { %v5895_v2 = vpop.eup %5894 }
 0x565   : > { %v4485_v1 = vadd.f32 1.0, %v5895_v2 }
 0x566   : > { %v5897_v14 = vpop.eup %5896 }
 0x567   : > { %v4489_v24 = vmul.f32 %v4485_v1, %v4473_v23  ;;  %v4484_v58 = vadd.f32 1.0, %v5897_v14 }
 0x568   : > { %v5899_v47 = vpop.eup %5898 }
 0x569   : > { %v4500_v46 = vmul.f32 %v4811_v7, %v4489_v24  ;;  %v4488_v3 = vmul.f32 %v4484_v58, %v4472_v51  ;;  %v4487_v37 = vadd.f32 1.0, %v5899_v47 }
 0x56a   : > { %v5901_v15 = vpop.eup %5900 }
 0x56b   : > { %v4506_v21 = vsel %vm3813_vm2, %v4500_v46, 0.0  ;;  %v4499_v48 = vmul.f32 %v4811_v7, %v4488_v3  ;;  %v4486_v44 = vadd.f32 1.0, %v5901_v15  ;;  %v4491_v28 = vmul.f32 %v4487_v37, %v4475_v59 }
 0x56c   : > { %4507 = vadd.xlane.f32.xlu1 %v4506_v21 }
 0x56d   : > { %v4503_v34 = vsel %vm3813_vm2, %v4499_v48, 0.0  ;;  %v4490_v53 = vmul.f32 %v4486_v44, %v4474_v25  ;;  %v4502_v63 = vmul.f32 %v4811_v7, %v4491_v28 }
 0x56e   : > { %4504 = vadd.xlane.f32.xlu0 %v4503_v34 }
 0x56f   : > { %v4501_v5 = vmul.f32 %v4811_v7, %v4490_v53  ;;  %v4512_v8 = vsel %vm3813_vm2, %v4502_v63, 0.0 }
 0x571   : > { %v4509_v18 = vsel %vm3813_vm2, %v4501_v5, 0.0 }
 0x572   : > { %4510 = vadd.xlane.f32.xlu0 %v4509_v18 }
 0x576   : > { %4513 = vadd.xlane.f32.xlu0 %v4512_v8 }
 0x5f5   : > { %v4508_v38 = vpop.xlane.xlu1 %4507 }
 0x5f6   : > { %v4523_v33 = vadd.f32 %v4812_v39, %v4508_v38 }
 0x5f7   : > { %v4505_v9 = vpop.xlane.xlu0 %4504 }
 0x5f8   : > { %v4527_v26 = vsub.f32 0.0, %v4523_v33  ;;  %v4522_v52 = vadd.f32 %v4812_v39, %v4505_v9 }
 0x5fa   : > { %v4532_v0 = vmul.f32 1.442695, %v4527_v26  ;;  %v4526_v22 = vsub.f32 0.0, %v4522_v52 }
 0x5fb   : > { %v4511_v42 = vpop.xlane.xlu0 %4510 }
 0x5fc   : > { %5902 = vpow2.f32 %v4532_v0  ;;  %v4530_v19 = vmul.f32 1.442695, %v4526_v22  ;;  %v4524_v50 = vadd.f32 %v4812_v39, %v4511_v42 }
 0x5fe   : > { %5904 = vpow2.f32 %v4530_v19  ;;  %v4528_v27 = vsub.f32 0.0, %v4524_v50 }
 0x5ff   : > { %v4514_v43 = vpop.xlane.xlu0 %4513 }
 0x600   : > { %v4534_v54 = vmul.f32 1.442695, %v4528_v27  ;;  %v4525_v32 = vadd.f32 %v4812_v39, %v4514_v43 }
 0x602   : > { %5906 = vpow2.f32 %v4534_v54  ;;  %v4529_v20 = vsub.f32 0.0, %v4525_v32 }
 0x604   : > { %v4536_v29 = vmul.f32 1.442695, %v4529_v20 }
 0x606   : > { %5908 = vpow2.f32 %v4536_v29 }
 0x609   : > { %v5903_v13 = vpop.eup %5902 }
 0x60a   : > { %v4539_v57 = vadd.f32 1.0, %v5903_v13 }
 0x60b   : > { %v5905_v4 = vpop.eup %5904 }
 0x60c   : > { %5910 = vrcp.f32 %v4539_v57  ;;  %v4538_v49 = vadd.f32 1.0, %v5905_v4 }
 0x60e   : > { %5912 = vrcp.f32 %v4538_v49 }
 0x60f   : > { %v5907_v55 = vpop.eup %5906 }
 0x610   : > { %v4540_v60 = vadd.f32 1.0, %v5907_v55 }
 0x612   : > { %5914 = vrcp.f32 %v4540_v60 }
 0x613   : > { %v5909_v17 = vpop.eup %5908 }
 0x614   : > { %v4541_v62 = vadd.f32 1.0, %v5909_v17 }
 0x616   : > { %5916 = vrcp.f32 %v4541_v62 }
 0x619   : > { %v5911_v16 = vpop.eup %5910 }
 0x61a   : > { %4557 = vperm.xlu0 %5828, %v5911_v16  }
 0x61b   : > { %v5913_v41 = vpop.eup %5912 }
 0x61c   : > { %4552 = vperm.xlu1 %5829, %v5913_v41  }
 0x61f   : > { %v5915_v10 = vpop.eup %5914 }
 0x620   : > { %4562 = vperm.xlu1 %5829, %v5915_v10  }
 0x623   : > { %v5917_v31 = vpop.eup %5916 }
 0x624   : > { %4567 = vperm.xlu1 %5829, %v5917_v31  }
 0x695   : > { %v4558_v61 = vpop.permute.xlu0 %4557 }
 0x696   : > { %4571 = vst [vmem:[%s7621_s19 + $0x8] sm:$0xff] %v4558_v61  ;;  %v4575_v30 = vmul.f32 %v4558_v61, %v7535_v11 }
 0x697   : > { %v4553_v40 = vpop.permute.xlu1 %4552 }
 0x698   : > { %4570 = vst [vmem:[%s7621_s19] sm:$0xff] %v4553_v40  ;;  %v4574_v6 = vmul.f32 %v4553_v40, %v7543_v35  ;;  %v4581_v36 = vsel %vm3845_vm5, %v4575_v30, 0.0 }
 0x699   : > { %4582 = vadd.xlane.f32.xlu0 %v4581_v36 }
 0x69a   : > { %v4578_v56 = vsel %vm3845_vm5, %v4574_v6, 0.0 }
 0x69b   : > { %4579 = vadd.xlane.f32.xlu1 %v4578_v56  ;;  %v4563_v2 = vpop.permute.xlu1 %4562 }
 0x69c   : > { %4572 = vst [vmem:[%s7621_s19 + $0x10] sm:$0xff] %v4563_v2  ;;  %v4576_v23 = vmul.f32 %v4563_v2, %v7561_v12 }
 0x69e   : > { %v4584_v1 = vsel %vm3845_vm5, %v4576_v23, 0.0 }
 0x69f   : > { %4585 = vadd.xlane.f32.xlu1 %v4584_v1  ;;  %v4568_v14 = vpop.permute.xlu1 %4567 }
 0x6a0   : > { %4573 = vst [vmem:[%s7621_s19 + $0x18] sm:$0xff] %v4568_v14  ;;  %v4577_v11 = vmul.f32 %v4568_v14, %v7553_v45  ;;  %s5998_s19 = smov [#allocation3]  }
 0x6a1   : > { %s5930_s1 = sshll.u32 %s5998_s19, 4  ;;  %s5931_s1 = int_to_ptr.vmem [resolvable:$false] %s5930_s1 }
 0x6a2   : > { %v4587_v7 = vsel %vm3845_vm5, %v4577_v11, 0.0  ;;  %s5932_s3 = scalar_lea.vmem %s5931_s1, 1024  ;;  %p5933_p0 = scmp.lt.s32.totalorder %s7656_s21, %s5931_s1 }
 0x6a3   : > { %4588 = vadd.xlane.f32.xlu1 %v4587_v7  ;;  %p5934_p1 = scmp.lt.s32.totalorder %s5932_s3, %s5926_s0 }
 0x6a5   : > { %p5935_p2 = por %p5934_p1, %p5933_p0 }
 0x6a7   : > { %p5936_p3 = pnand %p5935_p2, %p5929_p13 }
 0x722   : > { %v4583_v35 = vpop.xlane.xlu0 %4582 }
 0x723   : > { %v4592_v51 = vmul.f32 0.03125, %v4583_v35 }
 0x724   : > { %v4580_v24 = vpop.xlane.xlu1 %4579 }
 0x725   : > { %v7635_v58 = vsub.f32 %v4575_v30, %v4592_v51  ;;  %v4591_v47 = vmul.f32 0.03125, %v4580_v24 }
 0x727   : > { %v7637_v46 = vsub.f32 %v4574_v6, %v4591_v47  ;;  %v4600_v12 = vmul.f32 %v7635_v58, %v7635_v58 }
 0x728   : > { %v4586_v3 = vpop.xlane.xlu1 %4585 }
 0x729   : > { %v4606_v37 = vsel %vm3845_vm5, %v4600_v12, 0.0  ;;  %v4599_v45 = vmul.f32 %v7637_v46, %v7637_v46  ;;  %v4593_v15 = vmul.f32 0.03125, %v4586_v3 }
 0x72a   : > { %4607 = vadd.xlane.f32.xlu1 %v4606_v37 }
 0x72b   : > { %v7644_v21 = vsub.f32 %v4576_v23, %v4593_v15  ;;  %v4603_v59 = vsel %vm3845_vm5, %v4599_v45, 0.0 }
 0x72c   : > { %v4589_v48 = vpop.xlane.xlu1 %4588 }
 0x72d   : > { %v4594_v25 = vmul.f32 0.03125, %v4589_v48  ;;  %v4601_v44 = vmul.f32 %v7644_v21, %v7644_v21 }
 0x72e   : > { %4604 = vadd.xlane.f32.xlu1 %v4603_v59 }
 0x72f   : > { %v7649_v34 = vsub.f32 %v4577_v11, %v4594_v25  ;;  %v4609_v53 = vsel %vm3845_vm5, %v4601_v44, 0.0 }
 0x731   : > { %v4602_v28 = vmul.f32 %v7649_v34, %v7649_v34 }
 0x732   : > { %4610 = vadd.xlane.f32.xlu1 %v4609_v53 }
 0x733   : > { %v4612_v5 = vsel %vm3845_vm5, %v4602_v28, 0.0 }
 0x734   : > { %4613 = vadd.xlane.f32.xlu0 %v4612_v5 }
 0x735   : > { %5939 = shalt.err (!%p5936_p3)
}
 0x736   : > { %s5940_s10 = scalar_lea.hbm %s7662_s30, 512  ;;  %s5944_s26 = scalar_lea.hbm %s7739_s14, 1024 }
 0x737   : > { %p5941_p4 = scmp.ne.s32.totalorder %s7662_s30, %s5940_s10  ;;  %p5945_p9 = scmp.lt.s32.totalorder %s7662_s30, %s7739_s14 }
 0x738   : > { %p5946_p10 = scmp.lt.s32.totalorder %s5944_s26, %s5940_s10 }
 0x739   : > { %p5942_p7 = pnand %p5941_p4, %p6116_p5 }
 0x73a   : > { %p5947_p11 = por %p5946_p10, %p5945_p9 }
 0x73b   : > { %p5943_p8 = pneg %p5942_p7 }
 0x73d   : > { %p5948_p12 = pnand %p5947_p11, %p5943_p8 }
 0x73f   : > { %5951 = shalt.err (!%p5948_p12)
}
 0x740   : > { %s5999_s0 = smov 128   ;;  %s7751_s1 = smov 8   ;;  %v4813_v27 = vld [vmem:[%s7736_s11] ss:$0 sm:$0xff] }
 0x741   : > { %5769 = dma.vmem_to_hbm [thread:$0]  (%p6116_p5), %s7656_s21, 512, %s7662_s30, %s7666_s22, %s5999_s0, %s5999_s0, %s7751_s1  }
 0x742   : > { %v4814_v20 = vld [vmem:[%s7737_s12] ss:$0 sm:$0xff]  ;;  %s526_s28 = scalar_lea.vmem %s7738_s13, %s6135_s29 }
 0x7b3   : > { %v4608_v18 = vpop.xlane.xlu1 %4607 }
 0x7b4   : > { %v4616_v63 = vmul.f32 0.03125, %v4608_v18 }
 0x7b6   : > { %v4620_v8 = vadd.f32 1e-05, %v4616_v63 }
 0x7b7   : > { %v4605_v39 = vpop.xlane.xlu1 %4604 }
 0x7b8   : > { %5918 = vrsqrt.f32 %v4620_v8  ;;  %v4615_v38 = vmul.f32 0.03125, %v4605_v39 }
 0x7ba   : > { %v4619_v33 = vadd.f32 1e-05, %v4615_v38 }
 0x7bb   : > { %v4611_v9 = vpop.xlane.xlu1 %4610 }
 0x7bc   : > { %5920 = vrsqrt.f32 %v4619_v33  ;;  %v4617_v26 = vmul.f32 0.03125, %v4611_v9 }
 0x7bd   : > { %v4614_v0 = vpop.xlane.xlu0 %4613 }
 0x7be   : > { %v4621_v52 = vadd.f32 1e-05, %v4617_v26  ;;  %v4618_v22 = vmul.f32 0.03125, %v4614_v0 }
 0x7c0   : > { %5922 = vrsqrt.f32 %v4621_v52  ;;  %v4622_v19 = vadd.f32 1e-05, %v4618_v22 }
 0x7c2   : > { %5924 = vrsqrt.f32 %v4622_v19 }
 0x7c5   : > { %v5919_v42 = vpop.eup %5918 }
 0x7c6   : > { %v4628_v50 = vmul.f32 %v5919_v42, %v7635_v58 }
 0x7c8   : > { %v4639_v32 = vmul.f32 %v4813_v27, %v4628_v50 }
 0x7c9   : > { %v5921_v43 = vpop.eup %5920 }
 0x7ca   : > { %v4627_v54 = vmul.f32 %v5921_v43, %v7637_v46  ;;  %v4650_v49 = vadd.f32 %v4814_v20, %v4639_v32 }
 0x7cc   : > { %v4638_v29 = vmul.f32 %v4813_v27, %v4627_v54  ;;  %4654 = vst.msk [vmem:[%s526_s28 + $0x8] sm:$0xff] %vm3845_vm5, %v4650_v49 }
 0x7cd   : > { %v5923_v13 = vpop.eup %5922 }
 0x7ce   : > { %v4649_v57 = vadd.f32 %v4814_v20, %v4638_v29  ;;  %v4629_v4 = vmul.f32 %v5923_v13, %v7644_v21 }
 0x7cf   : > { %v5925_v55 = vpop.eup %5924 }
 0x7d0   : > { %4653 = vst.msk [vmem:[%s526_s28] sm:$0xff] %vm3845_vm5, %v4649_v57  ;;  %v4640_v60 = vmul.f32 %v4813_v27, %v4629_v4  ;;  %v4630_v17 = vmul.f32 %v5925_v55, %v7649_v34 }
 0x7d2   : > { %v4651_v62 = vadd.f32 %v4814_v20, %v4640_v60  ;;  %v4641_v16 = vmul.f32 %v4813_v27, %v4630_v17 }
 0x7d4   : > { %4655 = vst.msk [vmem:[%s526_s28 + $0x10] sm:$0xff] %vm3845_vm5, %v4651_v62  ;;  %v4652_v41 = vadd.f32 %v4814_v20, %v4641_v16 }
 0x7d6   : > { %4656 = vst.msk [vmem:[%s526_s28 + $0x18] sm:$0xff] %vm3845_vm5, %v4652_v41 }
 0x7d7 PF: > { %p5775_p5 = scmp.ge.s32.totalorder %s5986_s18, 2  ;;  %s4703_s29 = sand.u32 1, %s5974_s15  }
 0x7d8   : > { %s4704_s2 = scalar_lea.sflag [#allocation4], %s4703_s29 }
 0x7d9   : > { %p5772_p13 = pnand %p5775_p5, %p6120_p6 }
 0x7db   : > { %p5773_p0 = pneg %p5772_p13 }
 0x7dd   : > { %5969 = dma.done.wait (%p5773_p0), %s4704_s2, 512  }
 0x7de   : > { %5971 = vsyncadd (%p5773_p0), %s4704_s2, 4294966784  ;;  %p27_p1 = scmp.ge.s32.totalorder %s6103_s20, 4   ;;  %s7752_s15 = smov %s5978_s16 }
 0x7df   : > { %s7753_s16 = smov %s5982_s17  ;;  %s7754_s17 = smov %s6114_s23 }
 0x7e0   : > { %s7755_s18 = smov %s6103_s20  ;;  %29 = sbr.rel (!%p27_p1) target bundleno = 8 (0x8), region = 125 }
 0x7e5   :  { %4709 = vsyncpa [#allocation4], 1 }
 0x7e6   :  { %4711 = vsyncpa [#allocation4 + $0x1], 1 }

</bundles_post_ra>
